<compile_context>
chip_gen: v7x
topology: tpu7x:2x2x1
jax: 0.10.0
libtpu: 0.0.40
codegen_flags: <defaults>
</compile_context>

<pallas_src>
import jax
import jax.numpy as jnp
from jax.experimental import pallas as pl
from jax.experimental.pallas import tpu as pltpu

BRANCH_NUM = 11
FEATURE_DIM = 512


def _default_group():
    """Branches fused per grid step: 6 on v7x (one step per TensorCore), 3 otherwise."""
    try:
        kind = jax.devices()[0].device_kind.lower()
    except Exception:
        return 3
    return 6 if ("v7" in kind or "tpu7" in kind) else 3


def _pick_n_tile(n, group):
    """N-tile size: lane/sublane friendly, capped so double-buffered VMEM stays small."""
    cap = 512 if group <= 3 else 256
    for t in (cap, 256, 128):
        if n >= t and n % t == 0:
            return t
    return n  # small or ragged N: single full-extent tile (satisfies the (8,128) rule)


def _make_fused_kernel(g):
    def kernel(x_ref, w1_ref, b1_ref, w2_ref, b2_ref, o_ref):
        # Block shapes:
        #   x_ref : (g, TN, F) f32     w*_ref : (g, F, F) bf16
        #   b*_ref: (g, 1, F)  f32     o_ref  : (g, TN, F) f32
        for j in range(g):  # static unroll over fused branches
            x = x_ref[j].astype(jnp.bfloat16)               # cast in-kernel (free vs HBM)
            # Linear -> (bias add on f32 acc) -> ReLU.  Dropout == identity (eval).
            h = jnp.dot(x, w1_ref[j], preferred_element_type=jnp.float32)
            h = jnp.maximum(h + b1_ref[j], 0.0)
            # TODO(synk): training-mode Dropout(p=0.5) would need pltpu.prng_*
            # masking; forward here reproduces eval-mode semantics (identity).
            h = h.astype(jnp.bfloat16)                       # bf16 MXU input
            y = jnp.dot(h, w2_ref[j], preferred_element_type=jnp.float32)
            o_ref[j] = jnp.maximum(y + b2_ref[j], 0.0).astype(o_ref.dtype)
    return kernel


def prepare_params(w1, b1, w2, b2, *, group=None):
    """One-time parameter prep (do NOT call per forward):
    cast weights to bf16, reshape biases to (B,1,F) f32, zero-pad branch dim to a
    multiple of `group`.  Invariant: padded branches must stay all-zero (their
    outputs are relu(0)=0 and are sliced off)."""
    if group is None:
        group = _default_group()
    B, F, _ = w1.shape
    Bp = group * pl.cdiv(B, group)
    w1b = w1.astype(jnp.bfloat16)
    w2b = w2.astype(jnp.bfloat16)
    b1r = b1.reshape(B, 1, F).astype(jnp.float32)
    b2r = b2.reshape(B, 1, F).astype(jnp.float32)
    if Bp != B:
        pad = ((0, Bp - B), (0, 0), (0, 0))
        w1b = jnp.pad(w1b, pad)
        w2b = jnp.pad(w2b, pad)
        b1r = jnp.pad(b1r, pad)
        b2r = jnp.pad(b2r, pad)
    return {
        "w1": w1b, "b1": b1r, "w2": w2b, "b2": b2r,
        "group": int(group), "branch_num": int(B),
    }


def task_specific_subnets(x, params):
    """x: (BRANCH_NUM, N, F) float32.  params: output of prepare_params().

    Returns (BRANCH_NUM, N, F) float32, matching torch.cat of per-branch outputs.
    """
    group = params["group"]
    B = params["branch_num"]
    w1, b1, w2, b2 = params["w1"], params["b1"], params["w2"], params["b2"]
    Bp, F, _ = w1.shape
    Bx, N, Fx = x.shape
    assert Bx == B and Fx == F and F == FEATURE_DIM

    # Only x (tiny, ~N*F*4 bytes per branch) is padded per call; weights are pre-padded.
    if Bp != B:
        x = jnp.pad(x, ((0, Bp - B), (0, 0), (0, 0)))

    tn = _pick_n_tile(N, group)
    grid = (Bp // group, N // tn)  # N axis innermost; weights stay resident across it

    out = pl.pallas_call(
        _make_fused_kernel(group),
        out_shape=jax.ShapeDtypeStruct((Bp, N, F), jnp.float32),
        grid_spec=pltpu.PrefetchScalarGridSpec(
            num_scalar_prefetch=0,
            grid=grid,
            in_specs=[
                pl.BlockSpec((group, tn, F), lambda i, n: (i, n, 0)),  # x
                pl.BlockSpec((group, F, F), lambda i, n: (i, 0, 0)),   # W1 (resident over n)
                pl.BlockSpec((group, 1, F), lambda i, n: (i, 0, 0)),   # b1
                pl.BlockSpec((group, F, F), lambda i, n: (i, 0, 0)),   # W2 (resident over n)
                pl.BlockSpec((group, 1, F), lambda i, n: (i, 0, 0)),   # b2
            ],
            out_specs=pl.BlockSpec((group, tn, F), lambda i, n: (i, n, 0)),
        ),
        compiler_params=pltpu.CompilerParams(
            dimension_semantics=("parallel", "arbitrary"),
            vmem_limit_bytes=32 * 1024 * 1024,
        ),
    )(x, w1, b1, w2, b2)
    return out[:B]


def init_params(key):
    """Deterministic init mirroring _init_weights: trunc_normal(std=0.02) weights,
    zero biases, for each of the 11 branches (two Linear layers each)."""
    k1, k2 = jax.random.split(key)
    std = 0.02
    # trunc_normal_ truncates at +/-2 (absolute); with std=0.02 that is ~100 sigma,
    # so a plain normal scaled by std is numerically equivalent.
    w1 = std * jax.random.normal(k1, (BRANCH_NUM, FEATURE_DIM, FEATURE_DIM), jnp.float32)
    w2 = std * jax.random.normal(k2, (BRANCH_NUM, FEATURE_DIM, FEATURE_DIM), jnp.float32)
    b1 = jnp.zeros((BRANCH_NUM, FEATURE_DIM), jnp.float32)
    b2 = jnp.zeros((BRANCH_NUM, FEATURE_DIM), jnp.float32)
    return w1, b1, w2, b2


def reference(x, w1, b1, w2, b2):
    # Pure-JAX f32 reference (eval-mode forward).
    h = jnp.maximum(jnp.einsum("bnf,bfg->bng", x, w1) + b1[:, None, :], 0.0)
    y = jnp.maximum(jnp.einsum("bnf,bfg->bng", h, w2) + b2[:, None, :], 0.0)
    return y


if __name__ == "__main__":
    key = jax.random.PRNGKey(0)
    kx, kp = jax.random.split(key)

    batch = 8  # small batch per branch
    x = jax.random.normal(kx, (BRANCH_NUM, batch, FEATURE_DIM), jnp.float32)
    w1, b1, w2, b2 = init_params(kp)

    # One-time parameter preparation (bf16 cast + branch pad hoisted out of the call path).
    params = prepare_params(w1, b1, w2, b2)

    out = task_specific_subnets(x, params)
    out = jax.block_until_ready(out)

    ref = reference(x, w1, b1, w2, b2)
    assert out.shape == (BRANCH_NUM, batch, FEATURE_DIM)
    # bf16 weight streaming (f32 accumulation) -> loosened tolerance vs f32 reference.
    assert jnp.allclose(out, ref, atol=2e-2, rtol=2e-2), "mismatch vs reference"

    print("KERNEL_OK")
</pallas_src>

<mosaic_0001>
module attributes {stable_mosaic.version = 11 : i64} {
  func.func @kernel(%arg0: i32, %arg1: i32, %arg2: memref<3x8x512xf32, #tpu.memory_space<vmem>>, %arg3: memref<3x512x512xbf16, #tpu.memory_space<vmem>>, %arg4: memref<3x1x512xf32, #tpu.memory_space<vmem>>, %arg5: memref<3x512x512xbf16, #tpu.memory_space<vmem>>, %arg6: memref<3x1x512xf32, #tpu.memory_space<vmem>>, %arg7: memref<3x8x512xf32, #tpu.memory_space<vmem>>) attributes {dimension_semantics = [#tpu.dimension_semantics<parallel>, #tpu.dimension_semantics<arbitrary>], iteration_bounds = array<i64: 4, 1>, scalar_prefetch = 0 : i64, scratch_operands = 0 : i64, tpu.core_type = #tpu.core_type<tc>, window_params = [{transform_indices = @transform_0, window_bounds = array<i64: 3, 8, 512>}, {transform_indices = @transform_1, window_bounds = array<i64: 3, 512, 512>}, {transform_indices = @transform_2, window_bounds = array<i64: 3, 1, 512>}, {transform_indices = @transform_3, window_bounds = array<i64: 3, 512, 512>}, {transform_indices = @transform_4, window_bounds = array<i64: 3, 1, 512>}, {transform_indices = @transform_5, window_bounds = array<i64: 3, 8, 512>}]} {
    %c0 = arith.constant 0 : index
    %c0_0 = arith.constant 0 : index
    %c0_1 = arith.constant 0 : index
    %0 = vector.load %arg2[%c0, %c0_0, %c0_1] : memref<3x8x512xf32, #tpu.memory_space<vmem>>, vector<1x8x512xf32>
    %1 = vector.shape_cast %0 : vector<1x8x512xf32> to vector<8x512xf32>
    %2 = arith.truncf %1 : vector<8x512xf32> to vector<8x512xbf16>
    %c0_2 = arith.constant 0 : index
    %c0_3 = arith.constant 0 : index
    %c0_4 = arith.constant 0 : index
    %3 = vector.load %arg3[%c0_2, %c0_3, %c0_4] : memref<3x512x512xbf16, #tpu.memory_space<vmem>>, vector<1x512x512xbf16>
    %4 = vector.shape_cast %3 : vector<1x512x512xbf16> to vector<512x512xbf16>
    %cst = arith.constant dense<0.000000e+00> : vector<8x512xf32>
    %5 = tpu.matmul %2, %4, %cst {dimension_numbers = #tpu.dot_dimension_numbers<[1], [0], [0], [1], [0, 0, 1, 1], [], []>} : vector<8x512xbf16>, vector<512x512xbf16>, vector<8x512xf32> -> vector<8x512xf32>
    %c0_5 = arith.constant 0 : index
    %c0_6 = arith.constant 0 : index
    %c0_7 = arith.constant 0 : index
    %6 = vector.load %arg4[%c0_5, %c0_6, %c0_7] : memref<3x1x512xf32, #tpu.memory_space<vmem>>, vector<1x1x512xf32>
    %7 = vector.shape_cast %6 : vector<1x1x512xf32> to vector<1x512xf32>
    %8 = vector.broadcast %7 : vector<1x512xf32> to vector<8x512xf32>
    %9 = arith.addf %5, %8 : vector<8x512xf32>
    %cst_8 = arith.constant 0.000000e+00 : f32
    %10 = vector.broadcast %cst_8 : f32 to vector<8x512xf32>
    %11 = arith.maximumf %9, %10 : vector<8x512xf32>
    %12 = arith.truncf %11 : vector<8x512xf32> to vector<8x512xbf16>
    %c0_9 = arith.constant 0 : index
    %c0_10 = arith.constant 0 : index
    %c0_11 = arith.constant 0 : index
    %13 = vector.load %arg5[%c0_9, %c0_10, %c0_11] : memref<3x512x512xbf16, #tpu.memory_space<vmem>>, vector<1x512x512xbf16>
    %14 = vector.shape_cast %13 : vector<1x512x512xbf16> to vector<512x512xbf16>
    %cst_12 = arith.constant dense<0.000000e+00> : vector<8x512xf32>
    %15 = tpu.matmul %12, %14, %cst_12 {dimension_numbers = #tpu.dot_dimension_numbers<[1], [0], [0], [1], [0, 0, 1, 1], [], []>} : vector<8x512xbf16>, vector<512x512xbf16>, vector<8x512xf32> -> vector<8x512xf32>
    %c0_13 = arith.constant 0 : index
    %c0_14 = arith.constant 0 : index
    %c0_15 = arith.constant 0 : index
    %16 = vector.load %arg6[%c0_13, %c0_14, %c0_15] : memref<3x1x512xf32, #tpu.memory_space<vmem>>, vector<1x1x512xf32>
    %17 = vector.shape_cast %16 : vector<1x1x512xf32> to vector<1x512xf32>
    %18 = vector.broadcast %17 : vector<1x512xf32> to vector<8x512xf32>
    %19 = arith.addf %15, %18 : vector<8x512xf32>
    %cst_16 = arith.constant 0.000000e+00 : f32
    %20 = vector.broadcast %cst_16 : f32 to vector<8x512xf32>
    %21 = arith.maximumf %19, %20 : vector<8x512xf32>
    %c0_17 = arith.constant 0 : index
    %c0_18 = arith.constant 0 : index
    %c0_19 = arith.constant 0 : index
    %22 = vector.load %arg7[%c0_17, %c0_18, %c0_19] : memref<3x8x512xf32, #tpu.memory_space<vmem>>, vector<1x8x512xf32>
    %23 = vector.shape_cast %22 : vector<1x8x512xf32> to vector<8x512xf32>
    %24 = vector.shape_cast %21 : vector<8x512xf32> to vector<1x8x512xf32>
    tpu.vector_store %arg7[%c0_17, %c0_18, %c0_19], %24 {strides = array<i32>} : memref<3x8x512xf32, #tpu.memory_space<vmem>>, vector<1x8x512xf32>,
    %c1 = arith.constant 1 : index
    %c0_20 = arith.constant 0 : index
    %c0_21 = arith.constant 0 : index
    %25 = vector.load %arg2[%c1, %c0_20, %c0_21] : memref<3x8x512xf32, #tpu.memory_space<vmem>>, vector<1x8x512xf32>
    %26 = vector.shape_cast %25 : vector<1x8x512xf32> to vector<8x512xf32>
    %27 = arith.truncf %26 : vector<8x512xf32> to vector<8x512xbf16>
    %c1_22 = arith.constant 1 : index
    %c0_23 = arith.constant 0 : index
    %c0_24 = arith.constant 0 : index
    %28 = vector.load %arg3[%c1_22, %c0_23, %c0_24] : memref<3x512x512xbf16, #tpu.memory_space<vmem>>, vector<1x512x512xbf16>
    %29 = vector.shape_cast %28 : vector<1x512x512xbf16> to vector<512x512xbf16>
    %cst_25 = arith.constant dense<0.000000e+00> : vector<8x512xf32>
    %30 = tpu.matmul %27, %29, %cst_25 {dimension_numbers = #tpu.dot_dimension_numbers<[1], [0], [0], [1], [0, 0, 1, 1], [], []>} : vector<8x512xbf16>, vector<512x512xbf16>, vector<8x512xf32> -> vector<8x512xf32>
    %c1_26 = arith.constant 1 : index
    %c0_27 = arith.constant 0 : index
    %c0_28 = arith.constant 0 : index
    %31 = vector.load %arg4[%c1_26, %c0_27, %c0_28] : memref<3x1x512xf32, #tpu.memory_space<vmem>>, vector<1x1x512xf32>
    %32 = vector.shape_cast %31 : vector<1x1x512xf32> to vector<1x512xf32>
    %33 = vector.broadcast %32 : vector<1x512xf32> to vector<8x512xf32>
    %34 = arith.addf %30, %33 : vector<8x512xf32>
    %cst_29 = arith.constant 0.000000e+00 : f32
    %35 = vector.broadcast %cst_29 : f32 to vector<8x512xf32>
    %36 = arith.maximumf %34, %35 : vector<8x512xf32>
    %37 = arith.truncf %36 : vector<8x512xf32> to vector<8x512xbf16>
    %c1_30 = arith.constant 1 : index
    %c0_31 = arith.constant 0 : index
    %c0_32 = arith.constant 0 : index
    %38 = vector.load %arg5[%c1_30, %c0_31, %c0_32] : memref<3x512x512xbf16, #tpu.memory_space<vmem>>, vector<1x512x512xbf16>
    %39 = vector.shape_cast %38 : vector<1x512x512xbf16> to vector<512x512xbf16>
    %cst_33 = arith.constant dense<0.000000e+00> : vector<8x512xf32>
    %40 = tpu.matmul %37, %39, %cst_33 {dimension_numbers = #tpu.dot_dimension_numbers<[1], [0], [0], [1], [0, 0, 1, 1], [], []>} : vector<8x512xbf16>, vector<512x512xbf16>, vector<8x512xf32> -> vector<8x512xf32>
    %c1_34 = arith.constant 1 : index
    %c0_35 = arith.constant 0 : index
    %c0_36 = arith.constant 0 : index
    %41 = vector.load %arg6[%c1_34, %c0_35, %c0_36] : memref<3x1x512xf32, #tpu.memory_space<vmem>>, vector<1x1x512xf32>
    %42 = vector.shape_cast %41 : vector<1x1x512xf32> to vector<1x512xf32>
    %43 = vector.broadcast %42 : vector<1x512xf32> to vector<8x512xf32>
    %44 = arith.addf %40, %43 : vector<8x512xf32>
    %cst_37 = arith.constant 0.000000e+00 : f32
    %45 = vector.broadcast %cst_37 : f32 to vector<8x512xf32>
    %46 = arith.maximumf %44, %45 : vector<8x512xf32>
    %c1_38 = arith.constant 1 : index
    %c0_39 = arith.constant 0 : index
    %c0_40 = arith.constant 0 : index
    %47 = vector.load %arg7[%c1_38, %c0_39, %c0_40] : memref<3x8x512xf32, #tpu.memory_space<vmem>>, vector<1x8x512xf32>
    %48 = vector.shape_cast %47 : vector<1x8x512xf32> to vector<8x512xf32>
    %49 = vector.shape_cast %46 : vector<8x512xf32> to vector<1x8x512xf32>
    tpu.vector_store %arg7[%c1_38, %c0_39, %c0_40], %49 {strides = array<i32>} : memref<3x8x512xf32, #tpu.memory_space<vmem>>, vector<1x8x512xf32>,
    %c2 = arith.constant 2 : index
    %c0_41 = arith.constant 0 : index
    %c0_42 = arith.constant 0 : index
    %50 = vector.load %arg2[%c2, %c0_41, %c0_42] : memref<3x8x512xf32, #tpu.memory_space<vmem>>, vector<1x8x512xf32>
    %51 = vector.shape_cast %50 : vector<1x8x512xf32> to vector<8x512xf32>
    %52 = arith.truncf %51 : vector<8x512xf32> to vector<8x512xbf16>
    %c2_43 = arith.constant 2 : index
    %c0_44 = arith.constant 0 : index
    %c0_45 = arith.constant 0 : index
    %53 = vector.load %arg3[%c2_43, %c0_44, %c0_45] : memref<3x512x512xbf16, #tpu.memory_space<vmem>>, vector<1x512x512xbf16>
    %54 = vector.shape_cast %53 : vector<1x512x512xbf16> to vector<512x512xbf16>
    %cst_46 = arith.constant dense<0.000000e+00> : vector<8x512xf32>
    %55 = tpu.matmul %52, %54, %cst_46 {dimension_numbers = #tpu.dot_dimension_numbers<[1], [0], [0], [1], [0, 0, 1, 1], [], []>} : vector<8x512xbf16>, vector<512x512xbf16>, vector<8x512xf32> -> vector<8x512xf32>
    %c2_47 = arith.constant 2 : index
    %c0_48 = arith.constant 0 : index
    %c0_49 = arith.constant 0 : index
    %56 = vector.load %arg4[%c2_47, %c0_48, %c0_49] : memref<3x1x512xf32, #tpu.memory_space<vmem>>, vector<1x1x512xf32>
    %57 = vector.shape_cast %56 : vector<1x1x512xf32> to vector<1x512xf32>
    %58 = vector.broadcast %57 : vector<1x512xf32> to vector<8x512xf32>
    %59 = arith.addf %55, %58 : vector<8x512xf32>
    %cst_50 = arith.constant 0.000000e+00 : f32
    %60 = vector.broadcast %cst_50 : f32 to vector<8x512xf32>
    %61 = arith.maximumf %59, %60 : vector<8x512xf32>
    %62 = arith.truncf %61 : vector<8x512xf32> to vector<8x512xbf16>
    %c2_51 = arith.constant 2 : index
    %c0_52 = arith.constant 0 : index
    %c0_53 = arith.constant 0 : index
    %63 = vector.load %arg5[%c2_51, %c0_52, %c0_53] : memref<3x512x512xbf16, #tpu.memory_space<vmem>>, vector<1x512x512xbf16>
    %64 = vector.shape_cast %63 : vector<1x512x512xbf16> to vector<512x512xbf16>
    %cst_54 = arith.constant dense<0.000000e+00> : vector<8x512xf32>
    %65 = tpu.matmul %62, %64, %cst_54 {dimension_numbers = #tpu.dot_dimension_numbers<[1], [0], [0], [1], [0, 0, 1, 1], [], []>} : vector<8x512xbf16>, vector<512x512xbf16>, vector<8x512xf32> -> vector<8x512xf32>
    %c2_55 = arith.constant 2 : index
    %c0_56 = arith.constant 0 : index
    %c0_57 = arith.constant 0 : index
    %66 = vector.load %arg6[%c2_55, %c0_56, %c0_57] : memref<3x1x512xf32, #tpu.memory_space<vmem>>, vector<1x1x512xf32>
    %67 = vector.shape_cast %66 : vector<1x1x512xf32> to vector<1x512xf32>
    %68 = vector.broadcast %67 : vector<1x512xf32> to vector<8x512xf32>
    %69 = arith.addf %65, %68 : vector<8x512xf32>
    %cst_58 = arith.constant 0.000000e+00 : f32
    %70 = vector.broadcast %cst_58 : f32 to vector<8x512xf32>
    %71 = arith.maximumf %69, %70 : vector<8x512xf32>
    %c2_59 = arith.constant 2 : index
    %c0_60 = arith.constant 0 : index
    %c0_61 = arith.constant 0 : index
    %72 = vector.load %arg7[%c2_59, %c0_60, %c0_61] : memref<3x8x512xf32, #tpu.memory_space<vmem>>, vector<1x8x512xf32>
    %73 = vector.shape_cast %72 : vector<1x8x512xf32> to vector<8x512xf32>
    %74 = vector.shape_cast %71 : vector<8x512xf32> to vector<1x8x512xf32>
    tpu.vector_store %arg7[%c2_59, %c0_60, %c0_61], %74 {strides = array<i32>} : memref<3x8x512xf32, #tpu.memory_space<vmem>>, vector<1x8x512xf32>,
    return
  }
  func.func @transform_0(%arg0: i32, %arg1: i32) -> (i32, i32, i32) {
    %c0_i32 = arith.constant 0 : i32
    %c0_i32_0 = arith.constant 0 : i32
    return %arg0, %arg1, %c0_i32 : i32, i32, i32
  }
  func.func @transform_1(%arg0: i32, %arg1: i32) -> (i32, i32, i32) {
    %c0_i32 = arith.constant 0 : i32
    %c0_i32_0 = arith.constant 0 : i32
    %c0_i32_1 = arith.constant 0 : i32
    return %arg0, %c0_i32, %c0_i32_0 : i32, i32, i32
  }
  func.func @transform_2(%arg0: i32, %arg1: i32) -> (i32, i32, i32) {
    %c0_i32 = arith.constant 0 : i32
    %c0_i32_0 = arith.constant 0 : i32
    %c0_i32_1 = arith.constant 0 : i32
    return %arg0, %c0_i32, %c0_i32_0 : i32, i32, i32
  }
  func.func @transform_3(%arg0: i32, %arg1: i32) -> (i32, i32, i32) {
    %c0_i32 = arith.constant 0 : i32
    %c0_i32_0 = arith.constant 0 : i32
    %c0_i32_1 = arith.constant 0 : i32
    return %arg0, %c0_i32, %c0_i32_0 : i32, i32, i32
  }
  func.func @transform_4(%arg0: i32, %arg1: i32) -> (i32, i32, i32) {
    %c0_i32 = arith.constant 0 : i32
    %c0_i32_0 = arith.constant 0 : i32
    %c0_i32_1 = arith.constant 0 : i32
    return %arg0, %c0_i32, %c0_i32_0 : i32, i32, i32
  }
  func.func @transform_5(%arg0: i32, %arg1: i32) -> (i32, i32, i32) {
    %c0_i32 = arith.constant 0 : i32
    %c0_i32_0 = arith.constant 0 : i32
    return %arg0, %arg1, %c0_i32 : i32, i32, i32
  }
}

</mosaic_0001>

<bundles_post_ra>
// kernel: tpu_custom_call.1
= control target key start
LH: loop header
LB: loop body
LE: loop exit
PB: predicated region body
PF: predicated region fallthrough
CT: control target
= control target key end

     0   :  { %s10607_s0 = inlined_call_operand.hbm [shape: f32[12,8,512], index: 0, kind: input, shape index: {}]   ;;  %s10608_s1 = inlined_call_operand.hbm [shape: bf16[12,512,512], index: 1, kind: input, shape index: {}]   ;;  %s10609_s2 = inlined_call_operand.hbm [shape: f32[12,1,512], index: 2, kind: input, shape index: {}]   ;;  %s10610_s3 = inlined_call_operand.hbm [shape: bf16[12,512,512], index: 3, kind: input, shape index: {}]   ;;  %s10611_s4 = inlined_call_operand.hbm [shape: f32[12,1,512], index: 4, kind: input, shape index: {}]   ;;  %s10612_s5 = inlined_call_operand.hbm [shape: f32[12,8,512], index: 5, kind: output, shape index: {}]  }
   0x1   :  { %10624 = sst [smem:[#allocation21_spill]] %s10608_s1 }
   0x2   :  { %10625 = sst [smem:[#allocation22_spill]] %s10610_s3 }
   0x3   :  { %10 = vsyncpa [#allocation3], 0 }
   0x4   :  { %12 = vsyncpa [#allocation3 + $0x1], 0 }
   0x5   :  { %13 = vsyncpa [#allocation6], 0 }
   0x6   :  { %15 = vsyncpa [#allocation6 + $0x1], 0 }
   0x7   :  { %16 = vsyncpa [#allocation9], 0 }
   0x8   :  { %18 = vsyncpa [#allocation9 + $0x1], 0 }
   0x9   :  { %19 = vsyncpa [#allocation4], 0 }
   0xa   :  { %21 = vsyncpa [#allocation4 + $0x1], 0  ;;  %s9369_s18 = smov 0   ;;  %s9371_s19 = smov 0  }
   0xb   :  { %s9373_s20 = smov 0   ;;  %s9375_s21 = smov 0  }
   0xc   :  { %s9377_s22 = smov 0   ;;  %s9379_s23 = smov 0  }
   0xd LB: > { %10626 = sst [smem:[#allocation16_spill]] %s9303_s18  ;;  %s9400_s24 = sadd.s32 4294967295, %s9323_s23   ;;  %s9323_s23 = sphi %s9379_s23, %s27_s23   ;;  %s9319_s22 = sphi %s9377_s22, %s10657_s22   ;;  %s9315_s21 = sphi %s9375_s21, %s10656_s21   ;;  %s9311_s20 = sphi %s9373_s20, %s10652_s20   ;;  %s9307_s19 = sphi %s9371_s19, %s10655_s19   ;;  %s9303_s18 = sphi %s9369_s18, %s10654_s18  }
   0xe   : > { %10627 = sst [smem:[#allocation17_spill]] %s9311_s20  ;;  %s6425_s25 = sadd.s32 4294967294, %s9323_s23  }
   0xf   : > { %s39_s26 = sadd.s32 1, %s9319_s22  ;;  %s48_s27 = sadd.s32 1, %s9311_s20 }
  0x10   : > { %p41_p0 = scmp.ge.s32.totalorder %s39_s26, 4  ;;  %p55_p1 = scmp.ne.s32.totalorder %s9311_s20, %s9307_s19 }
  0x11   : > { %p56_p2 = scmp.eq.s32.totalorder %s9323_s23, 0  ;;  %p61_p3 = scmp.ne.s32.totalorder %s9307_s19, %s9303_s18 }
  0x12   : > { %s10659_s26 = smov (%p41_p0, %s39_s26), 0  ;;  %p62_p5 = scmp.eq.s32.totalorder %s9400_s24, 0 }
  0x13   : > { %10628 = sst [smem:[#allocation18_spill]] %s10659_s26  ;;  %p9412_p4 = por %p56_p2, %p55_p1 }
  0x14   : > { %s43_s29 = ssub.s32 %s9319_s22, %s10659_s26  ;;  %p191_p6 = scmp.eq.s32.totalorder %s9400_s24, 3 }
  0x15   : > { %p46_p7 = scmp.eq.s32.totalorder %s43_s29, 0  ;;  %p9420_p8 = por %p62_p5, %p61_p3 }
  0x16   : > { %p9424_p9 = por %p191_p6, %p55_p1  ;;  %p197_p10 = scmp.eq.s32.totalorder %s6425_s25, 3 }
  0x17   : > { %s10630_s30 = scalar_select %p9420_p8, 1, 0 }
  0x18   : > { %s10631_s6 = scalar_select %p9424_p9, 1, 0 }
  0x19   : > { %s9429_s7 = scalar_select %p46_p7, %s9311_s20, %s48_s27  }
  0x1a   : > { %p9431_p11 = por %p197_p10, %p61_p3  ;;  %p7873_p12 = scmp.lt.s32.totalorder %s9323_s23, 4 }
  0x1b   : > { %10632 = sst [smem:[#allocation19_spill]] %s9429_s7  ;;  %s9437_s9 = sand.u32 1, %s9311_s20  }
  0x1c   : > { %s10633_s8 = scalar_select %p9431_p11, 1, 0 }
  0x1d   : > { %s10615_s10 = sand.u32 1, %s9323_s23   ;;  %s10613_s11 = smul.u32 3072, %s9437_s9 }
  0x1e   : > { %10634 = sst [smem:[#allocation20_spill]] %s10633_s8  ;;  %p9443_p13 = pnand %p7873_p12, %p9412_p4 }
  0x1f   : > { %s10614_s13 = smul.u32 49152, %s9319_s22  ;;  %s245_s14 = scalar_lea.vmem [#allocation5], %s10613_s11 }
  0x20   : > { %s253_s15 = sshll.u32 %s245_s14, 4  ;;  %s10636_s1 = sld [smem:[#allocation21_spill]]  ;;  %s9457_s15 = int_to_ptr.vmem [resolvable:$true] %s253_s15 }
  0x21   : > { %s9461_s27 = scalar_lea.sflag [#allocation6], %s10615_s10  ;;  %p9467_p1 = pneg %p9443_p13 }
  0x26   : > { %s9455_s25 = scalar_lea.hbm %s10636_s1, %s10614_s13  ;;  %s9088_s17 = scalar_lea.hbm %s10636_s1, 196608 }
  0x27   : > { %s9083_s28 = scalar_lea.hbm %s9455_s25, 49152  ;;  %p9089_p4 = scmp.lt.u32.totalorder %s9455_s25, %s10636_s1 }
  0x28   : > { %p9084_p0 = scmp.ne.s32.totalorder %s9455_s25, %s9083_s28  ;;  %p9090_p5 = scmp.lt.u32.totalorder %s9088_s17, %s9083_s28 }
  0x29   : > { %p9092_p7 = scmp.lt.u32.totalorder %s9083_s28, %s9455_s25 }
  0x2a   : > { %p9086_p2 = pnand %p9467_p1, %p9084_p0  ;;  %p9091_p6 = por %p9090_p5, %p9089_p4 }
  0x2c   : > { %p9087_p3 = pneg %p9086_p2  ;;  %p9093_p10 = por %p9092_p7, %p9091_p6 }
  0x2e   : > { %p9094_p12 = pnand %p9093_p10, %p9087_p3 }
  0x30   : > { %9097 = shalt.err (!%p9094_p12)
}
  0x31   : > { %s9098_s10 = scalar_lea.vmem %s9457_s15, 49152  ;;  %s9325_s14 = smov [#allocation5]  }
  0x32   : > { %p9099_p0 = scmp.ne.s32.totalorder %s9457_s15, %s9098_s10  ;;  %s9103_s16 = sshll.u32 %s9325_s14, 4  ;;  %s9104_s16 = int_to_ptr.vmem [resolvable:$false] %s9103_s16 }
  0x33   : > { %s9105_s11 = scalar_lea.vmem %s9104_s16, 98304  ;;  %p9106_p9 = scmp.lt.s32.totalorder %s9457_s15, %s9104_s16 }
  0x34   : > { %p9101_p2 = pnand %p9099_p0, %p9467_p1  ;;  %p9107_p8 = scmp.lt.s32.totalorder %s9105_s11, %s9098_s10 }
  0x36   : > { %p9102_p11 = pneg %p9101_p2  ;;  %p9108_p4 = por %p9107_p8, %p9106_p9 }
  0x38   : > { %p9109_p5 = pnand %p9108_p4, %p9102_p11 }
  0x3a   : > { %9112 = shalt.err (!%p9109_p5)
}
  0x3b   : > { %s10619_s13 = smov 256   ;;  %s10620_s28 = smov 16  }
  0x3c   : > { %7859 = dma.hbm_to_vmem [thread:$0]  (!%p9443_p13), %s9455_s25, 49152, %s9457_s15, %s9461_s27, %s10619_s13, %s10619_s13, %s10620_s28  }
  0x3d   : > { %p6438_p8 = scmp.ge.s32.totalorder %s9323_s23, 1  ;;  %p327_p9 = scmp.lt.s32.totalorder %s9323_s23, 5 }
  0x3e   : > { %s10639_s17 = smul.u32 49152, %s9319_s22  ;;  %s10640_s3 = sld [smem:[#allocation22_spill]] }
  0x3f   : > { %p9496_p11 = pnand %p6438_p8, %p327_p9  ;;  %s10641_s1 = smul.u32 3072, %s9437_s9 }
  0x40   : > { %s10642_s15 = sand.u32 1, %s9323_s23  }
  0x41   : > { %s10638_s10 = scalar_select %p9496_p11, 1, 0 }
  0x42   : > { %s289_s26 = scalar_lea.vmem [#allocation8], %s10641_s1  ;;  %s9513_s25 = scalar_lea.sflag [#allocation9], %s10642_s15 }
  0x43   : > { %s297_s7 = sshll.u32 %s289_s26, 4  ;;  %s9509_s7 = int_to_ptr.vmem [resolvable:$true] %s297_s7 }
  0x44   : > { %s9505_s11 = scalar_lea.hbm %s10640_s3, %s10639_s17  ;;  %s9118_s16 = scalar_lea.hbm %s10640_s3, 196608 }
  0x45   : > { %s9113_s13 = scalar_lea.hbm %s9505_s11, 49152  ;;  %p9119_p10 = scmp.lt.u32.totalorder %s9505_s11, %s10640_s3 }
  0x46   : > { %p9114_p3 = scmp.ne.s32.totalorder %s9505_s11, %s9113_s13  ;;  %p9120_p12 = scmp.lt.u32.totalorder %s9118_s16, %s9113_s13 }
  0x47   : > { %p9122_p2 = scmp.lt.u32.totalorder %s9113_s13, %s9505_s11 }
  0x48   : > { %p9116_p6 = pnand %p9114_p3, %p9467_p1  ;;  %p9121_p0 = por %p9120_p12, %p9119_p10 }
  0x4a   : > { %p9117_p7 = pneg %p9116_p6  ;;  %p9123_p4 = por %p9122_p2, %p9121_p0 }
  0x4c   : > { %p9124_p5 = pnand %p9123_p4, %p9117_p7 }
  0x4e   : > { %9127 = shalt.err (!%p9124_p5)
}
  0x4f   : > { %s9128_s1 = scalar_lea.vmem %s9509_s7, 49152  ;;  %s9328_s26 = smov [#allocation8]  }
  0x50   : > { %p9129_p8 = scmp.ne.s32.totalorder %s9509_s7, %s9128_s1  ;;  %s9133_s15 = sshll.u32 %s9328_s26, 4  ;;  %s9134_s15 = int_to_ptr.vmem [resolvable:$false] %s9133_s15 }
  0x51   : > { %s9135_s20 = scalar_lea.vmem %s9134_s15, 98304  ;;  %p9136_p6 = scmp.lt.s32.totalorder %s9509_s7, %s9134_s15 }
  0x52   : > { %p9131_p9 = pnand %p9129_p8, %p9467_p1  ;;  %p9137_p11 = scmp.lt.s32.totalorder %s9135_s20, %s9128_s1 }
  0x54   : > { %p9132_p3 = pneg %p9131_p9  ;;  %p9138_p10 = por %p9137_p11, %p9136_p6 }
  0x56   : > { %p9139_p12 = pnand %p9138_p10, %p9132_p3 }
  0x58   : > { %9142 = shalt.err (!%p9139_p12)
}
  0x59   : > { %s10643_s13 = smov 16   ;;  %s10644_s28 = smov 256  }
  0x5a   : > { %7865 = dma.hbm_to_vmem [thread:$0]  (!%p9443_p13), %s9505_s11, 49152, %s9509_s7, %s9513_s25, %s10644_s28, %s10644_s28, %s10643_s13  }
  0x5b   : > { %s7833_s14 = smul.u32 96, %s9437_s9  ;;  %s218_s8 = scalar_lea.sflag [#allocation3], %s9437_s9 }
  0x5c   : > { %s7755_s17 = smul.u32 1536, %s9319_s22  ;;  %s9148_s13 = scalar_lea.hbm %s10607_s0, 6144 }
  0x5d   : > { %s221_s15 = scalar_lea.vmem [#allocation2], %s7833_s14  ;;  %s7835_s3 = smul.u32 12, %s9437_s9 }
  0x5e   : > { %s9545_s26 = scalar_lea.hbm %s10607_s0, %s7755_s17  ;;  %s231_s20 = sshll.u32 %s221_s15, 4  ;;  %s9547_s20 = int_to_ptr.vmem [resolvable:$true] %s231_s20 }
  0x5f   : > { %s9143_s18 = scalar_lea.hbm %s9545_s26, 1536  ;;  %p9149_p2 = scmp.lt.u32.totalorder %s9545_s26, %s10607_s0 }
  0x60   : > { %p9144_p11 = scmp.ne.s32.totalorder %s9545_s26, %s9143_s18  ;;  %p9150_p4 = scmp.lt.u32.totalorder %s9148_s13, %s9143_s18 }
  0x61   : > { %p9152_p8 = scmp.lt.u32.totalorder %s9143_s18, %s9545_s26 }
  0x62   : > { %p9146_p7 = pnand %p9144_p11, %p9467_p1  ;;  %p9151_p5 = por %p9150_p4, %p9149_p2 }
  0x64   : > { %p9147_p0 = pneg %p9146_p7  ;;  %p9153_p9 = por %p9152_p8, %p9151_p5 }
  0x66   : > { %p9154_p3 = pnand %p9153_p9, %p9147_p0 }
  0x68   : > { %9157 = shalt.err (!%p9154_p3)
}
  0x69   : > { %s9158_s14 = scalar_lea.vmem %s9547_s20, 1536  ;;  %s9329_s16 = smov [#allocation2]  }
  0x6a   : > { %p9159_p6 = scmp.ne.s32.totalorder %s9547_s20, %s9158_s14  ;;  %s9163_s1 = sshll.u32 %s9329_s16, 4  ;;  %s9164_s1 = int_to_ptr.vmem [resolvable:$false] %s9163_s1 }
  0x6b   : > { %s9165_s15 = scalar_lea.vmem %s9164_s1, 3072  ;;  %p9166_p11 = scmp.lt.s32.totalorder %s9547_s20, %s9164_s1 }
  0x6c   : > { %p9161_p10 = pnand %p9159_p6, %p9467_p1  ;;  %p9167_p7 = scmp.lt.s32.totalorder %s9165_s15, %s9158_s14 }
  0x6e   : > { %p9162_p12 = pneg %p9161_p10  ;;  %p9168_p2 = por %p9167_p7, %p9166_p11 }
  0x70   : > { %p9169_p4 = pnand %p9168_p2, %p9162_p12 }
  0x72   : > { %9172 = shalt.err (!%p9169_p4)
}
  0x73   : > { %s9330_s18 = smov 512   ;;  %s9331_s7 = smov 32  }
  0x74   : > { %7856 = dma.hbm_to_vmem [thread:$0]  (!%p9443_p13), %s9545_s26, 1536, %s9547_s20, %s218_s8, %s9330_s18, %s9330_s18, %s9331_s7  }
  0x75   : > { %s7757_s11 = smul.u32 192, %s9319_s22  ;;  %s267_s13 = scalar_lea.vmem [#allocation7], %s7835_s3 }
  0x76   : > { %s275_s28 = sshll.u32 %s267_s13, 4  ;;  %s9178_s20 = scalar_lea.hbm %s10609_s2, 768  ;;  %s9584_s28 = int_to_ptr.vmem [resolvable:$true] %s275_s28 }
  0x77   : > { %s9582_s16 = scalar_lea.hbm %s10609_s2, %s7757_s11 }
  0x78   : > { %s9173_s1 = scalar_lea.hbm %s9582_s16, 192  ;;  %p9179_p9 = scmp.lt.u32.totalorder %s9582_s16, %s10609_s2 }
  0x79   : > { %p9174_p0 = scmp.ne.s32.totalorder %s9582_s16, %s9173_s1  ;;  %p9180_p3 = scmp.lt.u32.totalorder %s9178_s20, %s9173_s1 }
  0x7a   : > { %p9182_p10 = scmp.lt.u32.totalorder %s9173_s1, %s9582_s16 }
  0x7b   : > { %p9176_p5 = pnand %p9174_p0, %p9467_p1  ;;  %p9181_p6 = por %p9180_p3, %p9179_p9 }
  0x7d   : > { %p9177_p8 = pneg %p9176_p5  ;;  %p9183_p12 = por %p9182_p10, %p9181_p6 }
  0x7f   : > { %p9184_p11 = pnand %p9183_p12, %p9177_p8 }
  0x81   : > { %9187 = shalt.err (!%p9184_p11)
}
  0x82   : > { %s9188_s7 = scalar_lea.vmem %s9584_s28, 192  ;;  %s9332_s13 = smov [#allocation7]  }
  0x83   : > { %p9189_p7 = scmp.ne.s32.totalorder %s9584_s28, %s9188_s7  ;;  %s9193_s17 = sshll.u32 %s9332_s13, 4  ;;  %s9194_s17 = int_to_ptr.vmem [resolvable:$false] %s9193_s17 }
  0x84   : > { %s9195_s14 = scalar_lea.vmem %s9194_s17, 384  ;;  %p9196_p0 = scmp.lt.s32.totalorder %s9584_s28, %s9194_s17 }
  0x85   : > { %p9191_p2 = pnand %p9189_p7, %p9467_p1  ;;  %p9197_p5 = scmp.lt.s32.totalorder %s9195_s14, %s9188_s7 }
  0x87   : > { %p9192_p4 = pneg %p9191_p2  ;;  %p9198_p9 = por %p9197_p5, %p9196_p0 }
  0x89   : > { %p9199_p3 = pnand %p9198_p9, %p9192_p4 }
  0x8b   : > { %9202 = shalt.err (!%p9199_p3)
}
  0x8c   : > { %s9333_s1 = smov 64   ;;  %s9334_s8 = smov 4  }
  0x8d   : > { %7862 = dma.hbm_to_vmem [thread:$0]  (!%p9443_p13), %s9582_s16, 192, %s9584_s28, %s9461_s27, %s9333_s1, %s9333_s1, %s9334_s8  }
  0x8e   : > { %s9616_s15 = scalar_lea.hbm %s10611_s4, %s7757_s11  ;;  %s311_s18 = scalar_lea.vmem [#allocation10], %s7835_s3 }
  0x8f   : > { %s319_s7 = sshll.u32 %s311_s18, 4  ;;  %s9203_s13 = scalar_lea.hbm %s9616_s15, 192  ;;  %s9620_s7 = int_to_ptr.vmem [resolvable:$true] %s319_s7 }
  0x90   : > { %p9204_p8 = scmp.ne.s32.totalorder %s9616_s15, %s9203_s13  ;;  %s9208_s16 = scalar_lea.hbm %s10611_s4, 768 }
  0x91   : > { %p9209_p12 = scmp.lt.u32.totalorder %s9616_s15, %s10611_s4  ;;  %p9210_p11 = scmp.lt.u32.totalorder %s9208_s16, %s9203_s13 }
  0x92   : > { %p9206_p6 = pnand %p9204_p8, %p9467_p1  ;;  %p9212_p2 = scmp.lt.u32.totalorder %s9203_s13, %s9616_s15 }
  0x93   : > { %p9211_p7 = por %p9210_p11, %p9209_p12 }
  0x94   : > { %p9207_p10 = pneg %p9206_p6 }
  0x95   : > { %p9213_p4 = por %p9212_p2, %p9211_p7 }
  0x97   : > { %p9214_p0 = pnand %p9213_p4, %p9207_p10 }
  0x99   : > { %9217 = shalt.err (!%p9214_p0)
}
  0x9a   : > { %s9218_s3 = scalar_lea.vmem %s9620_s7, 192  ;;  %s9335_s9 = smov [#allocation10]  }
  0x9b   : > { %p9219_p5 = scmp.ne.s32.totalorder %s9620_s7, %s9218_s3  ;;  %s9223_s14 = sshll.u32 %s9335_s9, 4  ;;  %s9224_s14 = int_to_ptr.vmem [resolvable:$false] %s9223_s14 }
  0x9c   : > { %s9225_s26 = scalar_lea.vmem %s9224_s14, 384  ;;  %p9226_p8 = scmp.lt.s32.totalorder %s9620_s7, %s9224_s14 }
  0x9d   : > { %p9221_p9 = pnand %p9219_p5, %p9467_p1  ;;  %p9227_p6 = scmp.lt.s32.totalorder %s9225_s26, %s9218_s3 }
  0x9f   : > { %p9222_p3 = pneg %p9221_p9  ;;  %p9228_p12 = por %p9227_p6, %p9226_p8 }
  0xa1   : > { %p9229_p11 = pnand %p9228_p12, %p9222_p3 }
  0xa3   : > { %9232 = shalt.err (!%p9229_p11)
}
  0xa4   : > { %7868 = dma.hbm_to_vmem [thread:$0]  (!%p9443_p13), %s9616_s15, 192, %s9620_s7, %s9513_s25, %s9333_s1, %s9333_s1, %s9334_s8  }
  0xa5   : > { %p10645_p1 = scmp.ne.s32.totalorder %s10638_s10, 0 }
  0xa6   : > { %s9650_s29 = sand.u32 (!%p10645_p1), 1, %s9307_s19   ;;  %p10646_p10 = scmp.ne.s32.totalorder (!%p10645_p1), %s10630_s30, 0 }
  0xa7   : > { %331 = sbr.rel (%p10645_p1) target bundleno = 1652 (0x674), region = 40  ;;  %s334_s18 = scalar_lea.sflag (!%p10645_p1), [#allocation3], %s9650_s29 }
  0xa8   : > { %s7838_s20 = smul.u32 (!%p10645_p1), 96, %s9650_s29 }
  0xaa   : > { %s9656_s12 = scalar_lea.vmem (!%p10645_p1), [#allocation2], %s7838_s20 }
  0xae   : > { %9286 = dma.done.wait (%p10646_p10), %s334_s18, 1536  }
  0xaf   : > { %9288 = vsyncadd (%p10646_p10), %s334_s18, 4294965760  ;;  %s342_s10 = sand.u32 1, %s9400_s24   ;;  %s7839_s25 = smul.u32 3072, %s9650_s29 }
  0xb0   : > { %s343_s1 = scalar_lea.sflag [#allocation6], %s342_s10 }
  0xb1   : > { %s9664_s8 = scalar_lea.vmem [#allocation5], %s7839_s25 }
  0xb2   : > { %9290 = dma.done.wait (%p10646_p10), %s343_s1, 49344  }
  0xb3   : > { %9292 = vsyncadd (%p10646_p10), %s343_s1, 4294917952  ;;  %s7840_s15 = smul.u32 12, %s9650_s29  ;;  %s361_s13 = scalar_lea.sflag [#allocation9], %s342_s10 }
  0xb4   : > { %s9675_s27 = scalar_lea.vmem [#allocation8], %s7839_s25 }
  0xb5   : > { %s9673_s7 = scalar_lea.vmem [#allocation7], %s7840_s15 }
  0xb6   : > { %9294 = dma.done.wait (%p10646_p10), %s361_s13, 49344  }
  0xb7   : > { %9296 = vsyncadd (%p10646_p10), %s361_s13, 4294917952  ;;  %v7931_v0 = vld [vmem:[%s9664_s8 + $0x4] ss:$16 sps:$4 sm:$0xff]   ;;  %v7933_v1 = vld [vmem:[%s9664_s8 + $0xc] ss:$16 sps:$4 sm:$0xff]   ;;  %s10159_s24 = scalar_lea.vmem [#allocation10], %s7840_s15 }
  0xb8   : > { %1224 = vmatprep.subr.bf16.mxu0 %v7931_v0  ;;  %v7935_v2 = vld [vmem:[%s9664_s8] ss:$16 sps:$4 sm:$0xff]   ;;  %v7936_v3 = vld [vmem:[%s9664_s8 + $0x8] ss:$16 sps:$4 sm:$0xff]   ;;  %1306 = vmatprep.subr.bf16.mxu1 %v7933_v1  ;;  %v7937_v4 = vld [vmem:[%s9664_s8 + $0x24] ss:$16 sps:$4 sm:$0xff]  }
  0xb9   : > { %1225 = vmatpush1.bf16.msra.mxu0 %v7935_v2  ;;  %1307 = vmatpush1.bf16.msra.mxu1 %v7936_v3  ;;  %v7939_v5 = vld [vmem:[%s9664_s8 + $0x2c] ss:$16 sps:$4 sm:$0xff]   ;;  %v7941_v6 = vld [vmem:[%s9664_s8 + $0x20] ss:$16 sps:$4 sm:$0xff]   ;;  %v7942_v7 = vld [vmem:[%s9664_s8 + $0x28] ss:$16 sps:$4 sm:$0xff]  }
  0xba   : > { %1226 = vmatprep.subr.bf16.mxu0 %v7937_v4  ;;  %1308 = vmatprep.subr.bf16.mxu1 %v7939_v5  ;;  %v7943_v8 = vld [vmem:[%s9664_s8 + $0x44] ss:$16 sps:$4 sm:$0xff]   ;;  %v7945_v9 = vld [vmem:[%s9664_s8 + $0x4c] ss:$16 sps:$4 sm:$0xff]   ;;  %v7947_v10 = vld [vmem:[%s9664_s8 + $0x40] ss:$16 sps:$4 sm:$0xff]  }
  0xbb   : > { %v7948_v11 = vld [vmem:[%s9664_s8 + $0x48] ss:$16 sps:$4 sm:$0xff]   ;;  %v7949_v12 = vld [vmem:[%s9664_s8 + $0x64] ss:$16 sps:$4 sm:$0xff]   ;;  %v7951_v13 = vld [vmem:[%s9664_s8 + $0x6c] ss:$16 sps:$4 sm:$0xff]  }
  0xbc   : > { %v7953_v14 = vld [vmem:[%s9664_s8 + $0x60] ss:$16 sps:$4 sm:$0xff]   ;;  %v7954_v15 = vld [vmem:[%s9664_s8 + $0x68] ss:$16 sps:$4 sm:$0xff]   ;;  %v7955_v16 = vld [vmem:[%s9664_s8 + $0x84] ss:$16 sps:$4 sm:$0xff]  }
  0xbd   : > { %1227 = vmatpush1.bf16.msra.mxu0 %v7941_v6  ;;  %1309 = vmatpush1.bf16.msra.mxu1 %v7942_v7  ;;  %v7957_v17 = vld [vmem:[%s9664_s8 + $0x8c] ss:$16 sps:$4 sm:$0xff]   ;;  %v7959_v18 = vld [vmem:[%s9664_s8 + $0x80] ss:$16 sps:$4 sm:$0xff]   ;;  %v7960_v19 = vld [vmem:[%s9664_s8 + $0x88] ss:$16 sps:$4 sm:$0xff]  }
  0xbe   : > { %1228 = vmatprep.subr.bf16.mxu0 %v7943_v8  ;;  %1310 = vmatprep.subr.bf16.mxu1 %v7945_v9  ;;  %v7961_v20 = vld [vmem:[%s9664_s8 + $0xa4] ss:$16 sps:$4 sm:$0xff]   ;;  %v7963_v21 = vld [vmem:[%s9664_s8 + $0xac] ss:$16 sps:$4 sm:$0xff]   ;;  %v7965_v22 = vld [vmem:[%s9664_s8 + $0xa0] ss:$16 sps:$4 sm:$0xff]  }
  0xbf   : > { %v7966_v23 = vld [vmem:[%s9664_s8 + $0xa8] ss:$16 sps:$4 sm:$0xff]   ;;  %v7967_v24 = vld [vmem:[%s9664_s8 + $0xc4] ss:$16 sps:$4 sm:$0xff]   ;;  %v7969_v25 = vld [vmem:[%s9664_s8 + $0xcc] ss:$16 sps:$4 sm:$0xff]  }
  0xc0   : > { %v7971_v26 = vld [vmem:[%s9664_s8 + $0xc0] ss:$16 sps:$4 sm:$0xff]   ;;  %v7972_v27 = vld [vmem:[%s9664_s8 + $0xc8] ss:$16 sps:$4 sm:$0xff]   ;;  %v7973_v28 = vld [vmem:[%s9664_s8 + $0xe4] ss:$16 sps:$4 sm:$0xff]  }
  0xc1   : > { %1229 = vmatpush1.bf16.msra.mxu0 %v7947_v10  ;;  %1311 = vmatpush1.bf16.msra.mxu1 %v7948_v11  ;;  %v7975_v29 = vld [vmem:[%s9664_s8 + $0xec] ss:$16 sps:$4 sm:$0xff]   ;;  %v7977_v30 = vld [vmem:[%s9664_s8 + $0xe0] ss:$16 sps:$4 sm:$0xff]   ;;  %v7978_v31 = vld [vmem:[%s9664_s8 + $0xe8] ss:$16 sps:$4 sm:$0xff]  }
  0xc2   : > { %1230 = vmatprep.subr.bf16.mxu0 %v7949_v12  ;;  %1312 = vmatprep.subr.bf16.mxu1 %v7951_v13  ;;  %v7979_v32 = vld [vmem:[%s9664_s8 + $0x104] ss:$16 sps:$4 sm:$0xff]   ;;  %v7981_v33 = vld [vmem:[%s9664_s8 + $0x10c] ss:$16 sps:$4 sm:$0xff]   ;;  %v7983_v34 = vld [vmem:[%s9664_s8 + $0x100] ss:$16 sps:$4 sm:$0xff]  }
  0xc3   : > { %v7984_v35 = vld [vmem:[%s9664_s8 + $0x108] ss:$16 sps:$4 sm:$0xff]   ;;  %v7985_v36 = vld [vmem:[%s9664_s8 + $0x124] ss:$16 sps:$4 sm:$0xff]   ;;  %v7987_v37 = vld [vmem:[%s9664_s8 + $0x12c] ss:$16 sps:$4 sm:$0xff]  }
  0xc4   : > { %v7989_v38 = vld [vmem:[%s9664_s8 + $0x120] ss:$16 sps:$4 sm:$0xff]   ;;  %v7990_v39 = vld [vmem:[%s9664_s8 + $0x128] ss:$16 sps:$4 sm:$0xff]   ;;  %v7991_v40 = vld [vmem:[%s9664_s8 + $0x144] ss:$16 sps:$4 sm:$0xff]  }
  0xc5   : > { %1231 = vmatpush1.bf16.msra.mxu0 %v7953_v14  ;;  %1313 = vmatpush1.bf16.msra.mxu1 %v7954_v15  ;;  %v7993_v41 = vld [vmem:[%s9664_s8 + $0x14c] ss:$16 sps:$4 sm:$0xff]   ;;  %v7995_v42 = vld [vmem:[%s9664_s8 + $0x140] ss:$16 sps:$4 sm:$0xff]   ;;  %v7996_v43 = vld [vmem:[%s9664_s8 + $0x148] ss:$16 sps:$4 sm:$0xff]  }
  0xc6   : > { %1232 = vmatprep.subr.bf16.mxu0 %v7955_v16  ;;  %1314 = vmatprep.subr.bf16.mxu1 %v7957_v17  ;;  %v7997_v44 = vld [vmem:[%s9664_s8 + $0x164] ss:$16 sps:$4 sm:$0xff]   ;;  %v7999_v45 = vld [vmem:[%s9664_s8 + $0x16c] ss:$16 sps:$4 sm:$0xff]   ;;  %v8001_v47 = vld [vmem:[%s9664_s8 + $0x160] ss:$16 sps:$4 sm:$0xff]  }
  0xc7   : > { %v427_v46 = vld [vmem:[%s9656_s12 + $0x8] sm:$0xff]  ;;  %v8003_v50 = vld [vmem:[%s9664_s8 + $0x184] ss:$16 sps:$4 sm:$0xff]   ;;  %v8007_v52 = vld [vmem:[%s9664_s8 + $0x180] ss:$16 sps:$4 sm:$0xff]   ;;  %s10176_s30 = scalar_lea.vmem [#allocation11], %s7838_s20 }
  0xc8   : > { %v431_v48 = vpack.c.bf16 %v427_v46, %v427_v46  ;;  %v8002_v49 = vld [vmem:[%s9664_s8 + $0x168] ss:$16 sps:$4 sm:$0xff]   ;;  %v8005_v51 = vld [vmem:[%s9664_s8 + $0x18c] ss:$16 sps:$4 sm:$0xff]   ;;  %v8009_v54 = vld [vmem:[%s9664_s8 + $0x1a4] ss:$16 sps:$4 sm:$0xff]  }
  0xc9   : > { %1233 = vmatpush1.bf16.msra.mxu0 %v7959_v18  ;;  %1315 = vmatpush1.bf16.msra.mxu1 %v7960_v19  ;;  %v8008_v53 = vld [vmem:[%s9664_s8 + $0x188] ss:$16 sps:$4 sm:$0xff]   ;;  %v8011_v55 = vld [vmem:[%s9664_s8 + $0x1ac] ss:$16 sps:$4 sm:$0xff]   ;;  %v8013_v56 = vld [vmem:[%s9664_s8 + $0x1a0] ss:$16 sps:$4 sm:$0xff]  }
  0xca   : > { %1234 = vmatprep.subr.bf16.mxu0 %v7961_v20  ;;  %1316 = vmatprep.subr.bf16.mxu1 %v7963_v21  ;;  %v8014_v57 = vld [vmem:[%s9664_s8 + $0x1a8] ss:$16 sps:$4 sm:$0xff]   ;;  %v8015_v58 = vld [vmem:[%s9664_s8 + $0x1c4] ss:$16 sps:$4 sm:$0xff]   ;;  %v8017_v59 = vld [vmem:[%s9664_s8 + $0x1cc] ss:$16 sps:$4 sm:$0xff]  }
  0xcb   : > { %1256 = vmatprep.mubr.bf16.mxu0 %v431_v48  ;;  %1338 = vmatprep.mubr.bf16.mxu1 %v431_v48  ;;  %v8019_v60 = vld [vmem:[%s9664_s8 + $0x1c0] ss:$16 sps:$4 sm:$0xff]   ;;  %v8020_v61 = vld [vmem:[%s9664_s8 + $0x1c8] ss:$16 sps:$4 sm:$0xff]   ;;  %v8021_v62 = vld [vmem:[%s9664_s8 + $0x1e4] ss:$16 sps:$4 sm:$0xff]  }
  0xcc   : > { %v8023_v63 = vld [vmem:[%s9664_s8 + $0x1ec] ss:$16 sps:$4 sm:$0xff]   ;;  %v8025_v0 = vld [vmem:[%s9664_s8 + $0x1e0] ss:$16 sps:$4 sm:$0xff]   ;;  %v8026_v1 = vld [vmem:[%s9664_s8 + $0x1e8] ss:$16 sps:$4 sm:$0xff]  }
  0xcd   : > { %1235 = vmatpush1.bf16.msra.mxu0 %v7965_v22  ;;  %1317 = vmatpush1.bf16.msra.mxu1 %v7966_v23  ;;  %v426_v2 = vld [vmem:[%s9656_s12] sm:$0xff]  ;;  %v8032_v4 = vld [vmem:[%s9664_s8 + $0x20c] ss:$16 sps:$4 sm:$0xff]   ;;  %v8030_v7 = vld [vmem:[%s9664_s8 + $0x208] ss:$16 sps:$4 sm:$0xff]   ;;  %s7760_s28 = smul.u32 1536, %s9315_s21 }
  0xce   : > { %1236 = vmatprep.subr.bf16.mxu0 %v7967_v24  ;;  %1318 = vmatprep.subr.bf16.mxu1 %v7969_v25  ;;  %v8029_v3 = vld [vmem:[%s9664_s8 + $0x204] ss:$16 sps:$4 sm:$0xff]   ;;  %v430_v5 = vpack.c.bf16 %v426_v2, %v426_v2  ;;  %v8027_v6 = vld [vmem:[%s9664_s8 + $0x200] ss:$16 sps:$4 sm:$0xff]   ;;  %v8038_v9 = vld [vmem:[%s9664_s8 + $0x22c] ss:$16 sps:$4 sm:$0xff]  }
  0xcf   : > { %v8035_v8 = vld [vmem:[%s9664_s8 + $0x224] ss:$16 sps:$4 sm:$0xff]   ;;  %v8033_v10 = vld [vmem:[%s9664_s8 + $0x220] ss:$16 sps:$4 sm:$0xff]   ;;  %v8036_v11 = vld [vmem:[%s9664_s8 + $0x228] ss:$16 sps:$4 sm:$0xff]   ;;  %s10553_s17 = scalar_lea.hbm %s10612_s5, %s7760_s28 }
  0xd0   : > { %v8041_v12 = vld [vmem:[%s9664_s8 + $0x244] ss:$16 sps:$4 sm:$0xff]   ;;  %v8044_v13 = vld [vmem:[%s9664_s8 + $0x24c] ss:$16 sps:$4 sm:$0xff]   ;;  %v8039_v14 = vld [vmem:[%s9664_s8 + $0x240] ss:$16 sps:$4 sm:$0xff]  }
  0xd1   : > { %1237 = vmatpush1.bf16.msra.mxu0 %v7971_v26  ;;  %1319 = vmatpush1.bf16.msra.mxu1 %v7972_v27  ;;  %v8042_v15 = vld [vmem:[%s9664_s8 + $0x248] ss:$16 sps:$4 sm:$0xff]   ;;  %v8047_v16 = vld [vmem:[%s9664_s8 + $0x264] ss:$16 sps:$4 sm:$0xff]   ;;  %v8050_v17 = vld [vmem:[%s9664_s8 + $0x26c] ss:$16 sps:$4 sm:$0xff]  }
  0xd2   : > { %1238 = vmatprep.subr.bf16.mxu0 %v7973_v28  ;;  %1320 = vmatprep.subr.bf16.mxu1 %v7975_v29  ;;  %v8045_v18 = vld [vmem:[%s9664_s8 + $0x260] ss:$16 sps:$4 sm:$0xff]   ;;  %v8048_v19 = vld [vmem:[%s9664_s8 + $0x268] ss:$16 sps:$4 sm:$0xff]   ;;  %v8053_v20 = vld [vmem:[%s9664_s8 + $0x284] ss:$16 sps:$4 sm:$0xff]  }
  0xd3   : > { %v8056_v21 = vld [vmem:[%s9664_s8 + $0x28c] ss:$16 sps:$4 sm:$0xff]   ;;  %v8051_v22 = vld [vmem:[%s9664_s8 + $0x280] ss:$16 sps:$4 sm:$0xff]   ;;  %v8054_v23 = vld [vmem:[%s9664_s8 + $0x288] ss:$16 sps:$4 sm:$0xff]  }
  0xd4   : > { %v8059_v24 = vld [vmem:[%s9664_s8 + $0x2a4] ss:$16 sps:$4 sm:$0xff]   ;;  %v8062_v25 = vld [vmem:[%s9664_s8 + $0x2ac] ss:$16 sps:$4 sm:$0xff]   ;;  %v8057_v26 = vld [vmem:[%s9664_s8 + $0x2a0] ss:$16 sps:$4 sm:$0xff]  }
  0xd5   : > { %1239 = vmatpush1.bf16.msra.mxu0 %v7977_v30  ;;  %1321 = vmatpush1.bf16.msra.mxu1 %v7978_v31  ;;  %v8060_v27 = vld [vmem:[%s9664_s8 + $0x2a8] ss:$16 sps:$4 sm:$0xff]   ;;  %v8065_v28 = vld [vmem:[%s9664_s8 + $0x2c4] ss:$16 sps:$4 sm:$0xff]   ;;  %v8068_v29 = vld [vmem:[%s9664_s8 + $0x2cc] ss:$16 sps:$4 sm:$0xff]  }
  0xd6   : > { %1240 = vmatprep.subr.bf16.mxu0 %v7979_v32  ;;  %1322 = vmatprep.subr.bf16.mxu1 %v7981_v33  ;;  %v429_v30 = vld [vmem:[%s9656_s12 + $0x18] sm:$0xff]  ;;  %v8063_v31 = vld [vmem:[%s9664_s8 + $0x2c0] ss:$16 sps:$4 sm:$0xff]   ;;  %v8089_v46 = vld [vmem:[%s9664_s8 + $0x344] ss:$16 sps:$4 sm:$0xff]   ;;  %s6251_s16 = sshll.u32 %s10176_s30, 4  ;;  %s10555_s16 = int_to_ptr.vmem [resolvable:$true] %s6251_s16 }
  0xd7   : > { %v8066_v32 = vld [vmem:[%s9664_s8 + $0x2c8] ss:$16 sps:$4 sm:$0xff]   ;;  %v433_v33 = vpack.c.bf16 %v429_v30, %v429_v30  ;;  %v8087_v48 = vld [vmem:[%s9664_s8 + $0x340] ss:$16 sps:$4 sm:$0xff]   ;;  %v8119_v2 = vld [vmem:[%s9664_s8 + $0x3e4] ss:$16 sps:$4 sm:$0xff]  }
  0xd8   : > { %v8153_v30 = vld [vmem:[%s9675_s27 + $0xa0] ss:$16 sps:$4 sm:$0xff]   ;;  %s6235_s3 = scalar_lea.sflag [#allocation4], %s9650_s29  ;;  %s9233_s9 = scalar_lea.vmem %s10555_s16, 1536 }
  0xd9   : > { %1241 = vmatpush1.bf16.msra.mxu0 %v7983_v34  ;;  %1323 = vmatpush1.bf16.msra.mxu1 %v7984_v35  ;;  %v8071_v34 = vld [vmem:[%s9664_s8 + $0x2e4] ss:$16 sps:$4 sm:$0xff]   ;;  %v8074_v35 = vld [vmem:[%s9664_s8 + $0x2ec] ss:$16 sps:$4 sm:$0xff]   ;;  %p9234_p13 = scmp.ne.s32.totalorder %s10555_s16, %s9233_s9  ;;  %p10647_p7 = scmp.ne.s32.totalorder %s10631_s6, 0 }
  0xda   : > { %1242 = vmatprep.subr.bf16.mxu0 %v7985_v36  ;;  %1324 = vmatprep.subr.bf16.mxu1 %v7987_v37  ;;  %v8069_v36 = vld [vmem:[%s9664_s8 + $0x2e0] ss:$16 sps:$4 sm:$0xff]   ;;  %v8072_v37 = vld [vmem:[%s9664_s8 + $0x2e8] ss:$16 sps:$4 sm:$0xff]   ;;  %s9336_s14 = smov [#allocation11]  }
  0xdb   : > { %p9235_p2 = pnand %p9234_p13, %p10647_p7  ;;  %s9237_s26 = sshll.u32 %s9336_s14, 4  ;;  %s9238_s26 = int_to_ptr.vmem [resolvable:$false] %s9237_s26 }
  0xdc   : > { %s9239_s20 = scalar_lea.vmem %s9238_s26, 3072  ;;  %p9240_p0 = scmp.lt.s32.totalorder %s10555_s16, %s9238_s26 }
  0xdd   : > { %1243 = vmatpush1.bf16.msra.mxu0 %v7989_v38  ;;  %1325 = vmatpush1.bf16.msra.mxu1 %v7990_v39  ;;  %v8077_v38 = vld [vmem:[%s9664_s8 + $0x304] ss:$16 sps:$4 sm:$0xff]   ;;  %v8080_v39 = vld [vmem:[%s9664_s8 + $0x30c] ss:$16 sps:$4 sm:$0xff]   ;;  %p9236_p4 = pneg %p9235_p2  ;;  %p9241_p5 = scmp.lt.s32.totalorder %s9239_s20, %s9233_s9 }
  0xde   : > { %1244 = vmatprep.subr.bf16.mxu0 %v7991_v40  ;;  %1326 = vmatprep.subr.bf16.mxu1 %v7993_v41  ;;  %v8075_v40 = vld [vmem:[%s9664_s8 + $0x300] ss:$16 sps:$4 sm:$0xff]   ;;  %v8078_v41 = vld [vmem:[%s9664_s8 + $0x308] ss:$16 sps:$4 sm:$0xff]  }
  0xdf   : > { %p9242_p9 = por %p9241_p5, %p9240_p0 }
  0xe1   : > { %1245 = vmatpush1.bf16.msra.mxu0 %v7995_v42  ;;  %1327 = vmatpush1.bf16.msra.mxu1 %v7996_v43  ;;  %v8083_v42 = vld [vmem:[%s9664_s8 + $0x324] ss:$16 sps:$4 sm:$0xff]   ;;  %v8086_v43 = vld [vmem:[%s9664_s8 + $0x32c] ss:$16 sps:$4 sm:$0xff]   ;;  %p9243_p3 = pnand %p9242_p9, %p9236_p4 }
  0xe2   : > { %1246 = vmatprep.subr.bf16.mxu0 %v7997_v44  ;;  %1328 = vmatprep.subr.bf16.mxu1 %v7999_v45  ;;  %v8081_v44 = vld [vmem:[%s9664_s8 + $0x320] ss:$16 sps:$4 sm:$0xff]   ;;  %v8084_v45 = vld [vmem:[%s9664_s8 + $0x328] ss:$16 sps:$4 sm:$0xff]  }
  0xe5   : > { %1247 = vmatpush1.bf16.msra.mxu0 %v8001_v47  ;;  %1329 = vmatpush1.bf16.msra.mxu1 %v8002_v49  ;;  %v8092_v47 = vld [vmem:[%s9664_s8 + $0x34c] ss:$16 sps:$4 sm:$0xff]   ;;  %v8090_v49 = vld [vmem:[%s9664_s8 + $0x348] ss:$16 sps:$4 sm:$0xff]  }
  0xe6   : > { %1248 = vmatprep.subr.bf16.mxu0 %v8003_v50  ;;  %1330 = vmatprep.subr.bf16.mxu1 %v8005_v51  ;;  %v8095_v50 = vld [vmem:[%s9664_s8 + $0x364] ss:$16 sps:$4 sm:$0xff]   ;;  %v8098_v51 = vld [vmem:[%s9664_s8 + $0x36c] ss:$16 sps:$4 sm:$0xff]  }
  0xe9   : > { %1249 = vmatpush1.bf16.msra.mxu0 %v8007_v52  ;;  %1331 = vmatpush1.bf16.msra.mxu1 %v8008_v53  ;;  %v8093_v52 = vld [vmem:[%s9664_s8 + $0x360] ss:$16 sps:$4 sm:$0xff]   ;;  %v8096_v53 = vld [vmem:[%s9664_s8 + $0x368] ss:$16 sps:$4 sm:$0xff]  }
  0xea   : > { %1250 = vmatprep.subr.bf16.mxu0 %v8009_v54  ;;  %1332 = vmatprep.subr.bf16.mxu1 %v8011_v55  ;;  %v8101_v54 = vld [vmem:[%s9664_s8 + $0x384] ss:$16 sps:$4 sm:$0xff]   ;;  %v8104_v55 = vld [vmem:[%s9664_s8 + $0x38c] ss:$16 sps:$4 sm:$0xff]  }
  0xed   : > { %1251 = vmatpush1.bf16.msra.mxu0 %v8013_v56  ;;  %1333 = vmatpush1.bf16.msra.mxu1 %v8014_v57  ;;  %v8099_v56 = vld [vmem:[%s9664_s8 + $0x380] ss:$16 sps:$4 sm:$0xff]   ;;  %v8102_v57 = vld [vmem:[%s9664_s8 + $0x388] ss:$16 sps:$4 sm:$0xff]  }
  0xee   : > { %1252 = vmatprep.subr.bf16.mxu0 %v8015_v58  ;;  %1334 = vmatprep.subr.bf16.mxu1 %v8017_v59  ;;  %v8107_v58 = vld [vmem:[%s9664_s8 + $0x3a4] ss:$16 sps:$4 sm:$0xff]   ;;  %v8110_v59 = vld [vmem:[%s9664_s8 + $0x3ac] ss:$16 sps:$4 sm:$0xff]  }
  0xf1   : > { %1253 = vmatpush1.bf16.msra.mxu0 %v8019_v60  ;;  %1335 = vmatpush1.bf16.msra.mxu1 %v8020_v61  ;;  %v8105_v60 = vld [vmem:[%s9664_s8 + $0x3a0] ss:$16 sps:$4 sm:$0xff]   ;;  %v8108_v61 = vld [vmem:[%s9664_s8 + $0x3a8] ss:$16 sps:$4 sm:$0xff]  }
  0xf2   : > { %1254 = vmatprep.subr.bf16.mxu0 %v8021_v62  ;;  %1336 = vmatprep.subr.bf16.mxu1 %v8023_v63  ;;  %v8113_v62 = vld [vmem:[%s9664_s8 + $0x3c4] ss:$16 sps:$4 sm:$0xff]   ;;  %v8116_v63 = vld [vmem:[%s9664_s8 + $0x3cc] ss:$16 sps:$4 sm:$0xff]  }
  0xf5   : > { %1255 = vmatpush1.bf16.msra.mxu0 %v8025_v0  ;;  %1337 = vmatpush1.bf16.msra.mxu1 %v8026_v1  ;;  %v8111_v0 = vld [vmem:[%s9664_s8 + $0x3c0] ss:$16 sps:$4 sm:$0xff]   ;;  %v8114_v1 = vld [vmem:[%s9664_s8 + $0x3c8] ss:$16 sps:$4 sm:$0xff]  }
  0xf6   : > { %1265 = vmatprep.subr.bf16.mxu0 %v8029_v3  ;;  %1347 = vmatprep.subr.bf16.mxu1 %v8032_v4  ;;  %v8122_v3 = vld [vmem:[%s9664_s8 + $0x3ec] ss:$16 sps:$4 sm:$0xff]   ;;  %v8117_v4 = vld [vmem:[%s9664_s8 + $0x3e0] ss:$16 sps:$4 sm:$0xff]  }
  0xf8   : > { %1257 = vmatmul.mubr.bf16.vlgmr.msra.gmra.mrb[0].mxu0 %v430_v5  ;;  %1339 = vmatmul.mubr.bf16.vlgmr.msra.gmra.mrb[0].mxu1 %v430_v5  ;;  %v8120_v5 = vld [vmem:[%s9664_s8 + $0x3e8] ss:$16 sps:$4 sm:$0xff]  }
  0xf9   : > { %1266 = vmatpush1.bf16.msra.mxu0 %v8027_v6  ;;  %1348 = vmatpush1.bf16.msra.mxu1 %v8030_v7  ;;  %v428_v6 = vld [vmem:[%s9656_s12 + $0x10] sm:$0xff]  ;;  %v8125_v7 = vld [vmem:[%s9675_s27 + $0x4] ss:$16 sps:$4 sm:$0xff]  }
  0xfa   : > { %1267 = vmatprep.subr.bf16.mxu0 %v8035_v8  ;;  %1349 = vmatprep.subr.bf16.mxu1 %v8038_v9  ;;  %v8128_v8 = vld [vmem:[%s9675_s27 + $0xc] ss:$16 sps:$4 sm:$0xff]   ;;  %v8123_v9 = vld [vmem:[%s9675_s27] ss:$16 sps:$4 sm:$0xff]  }
  0xfb   : > { %1297 = vmatprep.mubr.bf16.mxu0 %v433_v33  ;;  %1379 = vmatprep.mubr.bf16.mxu1 %v433_v33  ;;  %v8164_v33 = vld [vmem:[%s9675_s27 + $0xcc] ss:$16 sps:$4 sm:$0xff]  }
  0xfd   : > { %1268 = vmatpush1.bf16.msra.mxu0 %v8033_v10  ;;  %1350 = vmatpush1.bf16.msra.mxu1 %v8036_v11  ;;  %v8126_v10 = vld [vmem:[%s9675_s27 + $0x8] ss:$16 sps:$4 sm:$0xff]   ;;  %v432_v11 = vpack.c.bf16 %v428_v6, %v428_v6  ;;  %v8213_v6 = vld [vmem:[%s9675_s27 + $0x1e0] ss:$16 sps:$4 sm:$0xff]  }
  0xfe   : > { %1269 = vmatprep.subr.bf16.mxu0 %v8041_v12  ;;  %1351 = vmatprep.subr.bf16.mxu1 %v8044_v13  ;;  %v8131_v12 = vld [vmem:[%s9675_s27 + $0x24] ss:$16 sps:$4 sm:$0xff]   ;;  %v8134_v13 = vld [vmem:[%s9675_s27 + $0x2c] ss:$16 sps:$4 sm:$0xff]  }
 0x101   : > { %1270 = vmatpush1.bf16.msra.mxu0 %v8039_v14  ;;  %1352 = vmatpush1.bf16.msra.mxu1 %v8042_v15  ;;  %v8129_v14 = vld [vmem:[%s9675_s27 + $0x20] ss:$16 sps:$4 sm:$0xff]   ;;  %v8132_v15 = vld [vmem:[%s9675_s27 + $0x28] ss:$16 sps:$4 sm:$0xff]  }
 0x102   : > { %1271 = vmatprep.subr.bf16.mxu0 %v8047_v16  ;;  %1353 = vmatprep.subr.bf16.mxu1 %v8050_v17  ;;  %v8137_v16 = vld [vmem:[%s9675_s27 + $0x44] ss:$16 sps:$4 sm:$0xff]   ;;  %v8140_v17 = vld [vmem:[%s9675_s27 + $0x4c] ss:$16 sps:$4 sm:$0xff]  }
 0x105   : > { %1272 = vmatpush1.bf16.msra.mxu0 %v8045_v18  ;;  %1354 = vmatpush1.bf16.msra.mxu1 %v8048_v19  ;;  %v8135_v18 = vld [vmem:[%s9675_s27 + $0x40] ss:$16 sps:$4 sm:$0xff]   ;;  %v8138_v19 = vld [vmem:[%s9675_s27 + $0x48] ss:$16 sps:$4 sm:$0xff]  }
 0x106   : > { %1273 = vmatprep.subr.bf16.mxu0 %v8053_v20  ;;  %1355 = vmatprep.subr.bf16.mxu1 %v8056_v21  ;;  %v8143_v20 = vld [vmem:[%s9675_s27 + $0x64] ss:$16 sps:$4 sm:$0xff]   ;;  %v8146_v21 = vld [vmem:[%s9675_s27 + $0x6c] ss:$16 sps:$4 sm:$0xff]  }
 0x109   : > { %1274 = vmatpush1.bf16.msra.mxu0 %v8051_v22  ;;  %1356 = vmatpush1.bf16.msra.mxu1 %v8054_v23  ;;  %v8141_v22 = vld [vmem:[%s9675_s27 + $0x60] ss:$16 sps:$4 sm:$0xff]   ;;  %v8144_v23 = vld [vmem:[%s9675_s27 + $0x68] ss:$16 sps:$4 sm:$0xff]  }
 0x10a   : > { %1275 = vmatprep.subr.bf16.mxu0 %v8059_v24  ;;  %1357 = vmatprep.subr.bf16.mxu1 %v8062_v25  ;;  %v8149_v24 = vld [vmem:[%s9675_s27 + $0x84] ss:$16 sps:$4 sm:$0xff]   ;;  %v8152_v25 = vld [vmem:[%s9675_s27 + $0x8c] ss:$16 sps:$4 sm:$0xff]  }
 0x10d   : > { %1276 = vmatpush1.bf16.msra.mxu0 %v8057_v26  ;;  %1358 = vmatpush1.bf16.msra.mxu1 %v8060_v27  ;;  %v8147_v26 = vld [vmem:[%s9675_s27 + $0x80] ss:$16 sps:$4 sm:$0xff]   ;;  %v8150_v27 = vld [vmem:[%s9675_s27 + $0x88] ss:$16 sps:$4 sm:$0xff]  }
 0x10e   : > { %1277 = vmatprep.subr.bf16.mxu0 %v8065_v28  ;;  %1359 = vmatprep.subr.bf16.mxu1 %v8068_v29  ;;  %v8155_v28 = vld [vmem:[%s9675_s27 + $0xa4] ss:$16 sps:$4 sm:$0xff]   ;;  %v8158_v29 = vld [vmem:[%s9675_s27 + $0xac] ss:$16 sps:$4 sm:$0xff]  }
 0x111   : > { %1278 = vmatpush1.bf16.msra.mxu0 %v8063_v31  ;;  %1360 = vmatpush1.bf16.msra.mxu1 %v8066_v32  ;;  %v8156_v31 = vld [vmem:[%s9675_s27 + $0xa8] ss:$16 sps:$4 sm:$0xff]   ;;  %v8161_v32 = vld [vmem:[%s9675_s27 + $0xc4] ss:$16 sps:$4 sm:$0xff]  }
 0x112   : > { %1279 = vmatprep.subr.bf16.mxu0 %v8071_v34  ;;  %1361 = vmatprep.subr.bf16.mxu1 %v8074_v35  ;;  %v8159_v34 = vld [vmem:[%s9675_s27 + $0xc0] ss:$16 sps:$4 sm:$0xff]   ;;  %v8162_v35 = vld [vmem:[%s9675_s27 + $0xc8] ss:$16 sps:$4 sm:$0xff]  }
 0x115   : > { %1280 = vmatpush1.bf16.msra.mxu0 %v8069_v36  ;;  %1362 = vmatpush1.bf16.msra.mxu1 %v8072_v37  ;;  %v8167_v36 = vld [vmem:[%s9675_s27 + $0xe4] ss:$16 sps:$4 sm:$0xff]   ;;  %v8170_v37 = vld [vmem:[%s9675_s27 + $0xec] ss:$16 sps:$4 sm:$0xff]  }
 0x116   : > { %1281 = vmatprep.subr.bf16.mxu0 %v8077_v38  ;;  %1363 = vmatprep.subr.bf16.mxu1 %v8080_v39  ;;  %v8165_v38 = vld [vmem:[%s9675_s27 + $0xe0] ss:$16 sps:$4 sm:$0xff]   ;;  %v8168_v39 = vld [vmem:[%s9675_s27 + $0xe8] ss:$16 sps:$4 sm:$0xff]  }
 0x119   : > { %1282 = vmatpush1.bf16.msra.mxu0 %v8075_v40  ;;  %1364 = vmatpush1.bf16.msra.mxu1 %v8078_v41  ;;  %v8173_v40 = vld [vmem:[%s9675_s27 + $0x104] ss:$16 sps:$4 sm:$0xff]   ;;  %v8176_v41 = vld [vmem:[%s9675_s27 + $0x10c] ss:$16 sps:$4 sm:$0xff]  }
 0x11a   : > { %1283 = vmatprep.subr.bf16.mxu0 %v8083_v42  ;;  %1365 = vmatprep.subr.bf16.mxu1 %v8086_v43  ;;  %v8171_v42 = vld [vmem:[%s9675_s27 + $0x100] ss:$16 sps:$4 sm:$0xff]   ;;  %v8174_v43 = vld [vmem:[%s9675_s27 + $0x108] ss:$16 sps:$4 sm:$0xff]  }
 0x11d   : > { %1284 = vmatpush1.bf16.msra.mxu0 %v8081_v44  ;;  %1366 = vmatpush1.bf16.msra.mxu1 %v8084_v45  ;;  %v8179_v44 = vld [vmem:[%s9675_s27 + $0x124] ss:$16 sps:$4 sm:$0xff]   ;;  %v8182_v45 = vld [vmem:[%s9675_s27 + $0x12c] ss:$16 sps:$4 sm:$0xff]  }
 0x11e   : > { %1285 = vmatprep.subr.bf16.mxu0 %v8089_v46  ;;  %1367 = vmatprep.subr.bf16.mxu1 %v8092_v47  ;;  %v8177_v46 = vld [vmem:[%s9675_s27 + $0x120] ss:$16 sps:$4 sm:$0xff]   ;;  %v8180_v47 = vld [vmem:[%s9675_s27 + $0x128] ss:$16 sps:$4 sm:$0xff]  }
 0x121   : > { %1286 = vmatpush1.bf16.msra.mxu0 %v8087_v48  ;;  %1368 = vmatpush1.bf16.msra.mxu1 %v8090_v49  ;;  %v8185_v48 = vld [vmem:[%s9675_s27 + $0x144] ss:$16 sps:$4 sm:$0xff]   ;;  %v8188_v49 = vld [vmem:[%s9675_s27 + $0x14c] ss:$16 sps:$4 sm:$0xff]  }
 0x122   : > { %1287 = vmatprep.subr.bf16.mxu0 %v8095_v50  ;;  %1369 = vmatprep.subr.bf16.mxu1 %v8098_v51  ;;  %v8183_v50 = vld [vmem:[%s9675_s27 + $0x140] ss:$16 sps:$4 sm:$0xff]   ;;  %v8186_v51 = vld [vmem:[%s9675_s27 + $0x148] ss:$16 sps:$4 sm:$0xff]  }
 0x125   : > { %1288 = vmatpush1.bf16.msra.mxu0 %v8093_v52  ;;  %1370 = vmatpush1.bf16.msra.mxu1 %v8096_v53  ;;  %v8191_v52 = vld [vmem:[%s9675_s27 + $0x164] ss:$16 sps:$4 sm:$0xff]   ;;  %v8194_v53 = vld [vmem:[%s9675_s27 + $0x16c] ss:$16 sps:$4 sm:$0xff]  }
 0x126   : > { %1289 = vmatprep.subr.bf16.mxu0 %v8101_v54  ;;  %1371 = vmatprep.subr.bf16.mxu1 %v8104_v55  ;;  %v8189_v54 = vld [vmem:[%s9675_s27 + $0x160] ss:$16 sps:$4 sm:$0xff]   ;;  %v8192_v55 = vld [vmem:[%s9675_s27 + $0x168] ss:$16 sps:$4 sm:$0xff]  }
 0x129   : > { %1290 = vmatpush1.bf16.msra.mxu0 %v8099_v56  ;;  %1372 = vmatpush1.bf16.msra.mxu1 %v8102_v57  ;;  %v8197_v56 = vld [vmem:[%s9675_s27 + $0x184] ss:$16 sps:$4 sm:$0xff]   ;;  %v8200_v57 = vld [vmem:[%s9675_s27 + $0x18c] ss:$16 sps:$4 sm:$0xff]  }
 0x12a   : > { %1291 = vmatprep.subr.bf16.mxu0 %v8107_v58  ;;  %1373 = vmatprep.subr.bf16.mxu1 %v8110_v59  ;;  %v8195_v58 = vld [vmem:[%s9675_s27 + $0x180] ss:$16 sps:$4 sm:$0xff]   ;;  %v8198_v59 = vld [vmem:[%s9675_s27 + $0x188] ss:$16 sps:$4 sm:$0xff]  }
 0x12d   : > { %1292 = vmatpush1.bf16.msra.mxu0 %v8105_v60  ;;  %1374 = vmatpush1.bf16.msra.mxu1 %v8108_v61  ;;  %v8203_v60 = vld [vmem:[%s9675_s27 + $0x1a4] ss:$16 sps:$4 sm:$0xff]   ;;  %v8206_v61 = vld [vmem:[%s9675_s27 + $0x1ac] ss:$16 sps:$4 sm:$0xff]  }
 0x12e   : > { %1293 = vmatprep.subr.bf16.mxu0 %v8113_v62  ;;  %1375 = vmatprep.subr.bf16.mxu1 %v8116_v63  ;;  %v8201_v62 = vld [vmem:[%s9675_s27 + $0x1a0] ss:$16 sps:$4 sm:$0xff]   ;;  %v8204_v63 = vld [vmem:[%s9675_s27 + $0x1a8] ss:$16 sps:$4 sm:$0xff]  }
 0x131   : > { %1294 = vmatpush1.bf16.msra.mxu0 %v8111_v0  ;;  %1376 = vmatpush1.bf16.msra.mxu1 %v8114_v1  ;;  %v8209_v0 = vld [vmem:[%s9675_s27 + $0x1c4] ss:$16 sps:$4 sm:$0xff]   ;;  %v8212_v1 = vld [vmem:[%s9675_s27 + $0x1cc] ss:$16 sps:$4 sm:$0xff]  }
 0x132   : > { %1295 = vmatprep.subr.bf16.mxu0 %v8119_v2  ;;  %1377 = vmatprep.subr.bf16.mxu1 %v8122_v3  ;;  %v8207_v2 = vld [vmem:[%s9675_s27 + $0x1c0] ss:$16 sps:$4 sm:$0xff]   ;;  %v8210_v3 = vld [vmem:[%s9675_s27 + $0x1c8] ss:$16 sps:$4 sm:$0xff]  }
 0x135   : > { %1296 = vmatpush1.bf16.msra.mxu0 %v8117_v4  ;;  %1378 = vmatpush1.bf16.msra.mxu1 %v8120_v5  ;;  %v8215_v4 = vld [vmem:[%s9675_s27 + $0x1e4] ss:$16 sps:$4 sm:$0xff]   ;;  %v8218_v5 = vld [vmem:[%s9675_s27 + $0x1ec] ss:$16 sps:$4 sm:$0xff]  }
 0x136   : > { %2186 = vmatprep.subr.bf16.mxu0 %v8125_v7  ;;  %2268 = vmatprep.subr.bf16.mxu1 %v8128_v8  ;;  %v8216_v7 = vld [vmem:[%s9675_s27 + $0x1e8] ss:$16 sps:$4 sm:$0xff]   ;;  %v8221_v8 = vld [vmem:[%s9675_s27 + $0x204] ss:$16 sps:$4 sm:$0xff]  }
 0x138   : > { %1298 = vmatmul.mubr.bf16.vlgmr.msra.gmra.mrb[0].mxu0 %v432_v11  ;;  %1380 = vmatmul.mubr.bf16.vlgmr.msra.gmra.mrb[0].mxu1 %v432_v11 }
 0x139   : > { %2187 = vmatpush1.bf16.msra.mxu0 %v8123_v9  ;;  %2269 = vmatpush1.bf16.msra.mxu1 %v8126_v10  ;;  %v8224_v9 = vld [vmem:[%s9675_s27 + $0x20c] ss:$16 sps:$4 sm:$0xff]   ;;  %v564_v10 = vlaneseq }
 0x13a   : > { %2188 = vmatprep.subr.bf16.mxu0 %v8131_v12  ;;  %2270 = vmatprep.subr.bf16.mxu1 %v8134_v13  ;;  %v9885_v13 = vld [vmem:[%s9673_s7] sm:$0xf] }
 0x13b   : > { %v9879_v11 = vshrl.u32 %v564_v10, 7  ;;  %v8281_v10 = vld [vmem:[%s9675_s27 + $0x344] ss:$16 sps:$4 sm:$0xff]  }
 0x13d   : > { %2189 = vmatpush1.bf16.msra.mxu0 %v8129_v14  ;;  %2271 = vmatpush1.bf16.msra.mxu1 %v8132_v15  ;;  %v9882_v12 = vsub.s32 0, %v9879_v11  ;;  %v9888_v14 = vsub.s32 1, %v9879_v11  ;;  %v9891_v15 = vsub.s32 3, %v9879_v11 }
 0x13e   : > { %2190 = vmatprep.subr.bf16.mxu0 %v8137_v16  ;;  %2272 = vmatprep.subr.bf16.mxu1 %v8140_v17 }
 0x13f   : > { %v567_v16 = vrot.slane %v9885_v13, %v9882_v12  ;;  %v571_v17 = vrot.slane %v9885_v13, %v9888_v14 }
 0x141   : > { %2191 = vmatpush1.bf16.msra.mxu0 %v8135_v18  ;;  %2273 = vmatpush1.bf16.msra.mxu1 %v8138_v19  ;;  %v579_v18 = vrot.slane %v9885_v13, %v9891_v15 }
 0x142   : > { %2192 = vmatprep.subr.bf16.mxu0 %v8143_v20  ;;  %2274 = vmatprep.subr.bf16.mxu1 %v8146_v21 }
 0x145   : > { %2193 = vmatpush1.bf16.msra.mxu0 %v8141_v22  ;;  %2275 = vmatpush1.bf16.msra.mxu1 %v8144_v23 }
 0x146   : > { %2194 = vmatprep.subr.bf16.mxu0 %v8149_v24  ;;  %2276 = vmatprep.subr.bf16.mxu1 %v8152_v25 }
 0x149   : > { %2195 = vmatpush1.bf16.msra.mxu0 %v8147_v26  ;;  %2277 = vmatpush1.bf16.msra.mxu1 %v8150_v27 }
 0x14a   : > { %2196 = vmatprep.subr.bf16.mxu0 %v8155_v28  ;;  %2278 = vmatprep.subr.bf16.mxu1 %v8158_v29 }
 0x14d   : > { %2197 = vmatpush1.bf16.msra.mxu0 %v8153_v30  ;;  %2279 = vmatpush1.bf16.msra.mxu1 %v8156_v31 }
 0x14e   : > { %2198 = vmatprep.subr.bf16.mxu0 %v8161_v32  ;;  %2280 = vmatprep.subr.bf16.mxu1 %v8164_v33 }
 0x151   : > { %2199 = vmatpush1.bf16.msra.mxu0 %v8159_v34  ;;  %2281 = vmatpush1.bf16.msra.mxu1 %v8162_v35  ;;  %v8219_v34 = vld [vmem:[%s9675_s27 + $0x200] ss:$16 sps:$4 sm:$0xff]   ;;  %v8222_v35 = vld [vmem:[%s9675_s27 + $0x208] ss:$16 sps:$4 sm:$0xff]  }
 0x152   : > { %2200 = vmatprep.subr.bf16.mxu0 %v8167_v36  ;;  %2282 = vmatprep.subr.bf16.mxu1 %v8170_v37  ;;  %v8227_v37 = vld [vmem:[%s9675_s27 + $0x224] ss:$16 sps:$4 sm:$0xff]  }
 0x155   : > { %2201 = vmatpush1.bf16.msra.mxu0 %v8165_v38  ;;  %2283 = vmatpush1.bf16.msra.mxu1 %v8168_v39  ;;  %v8230_v38 = vld [vmem:[%s9675_s27 + $0x22c] ss:$16 sps:$4 sm:$0xff]  }
 0x156   : > { %2202 = vmatprep.subr.bf16.mxu0 %v8173_v40  ;;  %2284 = vmatprep.subr.bf16.mxu1 %v8176_v41  ;;  %v8225_v40 = vld [vmem:[%s9675_s27 + $0x220] ss:$16 sps:$4 sm:$0xff]   ;;  %v8228_v41 = vld [vmem:[%s9675_s27 + $0x228] ss:$16 sps:$4 sm:$0xff]  }
 0x159   : > { %2203 = vmatpush1.bf16.msra.mxu0 %v8171_v42  ;;  %2285 = vmatpush1.bf16.msra.mxu1 %v8174_v43  ;;  %v8233_v42 = vld [vmem:[%s9675_s27 + $0x244] ss:$16 sps:$4 sm:$0xff]   ;;  %v8236_v43 = vld [vmem:[%s9675_s27 + $0x24c] ss:$16 sps:$4 sm:$0xff]  }
 0x15a   : > { %2204 = vmatprep.subr.bf16.mxu0 %v8179_v44  ;;  %2286 = vmatprep.subr.bf16.mxu1 %v8182_v45  ;;  %v8231_v44 = vld [vmem:[%s9675_s27 + $0x240] ss:$16 sps:$4 sm:$0xff]   ;;  %v8234_v45 = vld [vmem:[%s9675_s27 + $0x248] ss:$16 sps:$4 sm:$0xff]  }
 0x15d   : > { %2205 = vmatpush1.bf16.msra.mxu0 %v8177_v46  ;;  %2287 = vmatpush1.bf16.msra.mxu1 %v8180_v47  ;;  %v8239_v46 = vld [vmem:[%s9675_s27 + $0x264] ss:$16 sps:$4 sm:$0xff]   ;;  %v8242_v47 = vld [vmem:[%s9675_s27 + $0x26c] ss:$16 sps:$4 sm:$0xff]  }
 0x15e   : > { %2206 = vmatprep.subr.bf16.mxu0 %v8185_v48  ;;  %2288 = vmatprep.subr.bf16.mxu1 %v8188_v49  ;;  %v8237_v48 = vld [vmem:[%s9675_s27 + $0x260] ss:$16 sps:$4 sm:$0xff]   ;;  %v8240_v49 = vld [vmem:[%s9675_s27 + $0x268] ss:$16 sps:$4 sm:$0xff]  }
 0x161   : > { %2207 = vmatpush1.bf16.msra.mxu0 %v8183_v50  ;;  %2289 = vmatpush1.bf16.msra.mxu1 %v8186_v51  ;;  %v8245_v50 = vld [vmem:[%s9675_s27 + $0x284] ss:$16 sps:$4 sm:$0xff]   ;;  %v8248_v51 = vld [vmem:[%s9675_s27 + $0x28c] ss:$16 sps:$4 sm:$0xff]  }
 0x162   : > { %2208 = vmatprep.subr.bf16.mxu0 %v8191_v52  ;;  %2290 = vmatprep.subr.bf16.mxu1 %v8194_v53  ;;  %v8243_v52 = vld [vmem:[%s9675_s27 + $0x280] ss:$16 sps:$4 sm:$0xff]   ;;  %v8246_v53 = vld [vmem:[%s9675_s27 + $0x288] ss:$16 sps:$4 sm:$0xff]  }
 0x165   : > { %2209 = vmatpush1.bf16.msra.mxu0 %v8189_v54  ;;  %2291 = vmatpush1.bf16.msra.mxu1 %v8192_v55  ;;  %v8251_v54 = vld [vmem:[%s9675_s27 + $0x2a4] ss:$16 sps:$4 sm:$0xff]   ;;  %v8254_v55 = vld [vmem:[%s9675_s27 + $0x2ac] ss:$16 sps:$4 sm:$0xff]  }
 0x166   : > { %2210 = vmatprep.subr.bf16.mxu0 %v8197_v56  ;;  %2292 = vmatprep.subr.bf16.mxu1 %v8200_v57  ;;  %v8249_v56 = vld [vmem:[%s9675_s27 + $0x2a0] ss:$16 sps:$4 sm:$0xff]   ;;  %v8252_v57 = vld [vmem:[%s9675_s27 + $0x2a8] ss:$16 sps:$4 sm:$0xff]  }
 0x169   : > { %2211 = vmatpush1.bf16.msra.mxu0 %v8195_v58  ;;  %2293 = vmatpush1.bf16.msra.mxu1 %v8198_v59  ;;  %v8257_v58 = vld [vmem:[%s9675_s27 + $0x2c4] ss:$16 sps:$4 sm:$0xff]   ;;  %v8260_v59 = vld [vmem:[%s9675_s27 + $0x2cc] ss:$16 sps:$4 sm:$0xff]  }
 0x16a   : > { %2212 = vmatprep.subr.bf16.mxu0 %v8203_v60  ;;  %2294 = vmatprep.subr.bf16.mxu1 %v8206_v61  ;;  %v8255_v60 = vld [vmem:[%s9675_s27 + $0x2c0] ss:$16 sps:$4 sm:$0xff]   ;;  %v8258_v61 = vld [vmem:[%s9675_s27 + $0x2c8] ss:$16 sps:$4 sm:$0xff]  }
 0x16d   : > { %2213 = vmatpush1.bf16.msra.mxu0 %v8201_v62  ;;  %2295 = vmatpush1.bf16.msra.mxu1 %v8204_v63  ;;  %v8263_v62 = vld [vmem:[%s9675_s27 + $0x2e4] ss:$16 sps:$4 sm:$0xff]   ;;  %v8266_v63 = vld [vmem:[%s9675_s27 + $0x2ec] ss:$16 sps:$4 sm:$0xff]  }
 0x16e   : > { %2214 = vmatprep.subr.bf16.mxu0 %v8209_v0  ;;  %2296 = vmatprep.subr.bf16.mxu1 %v8212_v1  ;;  %v8261_v0 = vld [vmem:[%s9675_s27 + $0x2e0] ss:$16 sps:$4 sm:$0xff]   ;;  %v8264_v1 = vld [vmem:[%s9675_s27 + $0x2e8] ss:$16 sps:$4 sm:$0xff]  }
 0x171   : > { %2215 = vmatpush1.bf16.msra.mxu0 %v8207_v2  ;;  %2297 = vmatpush1.bf16.msra.mxu1 %v8210_v3  ;;  %v8269_v2 = vld [vmem:[%s9675_s27 + $0x304] ss:$16 sps:$4 sm:$0xff]   ;;  %v8272_v3 = vld [vmem:[%s9675_s27 + $0x30c] ss:$16 sps:$4 sm:$0xff]  }
 0x172   : > { %2216 = vmatprep.subr.bf16.mxu0 %v8215_v4  ;;  %2298 = vmatprep.subr.bf16.mxu1 %v8218_v5  ;;  %v8267_v4 = vld [vmem:[%s9675_s27 + $0x300] ss:$16 sps:$4 sm:$0xff]   ;;  %v8270_v5 = vld [vmem:[%s9675_s27 + $0x308] ss:$16 sps:$4 sm:$0xff]  }
 0x175   : > { %2217 = vmatpush1.bf16.msra.mxu0 %v8213_v6  ;;  %2299 = vmatpush1.bf16.msra.mxu1 %v8216_v7  ;;  %v8275_v6 = vld [vmem:[%s9675_s27 + $0x324] ss:$16 sps:$4 sm:$0xff]   ;;  %v8278_v7 = vld [vmem:[%s9675_s27 + $0x32c] ss:$16 sps:$4 sm:$0xff]  }
 0x176   : > { %2227 = vmatprep.subr.bf16.mxu0 %v8221_v8  ;;  %2309 = vmatprep.subr.bf16.mxu1 %v8224_v9  ;;  %v8273_v8 = vld [vmem:[%s9675_s27 + $0x320] ss:$16 sps:$4 sm:$0xff]   ;;  %v8276_v9 = vld [vmem:[%s9675_s27 + $0x328] ss:$16 sps:$4 sm:$0xff]  }
 0x20b   : > { %v1299_v19 = vpop.f32.mrb[0].mxu0  ;;  %v9899_v20 = vpop.f32.mrb[0].mxu1 }
 0x20c   : > { %v7761_v21 = vadd.f32 %v1299_v19, %v567_v16  ;;  %v1301_v22 = vpop.f32.mrb[1].mxu0  ;;  %v1383_v23 = vpop.f32.mrb[1].mxu1  ;;  %v8284_v16 = vld [vmem:[%s9675_s27 + $0x34c] ss:$16 sps:$4 sm:$0xff]   ;;  %v8287_v19 = vld [vmem:[%s9675_s27 + $0x364] ss:$16 sps:$4 sm:$0xff]  }
 0x20d   : > { %v7762_v24 = vadd.f32 %v1301_v22, %v571_v17  ;;  %v7764_v25 = vadd.f32 %v1383_v23, %v579_v18  ;;  %v1303_v26 = vpop.f32.mrb[2].mxu0  ;;  %v1385_v27 = vpop.f32.mrb[2].mxu1  ;;  %v8279_v17 = vld [vmem:[%s9675_s27 + $0x340] ss:$16 sps:$4 sm:$0xff]   ;;  %v8282_v18 = vld [vmem:[%s9675_s27 + $0x348] ss:$16 sps:$4 sm:$0xff]  }
 0x20e   : > { %v1388_v28 = vmax.f32 %v7761_v21, 0.0  ;;  %v1304_v29 = vpop.f32.mrb[3].mxu0  ;;  %v1386_v30 = vpop.f32.mrb[3].mxu1  ;;  %v8290_v21 = vld [vmem:[%s9675_s27 + $0x36c] ss:$16 sps:$4 sm:$0xff]  }
 0x20f   : > { %v1389_v31 = vmax.f32 %v7762_v24, 0.0  ;;  %v1391_v32 = vmax.f32 %v7764_v25, 0.0  ;;  %v8285_v22 = vld [vmem:[%s9675_s27 + $0x360] ss:$16 sps:$4 sm:$0xff]   ;;  %v8288_v23 = vld [vmem:[%s9675_s27 + $0x368] ss:$16 sps:$4 sm:$0xff]  }
 0x210   : > { %v1392_v36 = vpack.c.bf16 %v1388_v28, %v1388_v28  ;;  %v8293_v24 = vld [vmem:[%s9675_s27 + $0x384] ss:$16 sps:$4 sm:$0xff]   ;;  %v8296_v25 = vld [vmem:[%s9675_s27 + $0x38c] ss:$16 sps:$4 sm:$0xff]   ;;  %v8291_v26 = vld [vmem:[%s9675_s27 + $0x380] ss:$16 sps:$4 sm:$0xff]  }
 0x211   : > { %v1393_v33 = vpack.c.bf16 %v1389_v31, %v1389_v31  ;;  %v1395_v39 = vpack.c.bf16 %v1391_v32, %v1391_v32  ;;  %v8294_v27 = vld [vmem:[%s9675_s27 + $0x388] ss:$16 sps:$4 sm:$0xff]   ;;  %v9952_v28 = vsub.s32 2, %v9879_v11  ;;  %v8299_v29 = vld [vmem:[%s9675_s27 + $0x3a4] ss:$16 sps:$4 sm:$0xff]  }
 0x212   : > { %v8302_v30 = vld [vmem:[%s9675_s27 + $0x3ac] ss:$16 sps:$4 sm:$0xff]   ;;  %v8297_v31 = vld [vmem:[%s9675_s27 + $0x3a0] ss:$16 sps:$4 sm:$0xff]   ;;  %v8300_v32 = vld [vmem:[%s9675_s27 + $0x3a8] ss:$16 sps:$4 sm:$0xff]  }
 0x213   : > { %2218 = vmatprep.mubr.bf16.mxu0 %v1393_v33  ;;  %2300 = vmatprep.mubr.bf16.mxu1 %v1393_v33  ;;  %v575_v33 = vrot.slane %v9885_v13, %v9952_v28  ;;  %v8305_v11 = vld [vmem:[%s9675_s27 + $0x3c4] ss:$16 sps:$4 sm:$0xff]  }
 0x214   : > { %2219 = vmatmul.mubr.bf16.vlgmr.msra.gmra.mrb[4].mxu0 %v1392_v36  ;;  %2301 = vmatmul.mubr.bf16.vlgmr.msra.gmra.mrb[4].mxu1 %v1392_v36  ;;  %v8306_v36 = vld [vmem:[%s9675_s27 + $0x3c8] ss:$16 sps:$4 sm:$0xff]   ;;  %v8311_v13 = vld [vmem:[%s9675_s27 + $0x3e4] ss:$16 sps:$4 sm:$0xff]  }
 0x215   : > { %2228 = vmatpush1.bf16.msra.mxu0 %v8219_v34  ;;  %2310 = vmatpush1.bf16.msra.mxu1 %v8222_v35  ;;  %v8308_v34 = vld [vmem:[%s9675_s27 + $0x3cc] ss:$16 sps:$4 sm:$0xff]   ;;  %v8303_v35 = vld [vmem:[%s9675_s27 + $0x3c0] ss:$16 sps:$4 sm:$0xff]  }
 0x216   : > { %2259 = vmatprep.mubr.bf16.mxu0 %v1395_v39  ;;  %2341 = vmatprep.mubr.bf16.mxu1 %v1395_v39  ;;  %v8309_v39 = vld [vmem:[%s9675_s27 + $0x3e0] ss:$16 sps:$4 sm:$0xff]  }
 0x217   : > { %2229 = vmatprep.subr.bf16.mxu0 %v8227_v37  ;;  %2311 = vmatprep.subr.bf16.mxu1 %v8230_v38  ;;  %v7763_v37 = vadd.f32 %v9899_v20, %v575_v33  ;;  %v8314_v38 = vld [vmem:[%s9675_s27 + $0x3ec] ss:$16 sps:$4 sm:$0xff]   ;;  %v8315_v20 = vld [vmem:[%s9664_s8 + $0x400] ss:$16 sps:$4 sm:$0xff]  }
 0x218   : > { %v8381_v33 = vld [vmem:[%s9664_s8 + $0x560] ss:$16 sps:$4 sm:$0xff]  }
 0x219   : > { %2230 = vmatpush1.bf16.msra.mxu0 %v8225_v40  ;;  %2312 = vmatpush1.bf16.msra.mxu1 %v8228_v41  ;;  %v8312_v40 = vld [vmem:[%s9675_s27 + $0x3e8] ss:$16 sps:$4 sm:$0xff]   ;;  %v1390_v41 = vmax.f32 %v7763_v37, 0.0  ;;  %v8390_v37 = vld [vmem:[%s9664_s8 + $0x588] ss:$16 sps:$4 sm:$0xff]  }
 0x21a   : > { %2231 = vmatprep.subr.bf16.mxu0 %v8233_v42  ;;  %2313 = vmatprep.subr.bf16.mxu1 %v8236_v43  ;;  %v8317_v42 = vld [vmem:[%s9664_s8 + $0x404] ss:$16 sps:$4 sm:$0xff]   ;;  %v8320_v43 = vld [vmem:[%s9664_s8 + $0x40c] ss:$16 sps:$4 sm:$0xff]  }
 0x21d   : > { %2232 = vmatpush1.bf16.msra.mxu0 %v8231_v44  ;;  %2314 = vmatpush1.bf16.msra.mxu1 %v8234_v45  ;;  %v6696_v44 = vld [vmem:[%s9656_s12 + $0x28] sm:$0xff] }
 0x21e   : > { %2233 = vmatprep.subr.bf16.mxu0 %v8239_v46  ;;  %2315 = vmatprep.subr.bf16.mxu1 %v8242_v47  ;;  %v8318_v45 = vld [vmem:[%s9664_s8 + $0x408] ss:$16 sps:$4 sm:$0xff]   ;;  %v1394_v46 = vpack.c.bf16 %v1390_v41, %v1390_v41  ;;  %v8323_v47 = vld [vmem:[%s9664_s8 + $0x424] ss:$16 sps:$4 sm:$0xff]  }
 0x21f   : > { %v8401_v41 = vld [vmem:[%s9664_s8 + $0x5c4] ss:$16 sps:$4 sm:$0xff]  }
 0x221   : > { %2234 = vmatpush1.bf16.msra.mxu0 %v8237_v48  ;;  %2316 = vmatpush1.bf16.msra.mxu1 %v8240_v49  ;;  %v8326_v48 = vld [vmem:[%s9664_s8 + $0x42c] ss:$16 sps:$4 sm:$0xff]   ;;  %v2364_v49 = vpack.c.bf16 %v6696_v44, %v6696_v44  ;;  %v8402_v44 = vld [vmem:[%s9664_s8 + $0x5c8] ss:$16 sps:$4 sm:$0xff]  }
 0x222   : > { %2235 = vmatprep.subr.bf16.mxu0 %v8245_v50  ;;  %2317 = vmatprep.subr.bf16.mxu1 %v8248_v51  ;;  %v8321_v50 = vld [vmem:[%s9664_s8 + $0x420] ss:$16 sps:$4 sm:$0xff]   ;;  %v8324_v51 = vld [vmem:[%s9664_s8 + $0x428] ss:$16 sps:$4 sm:$0xff]  }
 0x225   : > { %2236 = vmatpush1.bf16.msra.mxu0 %v8243_v52  ;;  %2318 = vmatpush1.bf16.msra.mxu1 %v8246_v53  ;;  %v8329_v52 = vld [vmem:[%s9664_s8 + $0x444] ss:$16 sps:$4 sm:$0xff]   ;;  %v8332_v53 = vld [vmem:[%s9664_s8 + $0x44c] ss:$16 sps:$4 sm:$0xff]  }
 0x226   : > { %2237 = vmatprep.subr.bf16.mxu0 %v8251_v54  ;;  %2319 = vmatprep.subr.bf16.mxu1 %v8254_v55  ;;  %v8327_v54 = vld [vmem:[%s9664_s8 + $0x440] ss:$16 sps:$4 sm:$0xff]   ;;  %v8330_v55 = vld [vmem:[%s9664_s8 + $0x448] ss:$16 sps:$4 sm:$0xff]  }
 0x229   : > { %2238 = vmatpush1.bf16.msra.mxu0 %v8249_v56  ;;  %2320 = vmatpush1.bf16.msra.mxu1 %v8252_v57  ;;  %v8335_v56 = vld [vmem:[%s9664_s8 + $0x464] ss:$16 sps:$4 sm:$0xff]   ;;  %v8338_v57 = vld [vmem:[%s9664_s8 + $0x46c] ss:$16 sps:$4 sm:$0xff]  }
 0x22a   : > { %2239 = vmatprep.subr.bf16.mxu0 %v8257_v58  ;;  %2321 = vmatprep.subr.bf16.mxu1 %v8260_v59  ;;  %v8333_v58 = vld [vmem:[%s9664_s8 + $0x460] ss:$16 sps:$4 sm:$0xff]   ;;  %v8336_v59 = vld [vmem:[%s9664_s8 + $0x468] ss:$16 sps:$4 sm:$0xff]  }
 0x22d   : > { %2240 = vmatpush1.bf16.msra.mxu0 %v8255_v60  ;;  %2322 = vmatpush1.bf16.msra.mxu1 %v8258_v61  ;;  %v8341_v60 = vld [vmem:[%s9664_s8 + $0x484] ss:$16 sps:$4 sm:$0xff]   ;;  %v8344_v61 = vld [vmem:[%s9664_s8 + $0x48c] ss:$16 sps:$4 sm:$0xff]  }
 0x22e   : > { %2241 = vmatprep.subr.bf16.mxu0 %v8263_v62  ;;  %2323 = vmatprep.subr.bf16.mxu1 %v8266_v63  ;;  %v8339_v62 = vld [vmem:[%s9664_s8 + $0x480] ss:$16 sps:$4 sm:$0xff]   ;;  %v8342_v63 = vld [vmem:[%s9664_s8 + $0x488] ss:$16 sps:$4 sm:$0xff]  }
 0x231   : > { %2242 = vmatpush1.bf16.msra.mxu0 %v8261_v0  ;;  %2324 = vmatpush1.bf16.msra.mxu1 %v8264_v1  ;;  %v8347_v0 = vld [vmem:[%s9664_s8 + $0x4a4] ss:$16 sps:$4 sm:$0xff]   ;;  %v8350_v1 = vld [vmem:[%s9664_s8 + $0x4ac] ss:$16 sps:$4 sm:$0xff]  }
 0x232   : > { %2243 = vmatprep.subr.bf16.mxu0 %v8269_v2  ;;  %2325 = vmatprep.subr.bf16.mxu1 %v8272_v3  ;;  %v8345_v2 = vld [vmem:[%s9664_s8 + $0x4a0] ss:$16 sps:$4 sm:$0xff]   ;;  %v8348_v3 = vld [vmem:[%s9664_s8 + $0x4a8] ss:$16 sps:$4 sm:$0xff]  }
 0x235   : > { %2244 = vmatpush1.bf16.msra.mxu0 %v8267_v4  ;;  %2326 = vmatpush1.bf16.msra.mxu1 %v8270_v5  ;;  %v8353_v4 = vld [vmem:[%s9664_s8 + $0x4c4] ss:$16 sps:$4 sm:$0xff]   ;;  %v8356_v5 = vld [vmem:[%s9664_s8 + $0x4cc] ss:$16 sps:$4 sm:$0xff]  }
 0x236   : > { %2245 = vmatprep.subr.bf16.mxu0 %v8275_v6  ;;  %2327 = vmatprep.subr.bf16.mxu1 %v8278_v7  ;;  %v8351_v6 = vld [vmem:[%s9664_s8 + $0x4c0] ss:$16 sps:$4 sm:$0xff]   ;;  %v8354_v7 = vld [vmem:[%s9664_s8 + $0x4c8] ss:$16 sps:$4 sm:$0xff]  }
 0x239   : > { %2246 = vmatpush1.bf16.msra.mxu0 %v8273_v8  ;;  %2328 = vmatpush1.bf16.msra.mxu1 %v8276_v9  ;;  %v8359_v8 = vld [vmem:[%s9664_s8 + $0x4e4] ss:$16 sps:$4 sm:$0xff]   ;;  %v8362_v9 = vld [vmem:[%s9664_s8 + $0x4ec] ss:$16 sps:$4 sm:$0xff]  }
 0x23a   : > { %2247 = vmatprep.subr.bf16.mxu0 %v8281_v10  ;;  %2329 = vmatprep.subr.bf16.mxu1 %v8284_v16  ;;  %v8357_v10 = vld [vmem:[%s9664_s8 + $0x4e0] ss:$16 sps:$4 sm:$0xff]   ;;  %v8360_v16 = vld [vmem:[%s9664_s8 + $0x4e8] ss:$16 sps:$4 sm:$0xff]  }
 0x23d   : > { %2248 = vmatpush1.bf16.msra.mxu0 %v8279_v17  ;;  %2330 = vmatpush1.bf16.msra.mxu1 %v8282_v18  ;;  %v8365_v17 = vld [vmem:[%s9664_s8 + $0x504] ss:$16 sps:$4 sm:$0xff]   ;;  %v8368_v18 = vld [vmem:[%s9664_s8 + $0x50c] ss:$16 sps:$4 sm:$0xff]  }
 0x23e   : > { %2249 = vmatprep.subr.bf16.mxu0 %v8287_v19  ;;  %2331 = vmatprep.subr.bf16.mxu1 %v8290_v21  ;;  %v8363_v19 = vld [vmem:[%s9664_s8 + $0x500] ss:$16 sps:$4 sm:$0xff]   ;;  %v8366_v21 = vld [vmem:[%s9664_s8 + $0x508] ss:$16 sps:$4 sm:$0xff]  }
 0x241   : > { %2250 = vmatpush1.bf16.msra.mxu0 %v8285_v22  ;;  %2332 = vmatpush1.bf16.msra.mxu1 %v8288_v23  ;;  %v8371_v22 = vld [vmem:[%s9664_s8 + $0x524] ss:$16 sps:$4 sm:$0xff]   ;;  %v8374_v23 = vld [vmem:[%s9664_s8 + $0x52c] ss:$16 sps:$4 sm:$0xff]  }
 0x242   : > { %2251 = vmatprep.subr.bf16.mxu0 %v8293_v24  ;;  %2333 = vmatprep.subr.bf16.mxu1 %v8296_v25  ;;  %v8369_v24 = vld [vmem:[%s9664_s8 + $0x520] ss:$16 sps:$4 sm:$0xff]   ;;  %v8372_v25 = vld [vmem:[%s9664_s8 + $0x528] ss:$16 sps:$4 sm:$0xff]  }
 0x245   : > { %2252 = vmatpush1.bf16.msra.mxu0 %v8291_v26  ;;  %2334 = vmatpush1.bf16.msra.mxu1 %v8294_v27  ;;  %v8377_v26 = vld [vmem:[%s9664_s8 + $0x544] ss:$16 sps:$4 sm:$0xff]   ;;  %v8380_v27 = vld [vmem:[%s9664_s8 + $0x54c] ss:$16 sps:$4 sm:$0xff]  }
 0x246   : > { %2253 = vmatprep.subr.bf16.mxu0 %v8299_v29  ;;  %2335 = vmatprep.subr.bf16.mxu1 %v8302_v30  ;;  %v8375_v29 = vld [vmem:[%s9664_s8 + $0x540] ss:$16 sps:$4 sm:$0xff]   ;;  %v8378_v30 = vld [vmem:[%s9664_s8 + $0x548] ss:$16 sps:$4 sm:$0xff]  }
 0x249   : > { %2254 = vmatpush1.bf16.msra.mxu0 %v8297_v31  ;;  %2336 = vmatpush1.bf16.msra.mxu1 %v8300_v32  ;;  %v8383_v31 = vld [vmem:[%s9664_s8 + $0x564] ss:$16 sps:$4 sm:$0xff]   ;;  %v8386_v32 = vld [vmem:[%s9664_s8 + $0x56c] ss:$16 sps:$4 sm:$0xff]  }
 0x24a   : > { %2255 = vmatprep.subr.bf16.mxu0 %v8305_v11  ;;  %2337 = vmatprep.subr.bf16.mxu1 %v8308_v34  ;;  %v8384_v11 = vld [vmem:[%s9664_s8 + $0x568] ss:$16 sps:$4 sm:$0xff]   ;;  %v8389_v34 = vld [vmem:[%s9664_s8 + $0x584] ss:$16 sps:$4 sm:$0xff]  }
 0x24d   : > { %2256 = vmatpush1.bf16.msra.mxu0 %v8303_v35  ;;  %2338 = vmatpush1.bf16.msra.mxu1 %v8306_v36  ;;  %v8392_v35 = vld [vmem:[%s9664_s8 + $0x58c] ss:$16 sps:$4 sm:$0xff]   ;;  %v8387_v36 = vld [vmem:[%s9664_s8 + $0x580] ss:$16 sps:$4 sm:$0xff]  }
 0x24e   : > { %2257 = vmatprep.subr.bf16.mxu0 %v8311_v13  ;;  %2339 = vmatprep.subr.bf16.mxu1 %v8314_v38  ;;  %v8395_v13 = vld [vmem:[%s9664_s8 + $0x5a4] ss:$16 sps:$4 sm:$0xff]   ;;  %v8398_v38 = vld [vmem:[%s9664_s8 + $0x5ac] ss:$16 sps:$4 sm:$0xff]  }
 0x251   : > { %2258 = vmatpush1.bf16.msra.mxu0 %v8309_v39  ;;  %2340 = vmatpush1.bf16.msra.mxu1 %v8312_v40  ;;  %v8393_v39 = vld [vmem:[%s9664_s8 + $0x5a0] ss:$16 sps:$4 sm:$0xff]   ;;  %v8396_v40 = vld [vmem:[%s9664_s8 + $0x5a8] ss:$16 sps:$4 sm:$0xff]  }
 0x252   : > { %3159 = vmatprep.subr.bf16.mxu0 %v8317_v42  ;;  %3241 = vmatprep.subr.bf16.mxu1 %v8320_v43  ;;  %v8404_v42 = vld [vmem:[%s9664_s8 + $0x5cc] ss:$16 sps:$4 sm:$0xff]   ;;  %v8399_v43 = vld [vmem:[%s9664_s8 + $0x5c0] ss:$16 sps:$4 sm:$0xff]  }
 0x254   : > { %2260 = vmatmul.mubr.bf16.vlgmr.msra.gmra.mrb[4].mxu0 %v1394_v46  ;;  %2342 = vmatmul.mubr.bf16.vlgmr.msra.gmra.mrb[4].mxu1 %v1394_v46  ;;  %v8405_v46 = vld [vmem:[%s9664_s8 + $0x5e0] ss:$16 sps:$4 sm:$0xff]  }
 0x255   : > { %3160 = vmatpush1.bf16.msra.mxu0 %v8315_v20  ;;  %3242 = vmatpush1.bf16.msra.mxu1 %v8318_v45  ;;  %v8407_v20 = vld [vmem:[%s9664_s8 + $0x5e4] ss:$16 sps:$4 sm:$0xff]   ;;  %v8410_v45 = vld [vmem:[%s9664_s8 + $0x5ec] ss:$16 sps:$4 sm:$0xff]  }
 0x256   : > { %3161 = vmatprep.subr.bf16.mxu0 %v8323_v47  ;;  %3243 = vmatprep.subr.bf16.mxu1 %v8326_v48  ;;  %v8408_v47 = vld [vmem:[%s9664_s8 + $0x5e8] ss:$16 sps:$4 sm:$0xff]   ;;  %v6695_v48 = vld [vmem:[%s9656_s12 + $0x20] sm:$0xff] }
 0x257   : > { %3191 = vmatprep.mubr.bf16.mxu0 %v2364_v49  ;;  %3273 = vmatprep.mubr.bf16.mxu1 %v2364_v49  ;;  %v8413_v49 = vld [vmem:[%s9664_s8 + $0x604] ss:$16 sps:$4 sm:$0xff]  }
 0x259   : > { %3162 = vmatpush1.bf16.msra.mxu0 %v8321_v50  ;;  %3244 = vmatpush1.bf16.msra.mxu1 %v8324_v51  ;;  %v8416_v50 = vld [vmem:[%s9664_s8 + $0x60c] ss:$16 sps:$4 sm:$0xff]   ;;  %v2363_v51 = vpack.c.bf16 %v6695_v48, %v6695_v48  ;;  %v8497_v48 = vld [vmem:[%s9664_s8 + $0x7c4] ss:$16 sps:$4 sm:$0xff]  }
 0x25a   : > { %3163 = vmatprep.subr.bf16.mxu0 %v8329_v52  ;;  %3245 = vmatprep.subr.bf16.mxu1 %v8332_v53  ;;  %v6698_v52 = vld [vmem:[%s9656_s12 + $0x38] sm:$0xff]  ;;  %v8411_v53 = vld [vmem:[%s9664_s8 + $0x600] ss:$16 sps:$4 sm:$0xff]  }
 0x25d   : > { %3164 = vmatpush1.bf16.msra.mxu0 %v8327_v54  ;;  %3246 = vmatpush1.bf16.msra.mxu1 %v8330_v55  ;;  %v8414_v54 = vld [vmem:[%s9664_s8 + $0x608] ss:$16 sps:$4 sm:$0xff]   ;;  %v8419_v55 = vld [vmem:[%s9664_s8 + $0x624] ss:$16 sps:$4 sm:$0xff]  }
 0x25e   : > { %3165 = vmatprep.subr.bf16.mxu0 %v8335_v56  ;;  %3247 = vmatprep.subr.bf16.mxu1 %v8338_v57  ;;  %v8422_v56 = vld [vmem:[%s9664_s8 + $0x62c] ss:$16 sps:$4 sm:$0xff]   ;;  %v2366_v57 = vpack.c.bf16 %v6698_v52, %v6698_v52  ;;  %v8503_v52 = vld [vmem:[%s9664_s8 + $0x7e4] ss:$16 sps:$4 sm:$0xff]  }
 0x261   : > { %3166 = vmatpush1.bf16.msra.mxu0 %v8333_v58  ;;  %3248 = vmatpush1.bf16.msra.mxu1 %v8336_v59  ;;  %v8417_v58 = vld [vmem:[%s9664_s8 + $0x620] ss:$16 sps:$4 sm:$0xff]   ;;  %v8420_v59 = vld [vmem:[%s9664_s8 + $0x628] ss:$16 sps:$4 sm:$0xff]  }
 0x262   : > { %3167 = vmatprep.subr.bf16.mxu0 %v8341_v60  ;;  %3249 = vmatprep.subr.bf16.mxu1 %v8344_v61  ;;  %v8425_v60 = vld [vmem:[%s9664_s8 + $0x644] ss:$16 sps:$4 sm:$0xff]   ;;  %v8428_v61 = vld [vmem:[%s9664_s8 + $0x64c] ss:$16 sps:$4 sm:$0xff]  }
 0x265   : > { %3168 = vmatpush1.bf16.msra.mxu0 %v8339_v62  ;;  %3250 = vmatpush1.bf16.msra.mxu1 %v8342_v63  ;;  %v8423_v62 = vld [vmem:[%s9664_s8 + $0x640] ss:$16 sps:$4 sm:$0xff]   ;;  %v8426_v63 = vld [vmem:[%s9664_s8 + $0x648] ss:$16 sps:$4 sm:$0xff]  }
 0x266   : > { %3169 = vmatprep.subr.bf16.mxu0 %v8347_v0  ;;  %3251 = vmatprep.subr.bf16.mxu1 %v8350_v1  ;;  %v8431_v0 = vld [vmem:[%s9664_s8 + $0x664] ss:$16 sps:$4 sm:$0xff]   ;;  %v8434_v1 = vld [vmem:[%s9664_s8 + $0x66c] ss:$16 sps:$4 sm:$0xff]  }
 0x269   : > { %3170 = vmatpush1.bf16.msra.mxu0 %v8345_v2  ;;  %3252 = vmatpush1.bf16.msra.mxu1 %v8348_v3  ;;  %v8429_v2 = vld [vmem:[%s9664_s8 + $0x660] ss:$16 sps:$4 sm:$0xff]   ;;  %v8432_v3 = vld [vmem:[%s9664_s8 + $0x668] ss:$16 sps:$4 sm:$0xff]  }
 0x26a   : > { %3171 = vmatprep.subr.bf16.mxu0 %v8353_v4  ;;  %3253 = vmatprep.subr.bf16.mxu1 %v8356_v5  ;;  %v8437_v4 = vld [vmem:[%s9664_s8 + $0x684] ss:$16 sps:$4 sm:$0xff]   ;;  %v8440_v5 = vld [vmem:[%s9664_s8 + $0x68c] ss:$16 sps:$4 sm:$0xff]  }
 0x26d   : > { %3172 = vmatpush1.bf16.msra.mxu0 %v8351_v6  ;;  %3254 = vmatpush1.bf16.msra.mxu1 %v8354_v7  ;;  %v8435_v6 = vld [vmem:[%s9664_s8 + $0x680] ss:$16 sps:$4 sm:$0xff]   ;;  %v8438_v7 = vld [vmem:[%s9664_s8 + $0x688] ss:$16 sps:$4 sm:$0xff]  }
 0x26e   : > { %3173 = vmatprep.subr.bf16.mxu0 %v8359_v8  ;;  %3255 = vmatprep.subr.bf16.mxu1 %v8362_v9  ;;  %v8443_v8 = vld [vmem:[%s9664_s8 + $0x6a4] ss:$16 sps:$4 sm:$0xff]   ;;  %v8446_v9 = vld [vmem:[%s9664_s8 + $0x6ac] ss:$16 sps:$4 sm:$0xff]  }
 0x271   : > { %3174 = vmatpush1.bf16.msra.mxu0 %v8357_v10  ;;  %3256 = vmatpush1.bf16.msra.mxu1 %v8360_v16  ;;  %v8441_v10 = vld [vmem:[%s9664_s8 + $0x6a0] ss:$16 sps:$4 sm:$0xff]   ;;  %v8444_v16 = vld [vmem:[%s9664_s8 + $0x6a8] ss:$16 sps:$4 sm:$0xff]  }
 0x272   : > { %3175 = vmatprep.subr.bf16.mxu0 %v8365_v17  ;;  %3257 = vmatprep.subr.bf16.mxu1 %v8368_v18  ;;  %v8449_v17 = vld [vmem:[%s9664_s8 + $0x6c4] ss:$16 sps:$4 sm:$0xff]   ;;  %v8452_v18 = vld [vmem:[%s9664_s8 + $0x6cc] ss:$16 sps:$4 sm:$0xff]  }
 0x275   : > { %3176 = vmatpush1.bf16.msra.mxu0 %v8363_v19  ;;  %3258 = vmatpush1.bf16.msra.mxu1 %v8366_v21  ;;  %v8447_v19 = vld [vmem:[%s9664_s8 + $0x6c0] ss:$16 sps:$4 sm:$0xff]   ;;  %v8450_v21 = vld [vmem:[%s9664_s8 + $0x6c8] ss:$16 sps:$4 sm:$0xff]  }
 0x276   : > { %3177 = vmatprep.subr.bf16.mxu0 %v8371_v22  ;;  %3259 = vmatprep.subr.bf16.mxu1 %v8374_v23  ;;  %v8455_v22 = vld [vmem:[%s9664_s8 + $0x6e4] ss:$16 sps:$4 sm:$0xff]   ;;  %v8458_v23 = vld [vmem:[%s9664_s8 + $0x6ec] ss:$16 sps:$4 sm:$0xff]  }
 0x279   : > { %3178 = vmatpush1.bf16.msra.mxu0 %v8369_v24  ;;  %3260 = vmatpush1.bf16.msra.mxu1 %v8372_v25  ;;  %v8453_v24 = vld [vmem:[%s9664_s8 + $0x6e0] ss:$16 sps:$4 sm:$0xff]   ;;  %v8456_v25 = vld [vmem:[%s9664_s8 + $0x6e8] ss:$16 sps:$4 sm:$0xff]  }
 0x27a   : > { %3179 = vmatprep.subr.bf16.mxu0 %v8377_v26  ;;  %3261 = vmatprep.subr.bf16.mxu1 %v8380_v27  ;;  %v8461_v26 = vld [vmem:[%s9664_s8 + $0x704] ss:$16 sps:$4 sm:$0xff]   ;;  %v8464_v27 = vld [vmem:[%s9664_s8 + $0x70c] ss:$16 sps:$4 sm:$0xff]  }
 0x27d   : > { %3180 = vmatpush1.bf16.msra.mxu0 %v8375_v29  ;;  %3262 = vmatpush1.bf16.msra.mxu1 %v8378_v30  ;;  %v8459_v29 = vld [vmem:[%s9664_s8 + $0x700] ss:$16 sps:$4 sm:$0xff]   ;;  %v8462_v30 = vld [vmem:[%s9664_s8 + $0x708] ss:$16 sps:$4 sm:$0xff]  }
 0x27e   : > { %3181 = vmatprep.subr.bf16.mxu0 %v8383_v31  ;;  %3263 = vmatprep.subr.bf16.mxu1 %v8386_v32  ;;  %v8467_v31 = vld [vmem:[%s9664_s8 + $0x724] ss:$16 sps:$4 sm:$0xff]   ;;  %v8470_v32 = vld [vmem:[%s9664_s8 + $0x72c] ss:$16 sps:$4 sm:$0xff]  }
 0x281   : > { %3182 = vmatpush1.bf16.msra.mxu0 %v8381_v33  ;;  %3264 = vmatpush1.bf16.msra.mxu1 %v8384_v11  ;;  %v8465_v33 = vld [vmem:[%s9664_s8 + $0x720] ss:$16 sps:$4 sm:$0xff]   ;;  %v8468_v11 = vld [vmem:[%s9664_s8 + $0x728] ss:$16 sps:$4 sm:$0xff]  }
 0x282   : > { %3183 = vmatprep.subr.bf16.mxu0 %v8389_v34  ;;  %3265 = vmatprep.subr.bf16.mxu1 %v8392_v35  ;;  %v8473_v34 = vld [vmem:[%s9664_s8 + $0x744] ss:$16 sps:$4 sm:$0xff]   ;;  %v8476_v35 = vld [vmem:[%s9664_s8 + $0x74c] ss:$16 sps:$4 sm:$0xff]  }
 0x285   : > { %3184 = vmatpush1.bf16.msra.mxu0 %v8387_v36  ;;  %3266 = vmatpush1.bf16.msra.mxu1 %v8390_v37  ;;  %v8471_v36 = vld [vmem:[%s9664_s8 + $0x740] ss:$16 sps:$4 sm:$0xff]   ;;  %v8474_v37 = vld [vmem:[%s9664_s8 + $0x748] ss:$16 sps:$4 sm:$0xff]  }
 0x286   : > { %3185 = vmatprep.subr.bf16.mxu0 %v8395_v13  ;;  %3267 = vmatprep.subr.bf16.mxu1 %v8398_v38  ;;  %v8479_v13 = vld [vmem:[%s9664_s8 + $0x764] ss:$16 sps:$4 sm:$0xff]   ;;  %v8482_v38 = vld [vmem:[%s9664_s8 + $0x76c] ss:$16 sps:$4 sm:$0xff]  }
 0x289   : > { %3186 = vmatpush1.bf16.msra.mxu0 %v8393_v39  ;;  %3268 = vmatpush1.bf16.msra.mxu1 %v8396_v40  ;;  %v8477_v39 = vld [vmem:[%s9664_s8 + $0x760] ss:$16 sps:$4 sm:$0xff]   ;;  %v8480_v40 = vld [vmem:[%s9664_s8 + $0x768] ss:$16 sps:$4 sm:$0xff]  }
 0x28a   : > { %3187 = vmatprep.subr.bf16.mxu0 %v8401_v41  ;;  %3269 = vmatprep.subr.bf16.mxu1 %v8404_v42  ;;  %v8485_v41 = vld [vmem:[%s9664_s8 + $0x784] ss:$16 sps:$4 sm:$0xff]   ;;  %v8488_v42 = vld [vmem:[%s9664_s8 + $0x78c] ss:$16 sps:$4 sm:$0xff]  }
 0x28d   : > { %3188 = vmatpush1.bf16.msra.mxu0 %v8399_v43  ;;  %3270 = vmatpush1.bf16.msra.mxu1 %v8402_v44  ;;  %v8483_v43 = vld [vmem:[%s9664_s8 + $0x780] ss:$16 sps:$4 sm:$0xff]   ;;  %v8486_v44 = vld [vmem:[%s9664_s8 + $0x788] ss:$16 sps:$4 sm:$0xff]  }
 0x28e   : > { %3189 = vmatprep.subr.bf16.mxu0 %v8407_v20  ;;  %3271 = vmatprep.subr.bf16.mxu1 %v8410_v45  ;;  %v8491_v20 = vld [vmem:[%s9664_s8 + $0x7a4] ss:$16 sps:$4 sm:$0xff]   ;;  %v8494_v45 = vld [vmem:[%s9664_s8 + $0x7ac] ss:$16 sps:$4 sm:$0xff]  }
 0x291   : > { %3190 = vmatpush1.bf16.msra.mxu0 %v8405_v46  ;;  %3272 = vmatpush1.bf16.msra.mxu1 %v8408_v47  ;;  %v8489_v46 = vld [vmem:[%s9664_s8 + $0x7a0] ss:$16 sps:$4 sm:$0xff]   ;;  %v8492_v47 = vld [vmem:[%s9664_s8 + $0x7a8] ss:$16 sps:$4 sm:$0xff]  }
 0x292   : > { %3200 = vmatprep.subr.bf16.mxu0 %v8413_v49  ;;  %3282 = vmatprep.subr.bf16.mxu1 %v8416_v50  ;;  %v8500_v49 = vld [vmem:[%s9664_s8 + $0x7cc] ss:$16 sps:$4 sm:$0xff]   ;;  %v8495_v50 = vld [vmem:[%s9664_s8 + $0x7c0] ss:$16 sps:$4 sm:$0xff]  }
 0x294   : > { %3192 = vmatmul.mubr.bf16.vlgmr.msra.gmra.mrb[8].mxu0 %v2363_v51  ;;  %3274 = vmatmul.mubr.bf16.vlgmr.msra.gmra.mrb[8].mxu1 %v2363_v51  ;;  %v8498_v51 = vld [vmem:[%s9664_s8 + $0x7c8] ss:$16 sps:$4 sm:$0xff]  }
 0x295   : > { %3201 = vmatpush1.bf16.msra.mxu0 %v8411_v53  ;;  %3283 = vmatpush1.bf16.msra.mxu1 %v8414_v54  ;;  %v8506_v53 = vld [vmem:[%s9664_s8 + $0x7ec] ss:$16 sps:$4 sm:$0xff]   ;;  %v8501_v54 = vld [vmem:[%s9664_s8 + $0x7e0] ss:$16 sps:$4 sm:$0xff]  }
 0x296   : > { %3202 = vmatprep.subr.bf16.mxu0 %v8419_v55  ;;  %3284 = vmatprep.subr.bf16.mxu1 %v8422_v56  ;;  %v8504_v55 = vld [vmem:[%s9664_s8 + $0x7e8] ss:$16 sps:$4 sm:$0xff]   ;;  %v6697_v56 = vld [vmem:[%s9656_s12 + $0x30] sm:$0xff] }
 0x297   : > { %3232 = vmatprep.mubr.bf16.mxu0 %v2366_v57  ;;  %3314 = vmatprep.mubr.bf16.mxu1 %v2366_v57  ;;  %v8509_v57 = vld [vmem:[%s9675_s27 + $0x404] ss:$16 sps:$4 sm:$0xff]  }
 0x299   : > { %3203 = vmatpush1.bf16.msra.mxu0 %v8417_v58  ;;  %3285 = vmatpush1.bf16.msra.mxu1 %v8420_v59  ;;  %v8512_v58 = vld [vmem:[%s9675_s27 + $0x40c] ss:$16 sps:$4 sm:$0xff]   ;;  %v2365_v59 = vpack.c.bf16 %v6697_v56, %v6697_v56 }
 0x29a   : > { %3204 = vmatprep.subr.bf16.mxu0 %v8425_v60  ;;  %3286 = vmatprep.subr.bf16.mxu1 %v8428_v61  ;;  %v8507_v60 = vld [vmem:[%s9675_s27 + $0x400] ss:$16 sps:$4 sm:$0xff]   ;;  %v8510_v61 = vld [vmem:[%s9675_s27 + $0x408] ss:$16 sps:$4 sm:$0xff]  }
 0x29d   : > { %3205 = vmatpush1.bf16.msra.mxu0 %v8423_v62  ;;  %3287 = vmatpush1.bf16.msra.mxu1 %v8426_v63  ;;  %v8515_v62 = vld [vmem:[%s9675_s27 + $0x424] ss:$16 sps:$4 sm:$0xff]   ;;  %v8518_v63 = vld [vmem:[%s9675_s27 + $0x42c] ss:$16 sps:$4 sm:$0xff]  }
 0x29e   : > { %3206 = vmatprep.subr.bf16.mxu0 %v8431_v0  ;;  %3288 = vmatprep.subr.bf16.mxu1 %v8434_v1  ;;  %v8513_v0 = vld [vmem:[%s9675_s27 + $0x420] ss:$16 sps:$4 sm:$0xff]   ;;  %v8516_v1 = vld [vmem:[%s9675_s27 + $0x428] ss:$16 sps:$4 sm:$0xff]  }
 0x2a1   : > { %3207 = vmatpush1.bf16.msra.mxu0 %v8429_v2  ;;  %3289 = vmatpush1.bf16.msra.mxu1 %v8432_v3  ;;  %v8521_v2 = vld [vmem:[%s9675_s27 + $0x444] ss:$16 sps:$4 sm:$0xff]   ;;  %v8524_v3 = vld [vmem:[%s9675_s27 + $0x44c] ss:$16 sps:$4 sm:$0xff]  }
 0x2a2   : > { %3208 = vmatprep.subr.bf16.mxu0 %v8437_v4  ;;  %3290 = vmatprep.subr.bf16.mxu1 %v8440_v5  ;;  %v8519_v4 = vld [vmem:[%s9675_s27 + $0x440] ss:$16 sps:$4 sm:$0xff]   ;;  %v8522_v5 = vld [vmem:[%s9675_s27 + $0x448] ss:$16 sps:$4 sm:$0xff]  }
 0x2a5   : > { %3209 = vmatpush1.bf16.msra.mxu0 %v8435_v6  ;;  %3291 = vmatpush1.bf16.msra.mxu1 %v8438_v7  ;;  %v8527_v6 = vld [vmem:[%s9675_s27 + $0x464] ss:$16 sps:$4 sm:$0xff]   ;;  %v8530_v7 = vld [vmem:[%s9675_s27 + $0x46c] ss:$16 sps:$4 sm:$0xff]  }
 0x2a6   : > { %3210 = vmatprep.subr.bf16.mxu0 %v8443_v8  ;;  %3292 = vmatprep.subr.bf16.mxu1 %v8446_v9  ;;  %v8525_v8 = vld [vmem:[%s9675_s27 + $0x460] ss:$16 sps:$4 sm:$0xff]   ;;  %v8528_v9 = vld [vmem:[%s9675_s27 + $0x468] ss:$16 sps:$4 sm:$0xff]  }
 0x2a9   : > { %3211 = vmatpush1.bf16.msra.mxu0 %v8441_v10  ;;  %3293 = vmatpush1.bf16.msra.mxu1 %v8444_v16  ;;  %v8533_v10 = vld [vmem:[%s9675_s27 + $0x484] ss:$16 sps:$4 sm:$0xff]   ;;  %v8536_v16 = vld [vmem:[%s9675_s27 + $0x48c] ss:$16 sps:$4 sm:$0xff]  }
 0x2aa   : > { %3212 = vmatprep.subr.bf16.mxu0 %v8449_v17  ;;  %3294 = vmatprep.subr.bf16.mxu1 %v8452_v18  ;;  %v8531_v17 = vld [vmem:[%s9675_s27 + $0x480] ss:$16 sps:$4 sm:$0xff]   ;;  %v8534_v18 = vld [vmem:[%s9675_s27 + $0x488] ss:$16 sps:$4 sm:$0xff]  }
 0x2ad   : > { %3213 = vmatpush1.bf16.msra.mxu0 %v8447_v19  ;;  %3295 = vmatpush1.bf16.msra.mxu1 %v8450_v21  ;;  %v8539_v19 = vld [vmem:[%s9675_s27 + $0x4a4] ss:$16 sps:$4 sm:$0xff]   ;;  %v8542_v21 = vld [vmem:[%s9675_s27 + $0x4ac] ss:$16 sps:$4 sm:$0xff]  }
 0x2ae   : > { %3214 = vmatprep.subr.bf16.mxu0 %v8455_v22  ;;  %3296 = vmatprep.subr.bf16.mxu1 %v8458_v23  ;;  %v8537_v22 = vld [vmem:[%s9675_s27 + $0x4a0] ss:$16 sps:$4 sm:$0xff]   ;;  %v8540_v23 = vld [vmem:[%s9675_s27 + $0x4a8] ss:$16 sps:$4 sm:$0xff]  }
 0x2b1   : > { %3215 = vmatpush1.bf16.msra.mxu0 %v8453_v24  ;;  %3297 = vmatpush1.bf16.msra.mxu1 %v8456_v25  ;;  %v8545_v24 = vld [vmem:[%s9675_s27 + $0x4c4] ss:$16 sps:$4 sm:$0xff]   ;;  %v8548_v25 = vld [vmem:[%s9675_s27 + $0x4cc] ss:$16 sps:$4 sm:$0xff]  }
 0x2b2   : > { %3216 = vmatprep.subr.bf16.mxu0 %v8461_v26  ;;  %3298 = vmatprep.subr.bf16.mxu1 %v8464_v27  ;;  %v8543_v26 = vld [vmem:[%s9675_s27 + $0x4c0] ss:$16 sps:$4 sm:$0xff]   ;;  %v8546_v27 = vld [vmem:[%s9675_s27 + $0x4c8] ss:$16 sps:$4 sm:$0xff]  }
 0x2b5   : > { %3217 = vmatpush1.bf16.msra.mxu0 %v8459_v29  ;;  %3299 = vmatpush1.bf16.msra.mxu1 %v8462_v30  ;;  %v8551_v29 = vld [vmem:[%s9675_s27 + $0x4e4] ss:$16 sps:$4 sm:$0xff]   ;;  %v8554_v30 = vld [vmem:[%s9675_s27 + $0x4ec] ss:$16 sps:$4 sm:$0xff]  }
 0x2b6   : > { %3218 = vmatprep.subr.bf16.mxu0 %v8467_v31  ;;  %3300 = vmatprep.subr.bf16.mxu1 %v8470_v32  ;;  %v8549_v31 = vld [vmem:[%s9675_s27 + $0x4e0] ss:$16 sps:$4 sm:$0xff]   ;;  %v8552_v32 = vld [vmem:[%s9675_s27 + $0x4e8] ss:$16 sps:$4 sm:$0xff]  }
 0x2b9   : > { %3219 = vmatpush1.bf16.msra.mxu0 %v8465_v33  ;;  %3301 = vmatpush1.bf16.msra.mxu1 %v8468_v11  ;;  %v8557_v33 = vld [vmem:[%s9675_s27 + $0x504] ss:$16 sps:$4 sm:$0xff]   ;;  %v8560_v11 = vld [vmem:[%s9675_s27 + $0x50c] ss:$16 sps:$4 sm:$0xff]  }
 0x2ba   : > { %3220 = vmatprep.subr.bf16.mxu0 %v8473_v34  ;;  %3302 = vmatprep.subr.bf16.mxu1 %v8476_v35  ;;  %v8555_v34 = vld [vmem:[%s9675_s27 + $0x500] ss:$16 sps:$4 sm:$0xff]   ;;  %v8558_v35 = vld [vmem:[%s9675_s27 + $0x508] ss:$16 sps:$4 sm:$0xff]  }
 0x2bd   : > { %3221 = vmatpush1.bf16.msra.mxu0 %v8471_v36  ;;  %3303 = vmatpush1.bf16.msra.mxu1 %v8474_v37  ;;  %v8563_v36 = vld [vmem:[%s9675_s27 + $0x524] ss:$16 sps:$4 sm:$0xff]   ;;  %v8566_v37 = vld [vmem:[%s9675_s27 + $0x52c] ss:$16 sps:$4 sm:$0xff]  }
 0x2be   : > { %3222 = vmatprep.subr.bf16.mxu0 %v8479_v13  ;;  %3304 = vmatprep.subr.bf16.mxu1 %v8482_v38  ;;  %v8561_v13 = vld [vmem:[%s9675_s27 + $0x520] ss:$16 sps:$4 sm:$0xff]   ;;  %v8564_v38 = vld [vmem:[%s9675_s27 + $0x528] ss:$16 sps:$4 sm:$0xff]  }
 0x2c1   : > { %3223 = vmatpush1.bf16.msra.mxu0 %v8477_v39  ;;  %3305 = vmatpush1.bf16.msra.mxu1 %v8480_v40  ;;  %v8569_v39 = vld [vmem:[%s9675_s27 + $0x544] ss:$16 sps:$4 sm:$0xff]   ;;  %v8572_v40 = vld [vmem:[%s9675_s27 + $0x54c] ss:$16 sps:$4 sm:$0xff]  }
 0x2c2   : > { %3224 = vmatprep.subr.bf16.mxu0 %v8485_v41  ;;  %3306 = vmatprep.subr.bf16.mxu1 %v8488_v42  ;;  %v8567_v41 = vld [vmem:[%s9675_s27 + $0x540] ss:$16 sps:$4 sm:$0xff]   ;;  %v8570_v42 = vld [vmem:[%s9675_s27 + $0x548] ss:$16 sps:$4 sm:$0xff]  }
 0x2c5   : > { %3225 = vmatpush1.bf16.msra.mxu0 %v8483_v43  ;;  %3307 = vmatpush1.bf16.msra.mxu1 %v8486_v44  ;;  %v8575_v43 = vld [vmem:[%s9675_s27 + $0x564] ss:$16 sps:$4 sm:$0xff]   ;;  %v8578_v44 = vld [vmem:[%s9675_s27 + $0x56c] ss:$16 sps:$4 sm:$0xff]  }
 0x2c6   : > { %3226 = vmatprep.subr.bf16.mxu0 %v8491_v20  ;;  %3308 = vmatprep.subr.bf16.mxu1 %v8494_v45  ;;  %v8573_v20 = vld [vmem:[%s9675_s27 + $0x560] ss:$16 sps:$4 sm:$0xff]   ;;  %v8576_v45 = vld [vmem:[%s9675_s27 + $0x568] ss:$16 sps:$4 sm:$0xff]  }
 0x2c9   : > { %3227 = vmatpush1.bf16.msra.mxu0 %v8489_v46  ;;  %3309 = vmatpush1.bf16.msra.mxu1 %v8492_v47  ;;  %v8581_v46 = vld [vmem:[%s9675_s27 + $0x584] ss:$16 sps:$4 sm:$0xff]   ;;  %v8584_v47 = vld [vmem:[%s9675_s27 + $0x58c] ss:$16 sps:$4 sm:$0xff]  }
 0x2ca   : > { %3228 = vmatprep.subr.bf16.mxu0 %v8497_v48  ;;  %3310 = vmatprep.subr.bf16.mxu1 %v8500_v49  ;;  %v8579_v48 = vld [vmem:[%s9675_s27 + $0x580] ss:$16 sps:$4 sm:$0xff]   ;;  %v8582_v49 = vld [vmem:[%s9675_s27 + $0x588] ss:$16 sps:$4 sm:$0xff]  }
 0x2cd   : > { %3229 = vmatpush1.bf16.msra.mxu0 %v8495_v50  ;;  %3311 = vmatpush1.bf16.msra.mxu1 %v8498_v51  ;;  %v8587_v50 = vld [vmem:[%s9675_s27 + $0x5a4] ss:$16 sps:$4 sm:$0xff]   ;;  %v8590_v51 = vld [vmem:[%s9675_s27 + $0x5ac] ss:$16 sps:$4 sm:$0xff]  }
 0x2ce   : > { %3230 = vmatprep.subr.bf16.mxu0 %v8503_v52  ;;  %3312 = vmatprep.subr.bf16.mxu1 %v8506_v53  ;;  %v8585_v52 = vld [vmem:[%s9675_s27 + $0x5a0] ss:$16 sps:$4 sm:$0xff]   ;;  %v8588_v53 = vld [vmem:[%s9675_s27 + $0x5a8] ss:$16 sps:$4 sm:$0xff]  }
 0x2d1   : > { %3231 = vmatpush1.bf16.msra.mxu0 %v8501_v54  ;;  %3313 = vmatpush1.bf16.msra.mxu1 %v8504_v55  ;;  %v1524_v54 = vld [vmem:[%s10159_s24] sm:$0xf] }
 0x2d2   : > { %4123 = vmatprep.subr.bf16.mxu0 %v8509_v57  ;;  %4205 = vmatprep.subr.bf16.mxu1 %v8512_v58  ;;  %v1529_v55 = vrot.slane %v1524_v54, %v9882_v12  ;;  %v1537_v56 = vrot.slane %v1524_v54, %v9952_v28  ;;  %v1533_v57 = vrot.slane %v1524_v54, %v9888_v14 }
 0x2d3   : > { %v1541_v58 = vrot.slane %v1524_v54, %v9891_v15  ;;  %v8615_v54 = vld [vmem:[%s9675_s27 + $0x640] ss:$16 sps:$4 sm:$0xff]  }
 0x2d4   : > { %3233 = vmatmul.mubr.bf16.vlgmr.msra.gmra.mrb[8].mxu0 %v2365_v59  ;;  %3315 = vmatmul.mubr.bf16.vlgmr.msra.gmra.mrb[8].mxu1 %v2365_v59  ;;  %v8593_v59 = vld [vmem:[%s9675_s27 + $0x5c4] ss:$16 sps:$4 sm:$0xff]  }
 0x2d5   : > { %4124 = vmatpush1.bf16.msra.mxu0 %v8507_v60  ;;  %4206 = vmatpush1.bf16.msra.mxu1 %v8510_v61  ;;  %v8596_v60 = vld [vmem:[%s9675_s27 + $0x5cc] ss:$16 sps:$4 sm:$0xff]   ;;  %v8591_v61 = vld [vmem:[%s9675_s27 + $0x5c0] ss:$16 sps:$4 sm:$0xff]  }
 0x2d6   : > { %4125 = vmatprep.subr.bf16.mxu0 %v8515_v62  ;;  %4207 = vmatprep.subr.bf16.mxu1 %v8518_v63  ;;  %v8594_v62 = vld [vmem:[%s9675_s27 + $0x5c8] ss:$16 sps:$4 sm:$0xff]  }
 0x2d9   : > { %4126 = vmatpush1.bf16.msra.mxu0 %v8513_v0  ;;  %4208 = vmatpush1.bf16.msra.mxu1 %v8516_v1 }
 0x2da   : > { %4127 = vmatprep.subr.bf16.mxu0 %v8521_v2  ;;  %4209 = vmatprep.subr.bf16.mxu1 %v8524_v3 }
 0x2dd   : > { %4128 = vmatpush1.bf16.msra.mxu0 %v8519_v4  ;;  %4210 = vmatpush1.bf16.msra.mxu1 %v8522_v5 }
 0x2de   : > { %4129 = vmatprep.subr.bf16.mxu0 %v8527_v6  ;;  %4211 = vmatprep.subr.bf16.mxu1 %v8530_v7 }
 0x2e1   : > { %4130 = vmatpush1.bf16.msra.mxu0 %v8525_v8  ;;  %4212 = vmatpush1.bf16.msra.mxu1 %v8528_v9  ;;  %v8599_v9 = vld [vmem:[%s9675_s27 + $0x5e4] ss:$16 sps:$4 sm:$0xff]  }
 0x2e2   : > { %4131 = vmatprep.subr.bf16.mxu0 %v8533_v10  ;;  %4213 = vmatprep.subr.bf16.mxu1 %v8536_v16  ;;  %v8602_v10 = vld [vmem:[%s9675_s27 + $0x5ec] ss:$16 sps:$4 sm:$0xff]  }
 0x2e5   : > { %4132 = vmatpush1.bf16.msra.mxu0 %v8531_v17  ;;  %4214 = vmatpush1.bf16.msra.mxu1 %v8534_v18 }
 0x2e6   : > { %4133 = vmatprep.subr.bf16.mxu0 %v8539_v19  ;;  %4215 = vmatprep.subr.bf16.mxu1 %v8542_v21  ;;  %v8597_v21 = vld [vmem:[%s9675_s27 + $0x5e0] ss:$16 sps:$4 sm:$0xff]  }
 0x2e9   : > { %4134 = vmatpush1.bf16.msra.mxu0 %v8537_v22  ;;  %4216 = vmatpush1.bf16.msra.mxu1 %v8540_v23 }
 0x2ea   : > { %4135 = vmatprep.subr.bf16.mxu0 %v8545_v24  ;;  %4217 = vmatprep.subr.bf16.mxu1 %v8548_v25  ;;  %v8600_v24 = vld [vmem:[%s9675_s27 + $0x5e8] ss:$16 sps:$4 sm:$0xff]   ;;  %v8605_v25 = vld [vmem:[%s9675_s27 + $0x604] ss:$16 sps:$4 sm:$0xff]  }
 0x2ed   : > { %4136 = vmatpush1.bf16.msra.mxu0 %v8543_v26  ;;  %4218 = vmatpush1.bf16.msra.mxu1 %v8546_v27  ;;  %v8608_v26 = vld [vmem:[%s9675_s27 + $0x60c] ss:$16 sps:$4 sm:$0xff]  }
 0x2ee   : > { %4137 = vmatprep.subr.bf16.mxu0 %v8551_v29  ;;  %4219 = vmatprep.subr.bf16.mxu1 %v8554_v30  ;;  %v10185_v27 = vld [vmem:[%s9673_s7 + $0x4] sm:$0xf] }
 0x2ef   : > { %v2502_v29 = vrot.slane %v10185_v27, %v9882_v12  ;;  %v2506_v30 = vrot.slane %v10185_v27, %v9888_v14 }
 0x2f1   : > { %4138 = vmatpush1.bf16.msra.mxu0 %v8549_v31  ;;  %4220 = vmatpush1.bf16.msra.mxu1 %v8552_v32  ;;  %v2514_v31 = vrot.slane %v10185_v27, %v9891_v15 }
 0x2f2   : > { %4139 = vmatprep.subr.bf16.mxu0 %v8557_v33  ;;  %4221 = vmatprep.subr.bf16.mxu1 %v8560_v11 }
 0x2f5   : > { %4140 = vmatpush1.bf16.msra.mxu0 %v8555_v34  ;;  %4222 = vmatpush1.bf16.msra.mxu1 %v8558_v35 }
 0x2f6   : > { %4141 = vmatprep.subr.bf16.mxu0 %v8563_v36  ;;  %4223 = vmatprep.subr.bf16.mxu1 %v8566_v37 }
 0x2f9   : > { %4142 = vmatpush1.bf16.msra.mxu0 %v8561_v13  ;;  %4224 = vmatpush1.bf16.msra.mxu1 %v8564_v38 }
 0x2fa   : > { %4143 = vmatprep.subr.bf16.mxu0 %v8569_v39  ;;  %4225 = vmatprep.subr.bf16.mxu1 %v8572_v40 }
 0x2fd   : > { %4144 = vmatpush1.bf16.msra.mxu0 %v8567_v41  ;;  %4226 = vmatpush1.bf16.msra.mxu1 %v8570_v42 }
 0x2fe   : > { %4145 = vmatprep.subr.bf16.mxu0 %v8575_v43  ;;  %4227 = vmatprep.subr.bf16.mxu1 %v8578_v44 }
 0x301   : > { %4146 = vmatpush1.bf16.msra.mxu0 %v8573_v20  ;;  %4228 = vmatpush1.bf16.msra.mxu1 %v8576_v45  ;;  %v8603_v20 = vld [vmem:[%s9675_s27 + $0x600] ss:$16 sps:$4 sm:$0xff]   ;;  %v8606_v45 = vld [vmem:[%s9675_s27 + $0x608] ss:$16 sps:$4 sm:$0xff]  }
 0x302   : > { %4147 = vmatprep.subr.bf16.mxu0 %v8581_v46  ;;  %4229 = vmatprep.subr.bf16.mxu1 %v8584_v47  ;;  %v8611_v47 = vld [vmem:[%s9675_s27 + $0x624] ss:$16 sps:$4 sm:$0xff]  }
 0x305   : > { %4148 = vmatpush1.bf16.msra.mxu0 %v8579_v48  ;;  %4230 = vmatpush1.bf16.msra.mxu1 %v8582_v49  ;;  %v8614_v48 = vld [vmem:[%s9675_s27 + $0x62c] ss:$16 sps:$4 sm:$0xff]  }
 0x306   : > { %4149 = vmatprep.subr.bf16.mxu0 %v8587_v50  ;;  %4231 = vmatprep.subr.bf16.mxu1 %v8590_v51  ;;  %v8609_v50 = vld [vmem:[%s9675_s27 + $0x620] ss:$16 sps:$4 sm:$0xff]   ;;  %v8612_v51 = vld [vmem:[%s9675_s27 + $0x628] ss:$16 sps:$4 sm:$0xff]  }
 0x309   : > { %4150 = vmatpush1.bf16.msra.mxu0 %v8585_v52  ;;  %4232 = vmatpush1.bf16.msra.mxu1 %v8588_v53  ;;  %v8617_v52 = vld [vmem:[%s9675_s27 + $0x644] ss:$16 sps:$4 sm:$0xff]   ;;  %v8620_v53 = vld [vmem:[%s9675_s27 + $0x64c] ss:$16 sps:$4 sm:$0xff]  }
 0x30a   : > { %4151 = vmatprep.subr.bf16.mxu0 %v8593_v59  ;;  %4233 = vmatprep.subr.bf16.mxu1 %v8596_v60  ;;  %v8624_v59 = vld [vmem:[%s9675_s27 + $0x668] ss:$16 sps:$4 sm:$0xff]   ;;  %v8629_v60 = vld [vmem:[%s9675_s27 + $0x684] ss:$16 sps:$4 sm:$0xff]  }
 0x30d   : > { %4152 = vmatpush1.bf16.msra.mxu0 %v8591_v61  ;;  %4234 = vmatpush1.bf16.msra.mxu1 %v8594_v62  ;;  %v8632_v61 = vld [vmem:[%s9675_s27 + $0x68c] ss:$16 sps:$4 sm:$0xff]   ;;  %v8627_v62 = vld [vmem:[%s9675_s27 + $0x680] ss:$16 sps:$4 sm:$0xff]  }
 0x30e   : > { %4153 = vmatprep.subr.bf16.mxu0 %v8599_v9  ;;  %4235 = vmatprep.subr.bf16.mxu1 %v8602_v10  ;;  %v8650_v9 = vld [vmem:[%s9675_s27 + $0x6ec] ss:$16 sps:$4 sm:$0xff]   ;;  %v8645_v10 = vld [vmem:[%s9675_s27 + $0x6e0] ss:$16 sps:$4 sm:$0xff]  }
 0x311   : > { %4154 = vmatpush1.bf16.msra.mxu0 %v8597_v21  ;;  %4236 = vmatpush1.bf16.msra.mxu1 %v8600_v24  ;;  %v8654_v21 = vld [vmem:[%s9675_s27 + $0x708] ss:$16 sps:$4 sm:$0xff]   ;;  %v8657_v24 = vld [vmem:[%s9675_s27 + $0x720] ss:$16 sps:$4 sm:$0xff]  }
 0x312   : > { %4164 = vmatprep.subr.bf16.mxu0 %v8605_v25  ;;  %4246 = vmatprep.subr.bf16.mxu1 %v8608_v26  ;;  %v8660_v25 = vld [vmem:[%s9675_s27 + $0x728] ss:$16 sps:$4 sm:$0xff]   ;;  %v8665_v26 = vld [vmem:[%s9675_s27 + $0x744] ss:$16 sps:$4 sm:$0xff]  }
 0x327   : > { %v2261_v63 = vpop.f32.mrb[4].mxu0  ;;  %v2343_v0 = vpop.f32.mrb[4].mxu1 }
 0x328   : > { %v7765_v1 = vadd.f32 %v2261_v63, %v1529_v55  ;;  %v7767_v2 = vadd.f32 %v2343_v0, %v1537_v56  ;;  %v2263_v3 = vpop.f32.mrb[5].mxu0  ;;  %v2345_v4 = vpop.f32.mrb[5].mxu1  ;;  %v8618_v55 = vld [vmem:[%s9675_s27 + $0x648] ss:$16 sps:$4 sm:$0xff]   ;;  %v8623_v56 = vld [vmem:[%s9675_s27 + $0x664] ss:$16 sps:$4 sm:$0xff]  }
 0x329   : > { %v7766_v5 = vadd.f32 %v2263_v3, %v1533_v57  ;;  %v7768_v6 = vadd.f32 %v2345_v4, %v1541_v58  ;;  %v2265_v7 = vpop.f32.mrb[6].mxu0  ;;  %v2347_v8 = vpop.f32.mrb[6].mxu1  ;;  %v8626_v57 = vld [vmem:[%s9675_s27 + $0x66c] ss:$16 sps:$4 sm:$0xff]   ;;  %v8621_v58 = vld [vmem:[%s9675_s27 + $0x660] ss:$16 sps:$4 sm:$0xff]  }
 0x32a   : > { %v2350_v16 = vmax.f32 %v7765_v1, 0.0  ;;  %v2352_v17 = vmax.f32 %v7767_v2, 0.0  ;;  %v2266_v18 = vpop.f32.mrb[7].mxu0  ;;  %v2348_v19 = vpop.f32.mrb[7].mxu1  ;;  %v8630_v63 = vld [vmem:[%s9675_s27 + $0x688] ss:$16 sps:$4 sm:$0xff]  }
 0x32b   : > { %v2351_v22 = vmax.f32 %v7766_v5, 0.0  ;;  %v2353_v23 = vmax.f32 %v7768_v6, 0.0  ;;  %v8635_v0 = vld [vmem:[%s9675_s27 + $0x6a4] ss:$16 sps:$4 sm:$0xff]   ;;  %v8638_v1 = vld [vmem:[%s9675_s27 + $0x6ac] ss:$16 sps:$4 sm:$0xff]  }
 0x32c   : > { %2354 = vst [vmem:[%s10176_s30] sm:$0xff] %v2350_v16  ;;  %2356 = vst [vmem:[%s10176_s30 + $0x10] sm:$0xff] %v2352_v17  ;;  %v8633_v2 = vld [vmem:[%s9675_s27 + $0x6a0] ss:$16 sps:$4 sm:$0xff]   ;;  %v8636_v3 = vld [vmem:[%s9675_s27 + $0x6a8] ss:$16 sps:$4 sm:$0xff]  }
 0x32d   : > { %2355 = vst [vmem:[%s10176_s30 + $0x8] sm:$0xff] %v2351_v22  ;;  %2357 = vst [vmem:[%s10176_s30 + $0x18] sm:$0xff] %v2353_v23  ;;  %v8641_v4 = vld [vmem:[%s9675_s27 + $0x6c4] ss:$16 sps:$4 sm:$0xff]   ;;  %v8644_v5 = vld [vmem:[%s9675_s27 + $0x6cc] ss:$16 sps:$4 sm:$0xff]  }
 0x32e   : > { %v8639_v6 = vld [vmem:[%s9675_s27 + $0x6c0] ss:$16 sps:$4 sm:$0xff]   ;;  %v8642_v7 = vld [vmem:[%s9675_s27 + $0x6c8] ss:$16 sps:$4 sm:$0xff]   ;;  %v8647_v8 = vld [vmem:[%s9675_s27 + $0x6e4] ss:$16 sps:$4 sm:$0xff]  }
 0x32f   : > { %v8648_v16 = vld [vmem:[%s9675_s27 + $0x6e8] ss:$16 sps:$4 sm:$0xff]   ;;  %v8653_v17 = vld [vmem:[%s9675_s27 + $0x704] ss:$16 sps:$4 sm:$0xff]   ;;  %v8656_v18 = vld [vmem:[%s9675_s27 + $0x70c] ss:$16 sps:$4 sm:$0xff]  }
 0x330   : > { %v8651_v19 = vld [vmem:[%s9675_s27 + $0x700] ss:$16 sps:$4 sm:$0xff]   ;;  %v8659_v22 = vld [vmem:[%s9675_s27 + $0x724] ss:$16 sps:$4 sm:$0xff]   ;;  %v8662_v23 = vld [vmem:[%s9675_s27 + $0x72c] ss:$16 sps:$4 sm:$0xff]  }
 0x3a7   : > { %v3234_v32 = vpop.f32.mrb[8].mxu0  ;;  %v10193_v33 = vpop.f32.mrb[8].mxu1 }
 0x3a8   : > { %v7769_v11 = vadd.f32 %v3234_v32, %v2502_v29  ;;  %v3236_v34 = vpop.f32.mrb[9].mxu0  ;;  %v3318_v35 = vpop.f32.mrb[9].mxu1  ;;  %v8668_v29 = vld [vmem:[%s9675_s27 + $0x74c] ss:$16 sps:$4 sm:$0xff]   ;;  %v8671_v32 = vld [vmem:[%s9675_s27 + $0x764] ss:$16 sps:$4 sm:$0xff]  }
 0x3a9   : > { %v7770_v36 = vadd.f32 %v3236_v34, %v2506_v30  ;;  %v7772_v37 = vadd.f32 %v3318_v35, %v2514_v31  ;;  %v3238_v13 = vpop.f32.mrb[10].mxu0  ;;  %v3320_v38 = vpop.f32.mrb[10].mxu1  ;;  %v8663_v30 = vld [vmem:[%s9675_s27 + $0x740] ss:$16 sps:$4 sm:$0xff]   ;;  %v8666_v31 = vld [vmem:[%s9675_s27 + $0x748] ss:$16 sps:$4 sm:$0xff]  }
 0x3aa   : > { %v3323_v39 = vmax.f32 %v7769_v11, 0.0  ;;  %v3239_v40 = vpop.f32.mrb[11].mxu0  ;;  %v3321_v41 = vpop.f32.mrb[11].mxu1  ;;  %v8674_v11 = vld [vmem:[%s9675_s27 + $0x76c] ss:$16 sps:$4 sm:$0xff]  }
 0x3ab   : > { %v3324_v42 = vmax.f32 %v7770_v36, 0.0  ;;  %v3326_v43 = vmax.f32 %v7772_v37, 0.0  ;;  %v8669_v34 = vld [vmem:[%s9675_s27 + $0x760] ss:$16 sps:$4 sm:$0xff]   ;;  %v8672_v35 = vld [vmem:[%s9675_s27 + $0x768] ss:$16 sps:$4 sm:$0xff]  }
 0x3ac   : > { %v3327_v46 = vpack.c.bf16 %v3323_v39, %v3323_v39  ;;  %v8677_v36 = vld [vmem:[%s9675_s27 + $0x784] ss:$16 sps:$4 sm:$0xff]   ;;  %v8680_v37 = vld [vmem:[%s9675_s27 + $0x78c] ss:$16 sps:$4 sm:$0xff]   ;;  %v8675_v13 = vld [vmem:[%s9675_s27 + $0x780] ss:$16 sps:$4 sm:$0xff]  }
 0x3ad   : > { %v3328_v44 = vpack.c.bf16 %v3324_v42, %v3324_v42  ;;  %v3330_v49 = vpack.c.bf16 %v3326_v43, %v3326_v43  ;;  %v8678_v38 = vld [vmem:[%s9675_s27 + $0x788] ss:$16 sps:$4 sm:$0xff]   ;;  %v8683_v39 = vld [vmem:[%s9675_s27 + $0x7a4] ss:$16 sps:$4 sm:$0xff]   ;;  %v8686_v40 = vld [vmem:[%s9675_s27 + $0x7ac] ss:$16 sps:$4 sm:$0xff]   ;;  %v2510_v43 = vrot.slane %v10185_v27, %v9952_v28 }
 0x3ae   : > { %v8681_v41 = vld [vmem:[%s9675_s27 + $0x7a0] ss:$16 sps:$4 sm:$0xff]   ;;  %v8684_v42 = vld [vmem:[%s9675_s27 + $0x7a8] ss:$16 sps:$4 sm:$0xff]   ;;  %v8695_v27 = vld [vmem:[%s9675_s27 + $0x7e4] ss:$16 sps:$4 sm:$0xff]  }
 0x3af   : > { %4155 = vmatprep.mubr.bf16.mxu0 %v3328_v44  ;;  %4237 = vmatprep.mubr.bf16.mxu1 %v3328_v44  ;;  %v8689_v44 = vld [vmem:[%s9675_s27 + $0x7c4] ss:$16 sps:$4 sm:$0xff]  }
 0x3b0   : > { %4156 = vmatmul.mubr.bf16.vlgmr.msra.gmra.mrb[12].mxu0 %v3327_v46  ;;  %4238 = vmatmul.mubr.bf16.vlgmr.msra.gmra.mrb[12].mxu1 %v3327_v46  ;;  %v8690_v46 = vld [vmem:[%s9675_s27 + $0x7c8] ss:$16 sps:$4 sm:$0xff]  }
 0x3b1   : > { %4165 = vmatpush1.bf16.msra.mxu0 %v8603_v20  ;;  %4247 = vmatpush1.bf16.msra.mxu1 %v8606_v45  ;;  %v8692_v20 = vld [vmem:[%s9675_s27 + $0x7cc] ss:$16 sps:$4 sm:$0xff]   ;;  %v8687_v45 = vld [vmem:[%s9675_s27 + $0x7c0] ss:$16 sps:$4 sm:$0xff]  }
 0x3b2   : > { %4196 = vmatprep.mubr.bf16.mxu0 %v3330_v49  ;;  %4278 = vmatprep.mubr.bf16.mxu1 %v3330_v49  ;;  %v8693_v49 = vld [vmem:[%s9675_s27 + $0x7e0] ss:$16 sps:$4 sm:$0xff]  }
 0x3b3   : > { %4166 = vmatprep.subr.bf16.mxu0 %v8611_v47  ;;  %4248 = vmatprep.subr.bf16.mxu1 %v8614_v48  ;;  %v7771_v47 = vadd.f32 %v10193_v33, %v2510_v43  ;;  %v8698_v48 = vld [vmem:[%s9675_s27 + $0x7ec] ss:$16 sps:$4 sm:$0xff]   ;;  %v8699_v33 = vld [vmem:[%s9664_s8 + $0x800] ss:$16 sps:$4 sm:$0xff]  }
 0x3b4   : > { %v8765_v43 = vld [vmem:[%s9664_s8 + $0x960] ss:$16 sps:$4 sm:$0xff]  }
 0x3b5   : > { %4167 = vmatpush1.bf16.msra.mxu0 %v8609_v50  ;;  %4249 = vmatpush1.bf16.msra.mxu1 %v8612_v51  ;;  %v8696_v50 = vld [vmem:[%s9675_s27 + $0x7e8] ss:$16 sps:$4 sm:$0xff]   ;;  %v3325_v51 = vmax.f32 %v7771_v47, 0.0  ;;  %v8774_v47 = vld [vmem:[%s9664_s8 + $0x988] ss:$16 sps:$4 sm:$0xff]  }
 0x3b6   : > { %4168 = vmatprep.subr.bf16.mxu0 %v8617_v52  ;;  %4250 = vmatprep.subr.bf16.mxu1 %v8620_v53  ;;  %v8701_v52 = vld [vmem:[%s9664_s8 + $0x804] ss:$16 sps:$4 sm:$0xff]   ;;  %v8704_v53 = vld [vmem:[%s9664_s8 + $0x80c] ss:$16 sps:$4 sm:$0xff]  }
 0x3b9   : > { %4169 = vmatpush1.bf16.msra.mxu0 %v8615_v54  ;;  %4251 = vmatpush1.bf16.msra.mxu1 %v8618_v55  ;;  %v7218_v54 = vld [vmem:[%s9656_s12 + $0x48] sm:$0xff] }
 0x3ba   : > { %4170 = vmatprep.subr.bf16.mxu0 %v8623_v56  ;;  %4252 = vmatprep.subr.bf16.mxu1 %v8626_v57  ;;  %v8702_v55 = vld [vmem:[%s9664_s8 + $0x808] ss:$16 sps:$4 sm:$0xff]   ;;  %v3329_v56 = vpack.c.bf16 %v3325_v51, %v3325_v51  ;;  %v8707_v57 = vld [vmem:[%s9664_s8 + $0x824] ss:$16 sps:$4 sm:$0xff]  }
 0x3bb   : > { %v8785_v51 = vld [vmem:[%s9664_s8 + $0x9c4] ss:$16 sps:$4 sm:$0xff]  }
 0x3bd   : > { %4171 = vmatpush1.bf16.msra.mxu0 %v8621_v58  ;;  %4253 = vmatpush1.bf16.msra.mxu1 %v8624_v59  ;;  %v8710_v58 = vld [vmem:[%s9664_s8 + $0x82c] ss:$16 sps:$4 sm:$0xff]   ;;  %v4302_v59 = vpack.c.bf16 %v7218_v54, %v7218_v54  ;;  %v8786_v54 = vld [vmem:[%s9664_s8 + $0x9c8] ss:$16 sps:$4 sm:$0xff]  }
 0x3be   : > { %4172 = vmatprep.subr.bf16.mxu0 %v8629_v60  ;;  %4254 = vmatprep.subr.bf16.mxu1 %v8632_v61  ;;  %v8705_v60 = vld [vmem:[%s9664_s8 + $0x820] ss:$16 sps:$4 sm:$0xff]   ;;  %v8708_v61 = vld [vmem:[%s9664_s8 + $0x828] ss:$16 sps:$4 sm:$0xff]  }
 0x3c1   : > { %4173 = vmatpush1.bf16.msra.mxu0 %v8627_v62  ;;  %4255 = vmatpush1.bf16.msra.mxu1 %v8630_v63  ;;  %v8713_v62 = vld [vmem:[%s9664_s8 + $0x844] ss:$16 sps:$4 sm:$0xff]   ;;  %v8716_v63 = vld [vmem:[%s9664_s8 + $0x84c] ss:$16 sps:$4 sm:$0xff]  }
 0x3c2   : > { %4174 = vmatprep.subr.bf16.mxu0 %v8635_v0  ;;  %4256 = vmatprep.subr.bf16.mxu1 %v8638_v1  ;;  %v8711_v0 = vld [vmem:[%s9664_s8 + $0x840] ss:$16 sps:$4 sm:$0xff]   ;;  %v8714_v1 = vld [vmem:[%s9664_s8 + $0x848] ss:$16 sps:$4 sm:$0xff]  }
 0x3c5   : > { %4175 = vmatpush1.bf16.msra.mxu0 %v8633_v2  ;;  %4257 = vmatpush1.bf16.msra.mxu1 %v8636_v3  ;;  %v8719_v2 = vld [vmem:[%s9664_s8 + $0x864] ss:$16 sps:$4 sm:$0xff]   ;;  %v8722_v3 = vld [vmem:[%s9664_s8 + $0x86c] ss:$16 sps:$4 sm:$0xff]  }
 0x3c6   : > { %4176 = vmatprep.subr.bf16.mxu0 %v8641_v4  ;;  %4258 = vmatprep.subr.bf16.mxu1 %v8644_v5  ;;  %v8717_v4 = vld [vmem:[%s9664_s8 + $0x860] ss:$16 sps:$4 sm:$0xff]   ;;  %v8720_v5 = vld [vmem:[%s9664_s8 + $0x868] ss:$16 sps:$4 sm:$0xff]  }
 0x3c9   : > { %4177 = vmatpush1.bf16.msra.mxu0 %v8639_v6  ;;  %4259 = vmatpush1.bf16.msra.mxu1 %v8642_v7  ;;  %v8725_v6 = vld [vmem:[%s9664_s8 + $0x884] ss:$16 sps:$4 sm:$0xff]   ;;  %v8728_v7 = vld [vmem:[%s9664_s8 + $0x88c] ss:$16 sps:$4 sm:$0xff]  }
 0x3ca   : > { %4178 = vmatprep.subr.bf16.mxu0 %v8647_v8  ;;  %4260 = vmatprep.subr.bf16.mxu1 %v8650_v9  ;;  %v8723_v8 = vld [vmem:[%s9664_s8 + $0x880] ss:$16 sps:$4 sm:$0xff]   ;;  %v8726_v9 = vld [vmem:[%s9664_s8 + $0x888] ss:$16 sps:$4 sm:$0xff]  }
 0x3cd   : > { %4179 = vmatpush1.bf16.msra.mxu0 %v8645_v10  ;;  %4261 = vmatpush1.bf16.msra.mxu1 %v8648_v16  ;;  %v8731_v10 = vld [vmem:[%s9664_s8 + $0x8a4] ss:$16 sps:$4 sm:$0xff]   ;;  %v8734_v16 = vld [vmem:[%s9664_s8 + $0x8ac] ss:$16 sps:$4 sm:$0xff]  }
 0x3ce   : > { %4180 = vmatprep.subr.bf16.mxu0 %v8653_v17  ;;  %4262 = vmatprep.subr.bf16.mxu1 %v8656_v18  ;;  %v8729_v17 = vld [vmem:[%s9664_s8 + $0x8a0] ss:$16 sps:$4 sm:$0xff]   ;;  %v8732_v18 = vld [vmem:[%s9664_s8 + $0x8a8] ss:$16 sps:$4 sm:$0xff]  }
 0x3d1   : > { %4181 = vmatpush1.bf16.msra.mxu0 %v8651_v19  ;;  %4263 = vmatpush1.bf16.msra.mxu1 %v8654_v21  ;;  %v8737_v19 = vld [vmem:[%s9664_s8 + $0x8c4] ss:$16 sps:$4 sm:$0xff]   ;;  %v8740_v21 = vld [vmem:[%s9664_s8 + $0x8cc] ss:$16 sps:$4 sm:$0xff]  }
 0x3d2   : > { %4182 = vmatprep.subr.bf16.mxu0 %v8659_v22  ;;  %4264 = vmatprep.subr.bf16.mxu1 %v8662_v23  ;;  %v8735_v22 = vld [vmem:[%s9664_s8 + $0x8c0] ss:$16 sps:$4 sm:$0xff]   ;;  %v8738_v23 = vld [vmem:[%s9664_s8 + $0x8c8] ss:$16 sps:$4 sm:$0xff]  }
 0x3d5   : > { %4183 = vmatpush1.bf16.msra.mxu0 %v8657_v24  ;;  %4265 = vmatpush1.bf16.msra.mxu1 %v8660_v25  ;;  %v8743_v24 = vld [vmem:[%s9664_s8 + $0x8e4] ss:$16 sps:$4 sm:$0xff]   ;;  %v8746_v25 = vld [vmem:[%s9664_s8 + $0x8ec] ss:$16 sps:$4 sm:$0xff]  }
 0x3d6   : > { %4184 = vmatprep.subr.bf16.mxu0 %v8665_v26  ;;  %4266 = vmatprep.subr.bf16.mxu1 %v8668_v29  ;;  %v8741_v26 = vld [vmem:[%s9664_s8 + $0x8e0] ss:$16 sps:$4 sm:$0xff]   ;;  %v8744_v29 = vld [vmem:[%s9664_s8 + $0x8e8] ss:$16 sps:$4 sm:$0xff]  }
 0x3d9   : > { %4185 = vmatpush1.bf16.msra.mxu0 %v8663_v30  ;;  %4267 = vmatpush1.bf16.msra.mxu1 %v8666_v31  ;;  %v8749_v30 = vld [vmem:[%s9664_s8 + $0x904] ss:$16 sps:$4 sm:$0xff]   ;;  %v8752_v31 = vld [vmem:[%s9664_s8 + $0x90c] ss:$16 sps:$4 sm:$0xff]  }
 0x3da   : > { %4186 = vmatprep.subr.bf16.mxu0 %v8671_v32  ;;  %4268 = vmatprep.subr.bf16.mxu1 %v8674_v11  ;;  %v8747_v32 = vld [vmem:[%s9664_s8 + $0x900] ss:$16 sps:$4 sm:$0xff]   ;;  %v8750_v11 = vld [vmem:[%s9664_s8 + $0x908] ss:$16 sps:$4 sm:$0xff]  }
 0x3dd   : > { %4187 = vmatpush1.bf16.msra.mxu0 %v8669_v34  ;;  %4269 = vmatpush1.bf16.msra.mxu1 %v8672_v35  ;;  %v8755_v34 = vld [vmem:[%s9664_s8 + $0x924] ss:$16 sps:$4 sm:$0xff]   ;;  %v8758_v35 = vld [vmem:[%s9664_s8 + $0x92c] ss:$16 sps:$4 sm:$0xff]  }
 0x3de   : > { %4188 = vmatprep.subr.bf16.mxu0 %v8677_v36  ;;  %4270 = vmatprep.subr.bf16.mxu1 %v8680_v37  ;;  %v8753_v36 = vld [vmem:[%s9664_s8 + $0x920] ss:$16 sps:$4 sm:$0xff]   ;;  %v8756_v37 = vld [vmem:[%s9664_s8 + $0x928] ss:$16 sps:$4 sm:$0xff]  }
 0x3e1   : > { %4189 = vmatpush1.bf16.msra.mxu0 %v8675_v13  ;;  %4271 = vmatpush1.bf16.msra.mxu1 %v8678_v38  ;;  %v8761_v13 = vld [vmem:[%s9664_s8 + $0x944] ss:$16 sps:$4 sm:$0xff]   ;;  %v8764_v38 = vld [vmem:[%s9664_s8 + $0x94c] ss:$16 sps:$4 sm:$0xff]  }
 0x3e2   : > { %4190 = vmatprep.subr.bf16.mxu0 %v8683_v39  ;;  %4272 = vmatprep.subr.bf16.mxu1 %v8686_v40  ;;  %v8759_v39 = vld [vmem:[%s9664_s8 + $0x940] ss:$16 sps:$4 sm:$0xff]   ;;  %v8762_v40 = vld [vmem:[%s9664_s8 + $0x948] ss:$16 sps:$4 sm:$0xff]  }
 0x3e5   : > { %4191 = vmatpush1.bf16.msra.mxu0 %v8681_v41  ;;  %4273 = vmatpush1.bf16.msra.mxu1 %v8684_v42  ;;  %v8767_v41 = vld [vmem:[%s9664_s8 + $0x964] ss:$16 sps:$4 sm:$0xff]   ;;  %v8770_v42 = vld [vmem:[%s9664_s8 + $0x96c] ss:$16 sps:$4 sm:$0xff]  }
 0x3e6   : > { %4192 = vmatprep.subr.bf16.mxu0 %v8689_v44  ;;  %4274 = vmatprep.subr.bf16.mxu1 %v8692_v20  ;;  %v8768_v44 = vld [vmem:[%s9664_s8 + $0x968] ss:$16 sps:$4 sm:$0xff]   ;;  %v8773_v20 = vld [vmem:[%s9664_s8 + $0x984] ss:$16 sps:$4 sm:$0xff]  }
 0x3e9   : > { %4193 = vmatpush1.bf16.msra.mxu0 %v8687_v45  ;;  %4275 = vmatpush1.bf16.msra.mxu1 %v8690_v46  ;;  %v8776_v45 = vld [vmem:[%s9664_s8 + $0x98c] ss:$16 sps:$4 sm:$0xff]   ;;  %v8771_v46 = vld [vmem:[%s9664_s8 + $0x980] ss:$16 sps:$4 sm:$0xff]  }
 0x3ea   : > { %4194 = vmatprep.subr.bf16.mxu0 %v8695_v27  ;;  %4276 = vmatprep.subr.bf16.mxu1 %v8698_v48  ;;  %v8779_v27 = vld [vmem:[%s9664_s8 + $0x9a4] ss:$16 sps:$4 sm:$0xff]   ;;  %v8782_v48 = vld [vmem:[%s9664_s8 + $0x9ac] ss:$16 sps:$4 sm:$0xff]  }
 0x3ed   : > { %4195 = vmatpush1.bf16.msra.mxu0 %v8693_v49  ;;  %4277 = vmatpush1.bf16.msra.mxu1 %v8696_v50  ;;  %v8777_v49 = vld [vmem:[%s9664_s8 + $0x9a0] ss:$16 sps:$4 sm:$0xff]   ;;  %v8780_v50 = vld [vmem:[%s9664_s8 + $0x9a8] ss:$16 sps:$4 sm:$0xff]  }
 0x3ee   : > { %5097 = vmatprep.subr.bf16.mxu0 %v8701_v52  ;;  %5179 = vmatprep.subr.bf16.mxu1 %v8704_v53  ;;  %v8788_v52 = vld [vmem:[%s9664_s8 + $0x9cc] ss:$16 sps:$4 sm:$0xff]   ;;  %v8783_v53 = vld [vmem:[%s9664_s8 + $0x9c0] ss:$16 sps:$4 sm:$0xff]  }
 0x3f0   : > { %4197 = vmatmul.mubr.bf16.vlgmr.msra.gmra.mrb[12].mxu0 %v3329_v56  ;;  %4279 = vmatmul.mubr.bf16.vlgmr.msra.gmra.mrb[12].mxu1 %v3329_v56  ;;  %v8789_v56 = vld [vmem:[%s9664_s8 + $0x9e0] ss:$16 sps:$4 sm:$0xff]  }
 0x3f1   : > { %5098 = vmatpush1.bf16.msra.mxu0 %v8699_v33  ;;  %5180 = vmatpush1.bf16.msra.mxu1 %v8702_v55  ;;  %v8791_v33 = vld [vmem:[%s9664_s8 + $0x9e4] ss:$16 sps:$4 sm:$0xff]   ;;  %v8794_v55 = vld [vmem:[%s9664_s8 + $0x9ec] ss:$16 sps:$4 sm:$0xff]  }
 0x3f2   : > { %5099 = vmatprep.subr.bf16.mxu0 %v8707_v57  ;;  %5181 = vmatprep.subr.bf16.mxu1 %v8710_v58  ;;  %v8792_v57 = vld [vmem:[%s9664_s8 + $0x9e8] ss:$16 sps:$4 sm:$0xff]   ;;  %v7217_v58 = vld [vmem:[%s9656_s12 + $0x40] sm:$0xff] }
 0x3f3   : > { %5129 = vmatprep.mubr.bf16.mxu0 %v4302_v59  ;;  %5211 = vmatprep.mubr.bf16.mxu1 %v4302_v59  ;;  %v8797_v59 = vld [vmem:[%s9664_s8 + $0xa04] ss:$16 sps:$4 sm:$0xff]  }
 0x3f5   : > { %5100 = vmatpush1.bf16.msra.mxu0 %v8705_v60  ;;  %5182 = vmatpush1.bf16.msra.mxu1 %v8708_v61  ;;  %v8800_v60 = vld [vmem:[%s9664_s8 + $0xa0c] ss:$16 sps:$4 sm:$0xff]   ;;  %v4301_v61 = vpack.c.bf16 %v7217_v58, %v7217_v58  ;;  %v8881_v58 = vld [vmem:[%s9664_s8 + $0xbc4] ss:$16 sps:$4 sm:$0xff]  }
 0x3f6   : > { %5101 = vmatprep.subr.bf16.mxu0 %v8713_v62  ;;  %5183 = vmatprep.subr.bf16.mxu1 %v8716_v63  ;;  %v7220_v62 = vld [vmem:[%s9656_s12 + $0x58] sm:$0xff]  ;;  %v8795_v63 = vld [vmem:[%s9664_s8 + $0xa00] ss:$16 sps:$4 sm:$0xff]  }
 0x3f9   : > { %5102 = vmatpush1.bf16.msra.mxu0 %v8711_v0  ;;  %5184 = vmatpush1.bf16.msra.mxu1 %v8714_v1  ;;  %v8798_v0 = vld [vmem:[%s9664_s8 + $0xa08] ss:$16 sps:$4 sm:$0xff]   ;;  %v8803_v1 = vld [vmem:[%s9664_s8 + $0xa24] ss:$16 sps:$4 sm:$0xff]  }
 0x3fa   : > { %5103 = vmatprep.subr.bf16.mxu0 %v8719_v2  ;;  %5185 = vmatprep.subr.bf16.mxu1 %v8722_v3  ;;  %v8806_v2 = vld [vmem:[%s9664_s8 + $0xa2c] ss:$16 sps:$4 sm:$0xff]   ;;  %v4304_v3 = vpack.c.bf16 %v7220_v62, %v7220_v62  ;;  %v8887_v62 = vld [vmem:[%s9664_s8 + $0xbe4] ss:$16 sps:$4 sm:$0xff]  }
 0x3fd   : > { %5104 = vmatpush1.bf16.msra.mxu0 %v8717_v4  ;;  %5186 = vmatpush1.bf16.msra.mxu1 %v8720_v5  ;;  %v8801_v4 = vld [vmem:[%s9664_s8 + $0xa20] ss:$16 sps:$4 sm:$0xff]   ;;  %v8804_v5 = vld [vmem:[%s9664_s8 + $0xa28] ss:$16 sps:$4 sm:$0xff]  }
 0x3fe   : > { %5105 = vmatprep.subr.bf16.mxu0 %v8725_v6  ;;  %5187 = vmatprep.subr.bf16.mxu1 %v8728_v7  ;;  %v8809_v6 = vld [vmem:[%s9664_s8 + $0xa44] ss:$16 sps:$4 sm:$0xff]   ;;  %v8812_v7 = vld [vmem:[%s9664_s8 + $0xa4c] ss:$16 sps:$4 sm:$0xff]  }
 0x401   : > { %5106 = vmatpush1.bf16.msra.mxu0 %v8723_v8  ;;  %5188 = vmatpush1.bf16.msra.mxu1 %v8726_v9  ;;  %v8807_v8 = vld [vmem:[%s9664_s8 + $0xa40] ss:$16 sps:$4 sm:$0xff]   ;;  %v8810_v9 = vld [vmem:[%s9664_s8 + $0xa48] ss:$16 sps:$4 sm:$0xff]  }
 0x402   : > { %5107 = vmatprep.subr.bf16.mxu0 %v8731_v10  ;;  %5189 = vmatprep.subr.bf16.mxu1 %v8734_v16  ;;  %v8815_v10 = vld [vmem:[%s9664_s8 + $0xa64] ss:$16 sps:$4 sm:$0xff]   ;;  %v8818_v16 = vld [vmem:[%s9664_s8 + $0xa6c] ss:$16 sps:$4 sm:$0xff]  }
 0x405   : > { %5108 = vmatpush1.bf16.msra.mxu0 %v8729_v17  ;;  %5190 = vmatpush1.bf16.msra.mxu1 %v8732_v18  ;;  %v8813_v17 = vld [vmem:[%s9664_s8 + $0xa60] ss:$16 sps:$4 sm:$0xff]   ;;  %v8816_v18 = vld [vmem:[%s9664_s8 + $0xa68] ss:$16 sps:$4 sm:$0xff]  }
 0x406   : > { %5109 = vmatprep.subr.bf16.mxu0 %v8737_v19  ;;  %5191 = vmatprep.subr.bf16.mxu1 %v8740_v21  ;;  %v8821_v19 = vld [vmem:[%s9664_s8 + $0xa84] ss:$16 sps:$4 sm:$0xff]   ;;  %v8824_v21 = vld [vmem:[%s9664_s8 + $0xa8c] ss:$16 sps:$4 sm:$0xff]  }
 0x409   : > { %5110 = vmatpush1.bf16.msra.mxu0 %v8735_v22  ;;  %5192 = vmatpush1.bf16.msra.mxu1 %v8738_v23  ;;  %v8819_v22 = vld [vmem:[%s9664_s8 + $0xa80] ss:$16 sps:$4 sm:$0xff]   ;;  %v8822_v23 = vld [vmem:[%s9664_s8 + $0xa88] ss:$16 sps:$4 sm:$0xff]  }
 0x40a   : > { %5111 = vmatprep.subr.bf16.mxu0 %v8743_v24  ;;  %5193 = vmatprep.subr.bf16.mxu1 %v8746_v25  ;;  %v8827_v24 = vld [vmem:[%s9664_s8 + $0xaa4] ss:$16 sps:$4 sm:$0xff]   ;;  %v8830_v25 = vld [vmem:[%s9664_s8 + $0xaac] ss:$16 sps:$4 sm:$0xff]  }
 0x40d   : > { %5112 = vmatpush1.bf16.msra.mxu0 %v8741_v26  ;;  %5194 = vmatpush1.bf16.msra.mxu1 %v8744_v29  ;;  %v8825_v26 = vld [vmem:[%s9664_s8 + $0xaa0] ss:$16 sps:$4 sm:$0xff]   ;;  %v8828_v29 = vld [vmem:[%s9664_s8 + $0xaa8] ss:$16 sps:$4 sm:$0xff]  }
 0x40e   : > { %5113 = vmatprep.subr.bf16.mxu0 %v8749_v30  ;;  %5195 = vmatprep.subr.bf16.mxu1 %v8752_v31  ;;  %v8833_v30 = vld [vmem:[%s9664_s8 + $0xac4] ss:$16 sps:$4 sm:$0xff]   ;;  %v8836_v31 = vld [vmem:[%s9664_s8 + $0xacc] ss:$16 sps:$4 sm:$0xff]  }
 0x411   : > { %5114 = vmatpush1.bf16.msra.mxu0 %v8747_v32  ;;  %5196 = vmatpush1.bf16.msra.mxu1 %v8750_v11  ;;  %v8831_v32 = vld [vmem:[%s9664_s8 + $0xac0] ss:$16 sps:$4 sm:$0xff]   ;;  %v8834_v11 = vld [vmem:[%s9664_s8 + $0xac8] ss:$16 sps:$4 sm:$0xff]  }
 0x412   : > { %5115 = vmatprep.subr.bf16.mxu0 %v8755_v34  ;;  %5197 = vmatprep.subr.bf16.mxu1 %v8758_v35  ;;  %v8839_v34 = vld [vmem:[%s9664_s8 + $0xae4] ss:$16 sps:$4 sm:$0xff]   ;;  %v8842_v35 = vld [vmem:[%s9664_s8 + $0xaec] ss:$16 sps:$4 sm:$0xff]  }
 0x415   : > { %5116 = vmatpush1.bf16.msra.mxu0 %v8753_v36  ;;  %5198 = vmatpush1.bf16.msra.mxu1 %v8756_v37  ;;  %v8837_v36 = vld [vmem:[%s9664_s8 + $0xae0] ss:$16 sps:$4 sm:$0xff]   ;;  %v8840_v37 = vld [vmem:[%s9664_s8 + $0xae8] ss:$16 sps:$4 sm:$0xff]  }
 0x416   : > { %5117 = vmatprep.subr.bf16.mxu0 %v8761_v13  ;;  %5199 = vmatprep.subr.bf16.mxu1 %v8764_v38  ;;  %v8845_v13 = vld [vmem:[%s9664_s8 + $0xb04] ss:$16 sps:$4 sm:$0xff]   ;;  %v8848_v38 = vld [vmem:[%s9664_s8 + $0xb0c] ss:$16 sps:$4 sm:$0xff]  }
 0x419   : > { %5118 = vmatpush1.bf16.msra.mxu0 %v8759_v39  ;;  %5200 = vmatpush1.bf16.msra.mxu1 %v8762_v40  ;;  %v8843_v39 = vld [vmem:[%s9664_s8 + $0xb00] ss:$16 sps:$4 sm:$0xff]   ;;  %v8846_v40 = vld [vmem:[%s9664_s8 + $0xb08] ss:$16 sps:$4 sm:$0xff]  }
 0x41a   : > { %5119 = vmatprep.subr.bf16.mxu0 %v8767_v41  ;;  %5201 = vmatprep.subr.bf16.mxu1 %v8770_v42  ;;  %v8851_v41 = vld [vmem:[%s9664_s8 + $0xb24] ss:$16 sps:$4 sm:$0xff]   ;;  %v8854_v42 = vld [vmem:[%s9664_s8 + $0xb2c] ss:$16 sps:$4 sm:$0xff]  }
 0x41d   : > { %5120 = vmatpush1.bf16.msra.mxu0 %v8765_v43  ;;  %5202 = vmatpush1.bf16.msra.mxu1 %v8768_v44  ;;  %v8849_v43 = vld [vmem:[%s9664_s8 + $0xb20] ss:$16 sps:$4 sm:$0xff]   ;;  %v8852_v44 = vld [vmem:[%s9664_s8 + $0xb28] ss:$16 sps:$4 sm:$0xff]  }
 0x41e   : > { %5121 = vmatprep.subr.bf16.mxu0 %v8773_v20  ;;  %5203 = vmatprep.subr.bf16.mxu1 %v8776_v45  ;;  %v8857_v20 = vld [vmem:[%s9664_s8 + $0xb44] ss:$16 sps:$4 sm:$0xff]   ;;  %v8860_v45 = vld [vmem:[%s9664_s8 + $0xb4c] ss:$16 sps:$4 sm:$0xff]  }
 0x421   : > { %5122 = vmatpush1.bf16.msra.mxu0 %v8771_v46  ;;  %5204 = vmatpush1.bf16.msra.mxu1 %v8774_v47  ;;  %v8855_v46 = vld [vmem:[%s9664_s8 + $0xb40] ss:$16 sps:$4 sm:$0xff]   ;;  %v8858_v47 = vld [vmem:[%s9664_s8 + $0xb48] ss:$16 sps:$4 sm:$0xff]  }
 0x422   : > { %5123 = vmatprep.subr.bf16.mxu0 %v8779_v27  ;;  %5205 = vmatprep.subr.bf16.mxu1 %v8782_v48  ;;  %v8863_v27 = vld [vmem:[%s9664_s8 + $0xb64] ss:$16 sps:$4 sm:$0xff]   ;;  %v8866_v48 = vld [vmem:[%s9664_s8 + $0xb6c] ss:$16 sps:$4 sm:$0xff]  }
 0x425   : > { %5124 = vmatpush1.bf16.msra.mxu0 %v8777_v49  ;;  %5206 = vmatpush1.bf16.msra.mxu1 %v8780_v50  ;;  %v8861_v49 = vld [vmem:[%s9664_s8 + $0xb60] ss:$16 sps:$4 sm:$0xff]   ;;  %v8864_v50 = vld [vmem:[%s9664_s8 + $0xb68] ss:$16 sps:$4 sm:$0xff]  }
 0x426   : > { %5125 = vmatprep.subr.bf16.mxu0 %v8785_v51  ;;  %5207 = vmatprep.subr.bf16.mxu1 %v8788_v52  ;;  %v8869_v51 = vld [vmem:[%s9664_s8 + $0xb84] ss:$16 sps:$4 sm:$0xff]   ;;  %v8872_v52 = vld [vmem:[%s9664_s8 + $0xb8c] ss:$16 sps:$4 sm:$0xff]  }
 0x429   : > { %5126 = vmatpush1.bf16.msra.mxu0 %v8783_v53  ;;  %5208 = vmatpush1.bf16.msra.mxu1 %v8786_v54  ;;  %v8867_v53 = vld [vmem:[%s9664_s8 + $0xb80] ss:$16 sps:$4 sm:$0xff]   ;;  %v8870_v54 = vld [vmem:[%s9664_s8 + $0xb88] ss:$16 sps:$4 sm:$0xff]  }
 0x42a   : > { %5127 = vmatprep.subr.bf16.mxu0 %v8791_v33  ;;  %5209 = vmatprep.subr.bf16.mxu1 %v8794_v55  ;;  %v8875_v33 = vld [vmem:[%s9664_s8 + $0xba4] ss:$16 sps:$4 sm:$0xff]   ;;  %v8878_v55 = vld [vmem:[%s9664_s8 + $0xbac] ss:$16 sps:$4 sm:$0xff]  }
 0x42d   : > { %5128 = vmatpush1.bf16.msra.mxu0 %v8789_v56  ;;  %5210 = vmatpush1.bf16.msra.mxu1 %v8792_v57  ;;  %v8873_v56 = vld [vmem:[%s9664_s8 + $0xba0] ss:$16 sps:$4 sm:$0xff]   ;;  %v8876_v57 = vld [vmem:[%s9664_s8 + $0xba8] ss:$16 sps:$4 sm:$0xff]  }
 0x42e   : > { %5138 = vmatprep.subr.bf16.mxu0 %v8797_v59  ;;  %5220 = vmatprep.subr.bf16.mxu1 %v8800_v60  ;;  %v8884_v59 = vld [vmem:[%s9664_s8 + $0xbcc] ss:$16 sps:$4 sm:$0xff]   ;;  %v8879_v60 = vld [vmem:[%s9664_s8 + $0xbc0] ss:$16 sps:$4 sm:$0xff]  }
 0x430   : > { %5130 = vmatmul.mubr.bf16.vlgmr.msra.gmra.mrb[16].mxu0 %v4301_v61  ;;  %5212 = vmatmul.mubr.bf16.vlgmr.msra.gmra.mrb[16].mxu1 %v4301_v61  ;;  %v8882_v61 = vld [vmem:[%s9664_s8 + $0xbc8] ss:$16 sps:$4 sm:$0xff]  }
 0x431   : > { %5139 = vmatpush1.bf16.msra.mxu0 %v8795_v63  ;;  %5221 = vmatpush1.bf16.msra.mxu1 %v8798_v0  ;;  %v8890_v63 = vld [vmem:[%s9664_s8 + $0xbec] ss:$16 sps:$4 sm:$0xff]   ;;  %v8885_v0 = vld [vmem:[%s9664_s8 + $0xbe0] ss:$16 sps:$4 sm:$0xff]  }
 0x432   : > { %5140 = vmatprep.subr.bf16.mxu0 %v8803_v1  ;;  %5222 = vmatprep.subr.bf16.mxu1 %v8806_v2  ;;  %v8888_v1 = vld [vmem:[%s9664_s8 + $0xbe8] ss:$16 sps:$4 sm:$0xff]   ;;  %v7219_v2 = vld [vmem:[%s9656_s12 + $0x50] sm:$0xff] }
 0x433   : > { %5170 = vmatprep.mubr.bf16.mxu0 %v4304_v3  ;;  %5252 = vmatprep.mubr.bf16.mxu1 %v4304_v3  ;;  %v8893_v3 = vld [vmem:[%s9675_s27 + $0x804] ss:$16 sps:$4 sm:$0xff]  }
 0x435   : > { %5141 = vmatpush1.bf16.msra.mxu0 %v8801_v4  ;;  %5223 = vmatpush1.bf16.msra.mxu1 %v8804_v5  ;;  %v8896_v4 = vld [vmem:[%s9675_s27 + $0x80c] ss:$16 sps:$4 sm:$0xff]   ;;  %v4303_v5 = vpack.c.bf16 %v7219_v2, %v7219_v2 }
 0x436   : > { %5142 = vmatprep.subr.bf16.mxu0 %v8809_v6  ;;  %5224 = vmatprep.subr.bf16.mxu1 %v8812_v7  ;;  %v8891_v6 = vld [vmem:[%s9675_s27 + $0x800] ss:$16 sps:$4 sm:$0xff]   ;;  %v8894_v7 = vld [vmem:[%s9675_s27 + $0x808] ss:$16 sps:$4 sm:$0xff]  }
 0x439   : > { %5143 = vmatpush1.bf16.msra.mxu0 %v8807_v8  ;;  %5225 = vmatpush1.bf16.msra.mxu1 %v8810_v9  ;;  %v8899_v8 = vld [vmem:[%s9675_s27 + $0x824] ss:$16 sps:$4 sm:$0xff]   ;;  %v8902_v9 = vld [vmem:[%s9675_s27 + $0x82c] ss:$16 sps:$4 sm:$0xff]  }
 0x43a   : > { %5144 = vmatprep.subr.bf16.mxu0 %v8815_v10  ;;  %5226 = vmatprep.subr.bf16.mxu1 %v8818_v16  ;;  %v8897_v10 = vld [vmem:[%s9675_s27 + $0x820] ss:$16 sps:$4 sm:$0xff]   ;;  %v8900_v16 = vld [vmem:[%s9675_s27 + $0x828] ss:$16 sps:$4 sm:$0xff]  }
 0x43d   : > { %5145 = vmatpush1.bf16.msra.mxu0 %v8813_v17  ;;  %5227 = vmatpush1.bf16.msra.mxu1 %v8816_v18  ;;  %v8905_v17 = vld [vmem:[%s9675_s27 + $0x844] ss:$16 sps:$4 sm:$0xff]   ;;  %v8908_v18 = vld [vmem:[%s9675_s27 + $0x84c] ss:$16 sps:$4 sm:$0xff]  }
 0x43e   : > { %5146 = vmatprep.subr.bf16.mxu0 %v8821_v19  ;;  %5228 = vmatprep.subr.bf16.mxu1 %v8824_v21  ;;  %v8903_v19 = vld [vmem:[%s9675_s27 + $0x840] ss:$16 sps:$4 sm:$0xff]   ;;  %v8906_v21 = vld [vmem:[%s9675_s27 + $0x848] ss:$16 sps:$4 sm:$0xff]  }
 0x441   : > { %5147 = vmatpush1.bf16.msra.mxu0 %v8819_v22  ;;  %5229 = vmatpush1.bf16.msra.mxu1 %v8822_v23  ;;  %v8911_v22 = vld [vmem:[%s9675_s27 + $0x864] ss:$16 sps:$4 sm:$0xff]   ;;  %v8914_v23 = vld [vmem:[%s9675_s27 + $0x86c] ss:$16 sps:$4 sm:$0xff]  }
 0x442   : > { %5148 = vmatprep.subr.bf16.mxu0 %v8827_v24  ;;  %5230 = vmatprep.subr.bf16.mxu1 %v8830_v25  ;;  %v8909_v24 = vld [vmem:[%s9675_s27 + $0x860] ss:$16 sps:$4 sm:$0xff]   ;;  %v8912_v25 = vld [vmem:[%s9675_s27 + $0x868] ss:$16 sps:$4 sm:$0xff]  }
 0x445   : > { %5149 = vmatpush1.bf16.msra.mxu0 %v8825_v26  ;;  %5231 = vmatpush1.bf16.msra.mxu1 %v8828_v29  ;;  %v8917_v26 = vld [vmem:[%s9675_s27 + $0x884] ss:$16 sps:$4 sm:$0xff]   ;;  %v8920_v29 = vld [vmem:[%s9675_s27 + $0x88c] ss:$16 sps:$4 sm:$0xff]  }
 0x446   : > { %5150 = vmatprep.subr.bf16.mxu0 %v8833_v30  ;;  %5232 = vmatprep.subr.bf16.mxu1 %v8836_v31  ;;  %v8915_v30 = vld [vmem:[%s9675_s27 + $0x880] ss:$16 sps:$4 sm:$0xff]   ;;  %v8918_v31 = vld [vmem:[%s9675_s27 + $0x888] ss:$16 sps:$4 sm:$0xff]  }
 0x449   : > { %5151 = vmatpush1.bf16.msra.mxu0 %v8831_v32  ;;  %5233 = vmatpush1.bf16.msra.mxu1 %v8834_v11  ;;  %v8923_v32 = vld [vmem:[%s9675_s27 + $0x8a4] ss:$16 sps:$4 sm:$0xff]   ;;  %v8926_v11 = vld [vmem:[%s9675_s27 + $0x8ac] ss:$16 sps:$4 sm:$0xff]  }
 0x44a   : > { %5152 = vmatprep.subr.bf16.mxu0 %v8839_v34  ;;  %5234 = vmatprep.subr.bf16.mxu1 %v8842_v35  ;;  %v8921_v34 = vld [vmem:[%s9675_s27 + $0x8a0] ss:$16 sps:$4 sm:$0xff]   ;;  %v8924_v35 = vld [vmem:[%s9675_s27 + $0x8a8] ss:$16 sps:$4 sm:$0xff]  }
 0x44d   : > { %5153 = vmatpush1.bf16.msra.mxu0 %v8837_v36  ;;  %5235 = vmatpush1.bf16.msra.mxu1 %v8840_v37  ;;  %v8929_v36 = vld [vmem:[%s9675_s27 + $0x8c4] ss:$16 sps:$4 sm:$0xff]   ;;  %v8932_v37 = vld [vmem:[%s9675_s27 + $0x8cc] ss:$16 sps:$4 sm:$0xff]  }
 0x44e   : > { %5154 = vmatprep.subr.bf16.mxu0 %v8845_v13  ;;  %5236 = vmatprep.subr.bf16.mxu1 %v8848_v38  ;;  %v8927_v13 = vld [vmem:[%s9675_s27 + $0x8c0] ss:$16 sps:$4 sm:$0xff]   ;;  %v8930_v38 = vld [vmem:[%s9675_s27 + $0x8c8] ss:$16 sps:$4 sm:$0xff]  }
 0x451   : > { %5155 = vmatpush1.bf16.msra.mxu0 %v8843_v39  ;;  %5237 = vmatpush1.bf16.msra.mxu1 %v8846_v40  ;;  %v8935_v39 = vld [vmem:[%s9675_s27 + $0x8e4] ss:$16 sps:$4 sm:$0xff]   ;;  %v8938_v40 = vld [vmem:[%s9675_s27 + $0x8ec] ss:$16 sps:$4 sm:$0xff]  }
 0x452   : > { %5156 = vmatprep.subr.bf16.mxu0 %v8851_v41  ;;  %5238 = vmatprep.subr.bf16.mxu1 %v8854_v42  ;;  %v8933_v41 = vld [vmem:[%s9675_s27 + $0x8e0] ss:$16 sps:$4 sm:$0xff]   ;;  %v8936_v42 = vld [vmem:[%s9675_s27 + $0x8e8] ss:$16 sps:$4 sm:$0xff]  }
 0x455   : > { %5157 = vmatpush1.bf16.msra.mxu0 %v8849_v43  ;;  %5239 = vmatpush1.bf16.msra.mxu1 %v8852_v44  ;;  %v8941_v43 = vld [vmem:[%s9675_s27 + $0x904] ss:$16 sps:$4 sm:$0xff]   ;;  %v8944_v44 = vld [vmem:[%s9675_s27 + $0x90c] ss:$16 sps:$4 sm:$0xff]  }
 0x456   : > { %5158 = vmatprep.subr.bf16.mxu0 %v8857_v20  ;;  %5240 = vmatprep.subr.bf16.mxu1 %v8860_v45  ;;  %v8939_v20 = vld [vmem:[%s9675_s27 + $0x900] ss:$16 sps:$4 sm:$0xff]   ;;  %v8942_v45 = vld [vmem:[%s9675_s27 + $0x908] ss:$16 sps:$4 sm:$0xff]  }
 0x459   : > { %5159 = vmatpush1.bf16.msra.mxu0 %v8855_v46  ;;  %5241 = vmatpush1.bf16.msra.mxu1 %v8858_v47  ;;  %v8947_v46 = vld [vmem:[%s9675_s27 + $0x924] ss:$16 sps:$4 sm:$0xff]   ;;  %v8950_v47 = vld [vmem:[%s9675_s27 + $0x92c] ss:$16 sps:$4 sm:$0xff]  }
 0x45a   : > { %5160 = vmatprep.subr.bf16.mxu0 %v8863_v27  ;;  %5242 = vmatprep.subr.bf16.mxu1 %v8866_v48  ;;  %v8945_v27 = vld [vmem:[%s9675_s27 + $0x920] ss:$16 sps:$4 sm:$0xff]   ;;  %v8948_v48 = vld [vmem:[%s9675_s27 + $0x928] ss:$16 sps:$4 sm:$0xff]  }
 0x45d   : > { %5161 = vmatpush1.bf16.msra.mxu0 %v8861_v49  ;;  %5243 = vmatpush1.bf16.msra.mxu1 %v8864_v50  ;;  %v8953_v49 = vld [vmem:[%s9675_s27 + $0x944] ss:$16 sps:$4 sm:$0xff]   ;;  %v8956_v50 = vld [vmem:[%s9675_s27 + $0x94c] ss:$16 sps:$4 sm:$0xff]  }
 0x45e   : > { %5162 = vmatprep.subr.bf16.mxu0 %v8869_v51  ;;  %5244 = vmatprep.subr.bf16.mxu1 %v8872_v52  ;;  %v8951_v51 = vld [vmem:[%s9675_s27 + $0x940] ss:$16 sps:$4 sm:$0xff]   ;;  %v8954_v52 = vld [vmem:[%s9675_s27 + $0x948] ss:$16 sps:$4 sm:$0xff]  }
 0x461   : > { %5163 = vmatpush1.bf16.msra.mxu0 %v8867_v53  ;;  %5245 = vmatpush1.bf16.msra.mxu1 %v8870_v54  ;;  %v8959_v53 = vld [vmem:[%s9675_s27 + $0x964] ss:$16 sps:$4 sm:$0xff]   ;;  %v8962_v54 = vld [vmem:[%s9675_s27 + $0x96c] ss:$16 sps:$4 sm:$0xff]  }
 0x462   : > { %5164 = vmatprep.subr.bf16.mxu0 %v8875_v33  ;;  %5246 = vmatprep.subr.bf16.mxu1 %v8878_v55  ;;  %v8957_v33 = vld [vmem:[%s9675_s27 + $0x960] ss:$16 sps:$4 sm:$0xff]   ;;  %v8960_v55 = vld [vmem:[%s9675_s27 + $0x968] ss:$16 sps:$4 sm:$0xff]  }
 0x465   : > { %5165 = vmatpush1.bf16.msra.mxu0 %v8873_v56  ;;  %5247 = vmatpush1.bf16.msra.mxu1 %v8876_v57  ;;  %v8965_v56 = vld [vmem:[%s9675_s27 + $0x984] ss:$16 sps:$4 sm:$0xff]   ;;  %v8968_v57 = vld [vmem:[%s9675_s27 + $0x98c] ss:$16 sps:$4 sm:$0xff]  }
 0x466   : > { %5166 = vmatprep.subr.bf16.mxu0 %v8881_v58  ;;  %5248 = vmatprep.subr.bf16.mxu1 %v8884_v59  ;;  %v8963_v58 = vld [vmem:[%s9675_s27 + $0x980] ss:$16 sps:$4 sm:$0xff]   ;;  %v8966_v59 = vld [vmem:[%s9675_s27 + $0x988] ss:$16 sps:$4 sm:$0xff]  }
 0x469   : > { %5167 = vmatpush1.bf16.msra.mxu0 %v8879_v60  ;;  %5249 = vmatpush1.bf16.msra.mxu1 %v8882_v61  ;;  %v8971_v60 = vld [vmem:[%s9675_s27 + $0x9a4] ss:$16 sps:$4 sm:$0xff]   ;;  %v8974_v61 = vld [vmem:[%s9675_s27 + $0x9ac] ss:$16 sps:$4 sm:$0xff]  }
 0x46a   : > { %5168 = vmatprep.subr.bf16.mxu0 %v8887_v62  ;;  %5250 = vmatprep.subr.bf16.mxu1 %v8890_v63  ;;  %v8969_v62 = vld [vmem:[%s9675_s27 + $0x9a0] ss:$16 sps:$4 sm:$0xff]   ;;  %v8972_v63 = vld [vmem:[%s9675_s27 + $0x9a8] ss:$16 sps:$4 sm:$0xff]  }
 0x46d   : > { %5169 = vmatpush1.bf16.msra.mxu0 %v8885_v0  ;;  %5251 = vmatpush1.bf16.msra.mxu1 %v8888_v1  ;;  %v7084_v0 = vld [vmem:[%s10159_s24 + $0x4] sm:$0xf] }
 0x46e   : > { %6061 = vmatprep.subr.bf16.mxu0 %v8893_v3  ;;  %6143 = vmatprep.subr.bf16.mxu1 %v8896_v4  ;;  %v3466_v1 = vrot.slane %v7084_v0, %v9882_v12  ;;  %v3474_v2 = vrot.slane %v7084_v0, %v9952_v28  ;;  %v3470_v3 = vrot.slane %v7084_v0, %v9888_v14 }
 0x46f   : > { %v3478_v4 = vrot.slane %v7084_v0, %v9891_v15  ;;  %v8999_v0 = vld [vmem:[%s9675_s27 + $0xa40] ss:$16 sps:$4 sm:$0xff]  }
 0x470   : > { %5171 = vmatmul.mubr.bf16.vlgmr.msra.gmra.mrb[16].mxu0 %v4303_v5  ;;  %5253 = vmatmul.mubr.bf16.vlgmr.msra.gmra.mrb[16].mxu1 %v4303_v5  ;;  %v8977_v5 = vld [vmem:[%s9675_s27 + $0x9c4] ss:$16 sps:$4 sm:$0xff]  }
 0x471   : > { %6062 = vmatpush1.bf16.msra.mxu0 %v8891_v6  ;;  %6144 = vmatpush1.bf16.msra.mxu1 %v8894_v7  ;;  %v8980_v6 = vld [vmem:[%s9675_s27 + $0x9cc] ss:$16 sps:$4 sm:$0xff]   ;;  %v8975_v7 = vld [vmem:[%s9675_s27 + $0x9c0] ss:$16 sps:$4 sm:$0xff]  }
 0x472   : > { %6063 = vmatprep.subr.bf16.mxu0 %v8899_v8  ;;  %6145 = vmatprep.subr.bf16.mxu1 %v8902_v9  ;;  %v8978_v8 = vld [vmem:[%s9675_s27 + $0x9c8] ss:$16 sps:$4 sm:$0xff]  }
 0x475   : > { %6064 = vmatpush1.bf16.msra.mxu0 %v8897_v10  ;;  %6146 = vmatpush1.bf16.msra.mxu1 %v8900_v16 }
 0x476   : > { %6065 = vmatprep.subr.bf16.mxu0 %v8905_v17  ;;  %6147 = vmatprep.subr.bf16.mxu1 %v8908_v18 }
 0x479   : > { %6066 = vmatpush1.bf16.msra.mxu0 %v8903_v19  ;;  %6148 = vmatpush1.bf16.msra.mxu1 %v8906_v21 }
 0x47a   : > { %6067 = vmatprep.subr.bf16.mxu0 %v8911_v22  ;;  %6149 = vmatprep.subr.bf16.mxu1 %v8914_v23 }
 0x47d   : > { %6068 = vmatpush1.bf16.msra.mxu0 %v8909_v24  ;;  %6150 = vmatpush1.bf16.msra.mxu1 %v8912_v25  ;;  %v8983_v25 = vld [vmem:[%s9675_s27 + $0x9e4] ss:$16 sps:$4 sm:$0xff]  }
 0x47e   : > { %6069 = vmatprep.subr.bf16.mxu0 %v8917_v26  ;;  %6151 = vmatprep.subr.bf16.mxu1 %v8920_v29  ;;  %v8986_v26 = vld [vmem:[%s9675_s27 + $0x9ec] ss:$16 sps:$4 sm:$0xff]  }
 0x481   : > { %6070 = vmatpush1.bf16.msra.mxu0 %v8915_v30  ;;  %6152 = vmatpush1.bf16.msra.mxu1 %v8918_v31 }
 0x482   : > { %6071 = vmatprep.subr.bf16.mxu0 %v8923_v32  ;;  %6153 = vmatprep.subr.bf16.mxu1 %v8926_v11  ;;  %v8981_v11 = vld [vmem:[%s9675_s27 + $0x9e0] ss:$16 sps:$4 sm:$0xff]  }
 0x485   : > { %6072 = vmatpush1.bf16.msra.mxu0 %v8921_v34  ;;  %6154 = vmatpush1.bf16.msra.mxu1 %v8924_v35 }
 0x486   : > { %6073 = vmatprep.subr.bf16.mxu0 %v8929_v36  ;;  %6155 = vmatprep.subr.bf16.mxu1 %v8932_v37  ;;  %v8984_v36 = vld [vmem:[%s9675_s27 + $0x9e8] ss:$16 sps:$4 sm:$0xff]   ;;  %v8989_v37 = vld [vmem:[%s9675_s27 + $0xa04] ss:$16 sps:$4 sm:$0xff]  }
 0x489   : > { %6074 = vmatpush1.bf16.msra.mxu0 %v8927_v13  ;;  %6156 = vmatpush1.bf16.msra.mxu1 %v8930_v38  ;;  %v8992_v13 = vld [vmem:[%s9675_s27 + $0xa0c] ss:$16 sps:$4 sm:$0xff]  }
 0x48a   : > { %6075 = vmatprep.subr.bf16.mxu0 %v8935_v39  ;;  %6157 = vmatprep.subr.bf16.mxu1 %v8938_v40  ;;  %v10468_v38 = vld [vmem:[%s9673_s7 + $0x8] sm:$0xf] }
 0x48b   : > { %v4440_v39 = vrot.slane %v10468_v38, %v9882_v12  ;;  %v4444_v40 = vrot.slane %v10468_v38, %v9888_v14 }
 0x48d   : > { %6076 = vmatpush1.bf16.msra.mxu0 %v8933_v41  ;;  %6158 = vmatpush1.bf16.msra.mxu1 %v8936_v42  ;;  %v4452_v41 = vrot.slane %v10468_v38, %v9891_v15 }
 0x48e   : > { %6077 = vmatprep.subr.bf16.mxu0 %v8941_v43  ;;  %6159 = vmatprep.subr.bf16.mxu1 %v8944_v44 }
 0x491   : > { %6078 = vmatpush1.bf16.msra.mxu0 %v8939_v20  ;;  %6160 = vmatpush1.bf16.msra.mxu1 %v8942_v45 }
 0x492   : > { %6079 = vmatprep.subr.bf16.mxu0 %v8947_v46  ;;  %6161 = vmatprep.subr.bf16.mxu1 %v8950_v47 }
 0x495   : > { %6080 = vmatpush1.bf16.msra.mxu0 %v8945_v27  ;;  %6162 = vmatpush1.bf16.msra.mxu1 %v8948_v48 }
 0x496   : > { %6081 = vmatprep.subr.bf16.mxu0 %v8953_v49  ;;  %6163 = vmatprep.subr.bf16.mxu1 %v8956_v50 }
 0x499   : > { %6082 = vmatpush1.bf16.msra.mxu0 %v8951_v51  ;;  %6164 = vmatpush1.bf16.msra.mxu1 %v8954_v52 }
 0x49a   : > { %6083 = vmatprep.subr.bf16.mxu0 %v8959_v53  ;;  %6165 = vmatprep.subr.bf16.mxu1 %v8962_v54 }
 0x49d   : > { %6084 = vmatpush1.bf16.msra.mxu0 %v8957_v33  ;;  %6166 = vmatpush1.bf16.msra.mxu1 %v8960_v55  ;;  %v8987_v33 = vld [vmem:[%s9675_s27 + $0xa00] ss:$16 sps:$4 sm:$0xff]   ;;  %v8990_v55 = vld [vmem:[%s9675_s27 + $0xa08] ss:$16 sps:$4 sm:$0xff]  }
 0x49e   : > { %6085 = vmatprep.subr.bf16.mxu0 %v8965_v56  ;;  %6167 = vmatprep.subr.bf16.mxu1 %v8968_v57  ;;  %v8995_v57 = vld [vmem:[%s9675_s27 + $0xa24] ss:$16 sps:$4 sm:$0xff]  }
 0x4a1   : > { %6086 = vmatpush1.bf16.msra.mxu0 %v8963_v58  ;;  %6168 = vmatpush1.bf16.msra.mxu1 %v8966_v59  ;;  %v8998_v58 = vld [vmem:[%s9675_s27 + $0xa2c] ss:$16 sps:$4 sm:$0xff]  }
 0x4a2   : > { %6087 = vmatprep.subr.bf16.mxu0 %v8971_v60  ;;  %6169 = vmatprep.subr.bf16.mxu1 %v8974_v61  ;;  %v8993_v60 = vld [vmem:[%s9675_s27 + $0xa20] ss:$16 sps:$4 sm:$0xff]   ;;  %v8996_v61 = vld [vmem:[%s9675_s27 + $0xa28] ss:$16 sps:$4 sm:$0xff]  }
 0x4a5   : > { %6088 = vmatpush1.bf16.msra.mxu0 %v8969_v62  ;;  %6170 = vmatpush1.bf16.msra.mxu1 %v8972_v63  ;;  %v9001_v62 = vld [vmem:[%s9675_s27 + $0xa44] ss:$16 sps:$4 sm:$0xff]   ;;  %v9004_v63 = vld [vmem:[%s9675_s27 + $0xa4c] ss:$16 sps:$4 sm:$0xff]  }
 0x4a6   : > { %6089 = vmatprep.subr.bf16.mxu0 %v8977_v5  ;;  %6171 = vmatprep.subr.bf16.mxu1 %v8980_v6  ;;  %v9008_v5 = vld [vmem:[%s9675_s27 + $0xa68] ss:$16 sps:$4 sm:$0xff]   ;;  %v9013_v6 = vld [vmem:[%s9675_s27 + $0xa84] ss:$16 sps:$4 sm:$0xff]  }
 0x4a9   : > { %6090 = vmatpush1.bf16.msra.mxu0 %v8975_v7  ;;  %6172 = vmatpush1.bf16.msra.mxu1 %v8978_v8  ;;  %v9016_v7 = vld [vmem:[%s9675_s27 + $0xa8c] ss:$16 sps:$4 sm:$0xff]   ;;  %v9011_v8 = vld [vmem:[%s9675_s27 + $0xa80] ss:$16 sps:$4 sm:$0xff]  }
 0x4aa   : > { %6091 = vmatprep.subr.bf16.mxu0 %v8983_v25  ;;  %6173 = vmatprep.subr.bf16.mxu1 %v8986_v26  ;;  %v9034_v25 = vld [vmem:[%s9675_s27 + $0xaec] ss:$16 sps:$4 sm:$0xff]   ;;  %v9029_v26 = vld [vmem:[%s9675_s27 + $0xae0] ss:$16 sps:$4 sm:$0xff]  }
 0x4ad   : > { %6092 = vmatpush1.bf16.msra.mxu0 %v8981_v11  ;;  %6174 = vmatpush1.bf16.msra.mxu1 %v8984_v36  ;;  %v9038_v11 = vld [vmem:[%s9675_s27 + $0xb08] ss:$16 sps:$4 sm:$0xff]   ;;  %v9041_v36 = vld [vmem:[%s9675_s27 + $0xb20] ss:$16 sps:$4 sm:$0xff]  }
 0x4ae   : > { %6102 = vmatprep.subr.bf16.mxu0 %v8989_v37  ;;  %6184 = vmatprep.subr.bf16.mxu1 %v8992_v13  ;;  %v9044_v37 = vld [vmem:[%s9675_s27 + $0xb28] ss:$16 sps:$4 sm:$0xff]   ;;  %v9049_v13 = vld [vmem:[%s9675_s27 + $0xb44] ss:$16 sps:$4 sm:$0xff]  }
 0x4c3   : > { %v4198_v9 = vpop.f32.mrb[12].mxu0  ;;  %v4280_v10 = vpop.f32.mrb[12].mxu1 }
 0x4c4   : > { %v7773_v16 = vadd.f32 %v4198_v9, %v3466_v1  ;;  %v7775_v17 = vadd.f32 %v4280_v10, %v3474_v2  ;;  %v4200_v18 = vpop.f32.mrb[13].mxu0  ;;  %v4282_v19 = vpop.f32.mrb[13].mxu1  ;;  %v9002_v1 = vld [vmem:[%s9675_s27 + $0xa48] ss:$16 sps:$4 sm:$0xff]   ;;  %v9007_v2 = vld [vmem:[%s9675_s27 + $0xa64] ss:$16 sps:$4 sm:$0xff]  }
 0x4c5   : > { %v7774_v21 = vadd.f32 %v4200_v18, %v3470_v3  ;;  %v7776_v22 = vadd.f32 %v4282_v19, %v3478_v4  ;;  %v4202_v23 = vpop.f32.mrb[14].mxu0  ;;  %v4284_v24 = vpop.f32.mrb[14].mxu1  ;;  %v9010_v3 = vld [vmem:[%s9675_s27 + $0xa6c] ss:$16 sps:$4 sm:$0xff]   ;;  %v9005_v4 = vld [vmem:[%s9675_s27 + $0xa60] ss:$16 sps:$4 sm:$0xff]  }
 0x4c6   : > { %v4287_v29 = vmax.f32 %v7773_v16, 0.0  ;;  %v4289_v30 = vmax.f32 %v7775_v17, 0.0  ;;  %v4203_v31 = vpop.f32.mrb[15].mxu0  ;;  %v4285_v32 = vpop.f32.mrb[15].mxu1  ;;  %v9014_v9 = vld [vmem:[%s9675_s27 + $0xa88] ss:$16 sps:$4 sm:$0xff]  }
 0x4c7   : > { %v4288_v34 = vmax.f32 %v7774_v21, 0.0  ;;  %v4290_v35 = vmax.f32 %v7776_v22, 0.0  ;;  %v9019_v10 = vld [vmem:[%s9675_s27 + $0xaa4] ss:$16 sps:$4 sm:$0xff]   ;;  %v9022_v16 = vld [vmem:[%s9675_s27 + $0xaac] ss:$16 sps:$4 sm:$0xff]  }
 0x4c8   : > { %7213 = vst [vmem:[%s10176_s30 + $0x20] sm:$0xff] %v4287_v29  ;;  %7215 = vst [vmem:[%s10176_s30 + $0x30] sm:$0xff] %v4289_v30  ;;  %v9017_v17 = vld [vmem:[%s9675_s27 + $0xaa0] ss:$16 sps:$4 sm:$0xff]   ;;  %v9020_v18 = vld [vmem:[%s9675_s27 + $0xaa8] ss:$16 sps:$4 sm:$0xff]  }
 0x4c9   : > { %7214 = vst [vmem:[%s10176_s30 + $0x28] sm:$0xff] %v4288_v34  ;;  %7216 = vst [vmem:[%s10176_s30 + $0x38] sm:$0xff] %v4290_v35  ;;  %v9025_v19 = vld [vmem:[%s9675_s27 + $0xac4] ss:$16 sps:$4 sm:$0xff]   ;;  %v9028_v21 = vld [vmem:[%s9675_s27 + $0xacc] ss:$16 sps:$4 sm:$0xff]  }
 0x4ca   : > { %v9023_v22 = vld [vmem:[%s9675_s27 + $0xac0] ss:$16 sps:$4 sm:$0xff]   ;;  %v9026_v23 = vld [vmem:[%s9675_s27 + $0xac8] ss:$16 sps:$4 sm:$0xff]   ;;  %v9031_v24 = vld [vmem:[%s9675_s27 + $0xae4] ss:$16 sps:$4 sm:$0xff]  }
 0x4cb   : > { %v9032_v29 = vld [vmem:[%s9675_s27 + $0xae8] ss:$16 sps:$4 sm:$0xff]   ;;  %v9037_v30 = vld [vmem:[%s9675_s27 + $0xb04] ss:$16 sps:$4 sm:$0xff]   ;;  %v9040_v31 = vld [vmem:[%s9675_s27 + $0xb0c] ss:$16 sps:$4 sm:$0xff]  }
 0x4cc   : > { %v9035_v32 = vld [vmem:[%s9675_s27 + $0xb00] ss:$16 sps:$4 sm:$0xff]   ;;  %v9043_v34 = vld [vmem:[%s9675_s27 + $0xb24] ss:$16 sps:$4 sm:$0xff]   ;;  %v9046_v35 = vld [vmem:[%s9675_s27 + $0xb2c] ss:$16 sps:$4 sm:$0xff]  }
 0x543   : > { %v5172_v42 = vpop.f32.mrb[16].mxu0  ;;  %v10476_v43 = vpop.f32.mrb[16].mxu1 }
 0x544   : > { %v7777_v44 = vadd.f32 %v5172_v42, %v4440_v39  ;;  %v5174_v20 = vpop.f32.mrb[17].mxu0  ;;  %v5256_v45 = vpop.f32.mrb[17].mxu1  ;;  %v9052_v39 = vld [vmem:[%s9675_s27 + $0xb4c] ss:$16 sps:$4 sm:$0xff]   ;;  %v9055_v42 = vld [vmem:[%s9675_s27 + $0xb64] ss:$16 sps:$4 sm:$0xff]  }
 0x545   : > { %v7778_v46 = vadd.f32 %v5174_v20, %v4444_v40  ;;  %v7780_v47 = vadd.f32 %v5256_v45, %v4452_v41  ;;  %v5176_v27 = vpop.f32.mrb[18].mxu0  ;;  %v5258_v48 = vpop.f32.mrb[18].mxu1  ;;  %v9047_v40 = vld [vmem:[%s9675_s27 + $0xb40] ss:$16 sps:$4 sm:$0xff]   ;;  %v9050_v41 = vld [vmem:[%s9675_s27 + $0xb48] ss:$16 sps:$4 sm:$0xff]  }
 0x546   : > { %v5261_v49 = vmax.f32 %v7777_v44, 0.0  ;;  %v5177_v50 = vpop.f32.mrb[19].mxu0  ;;  %v5259_v51 = vpop.f32.mrb[19].mxu1  ;;  %v9058_v44 = vld [vmem:[%s9675_s27 + $0xb6c] ss:$16 sps:$4 sm:$0xff]  }
 0x547   : > { %v5262_v52 = vmax.f32 %v7778_v46, 0.0  ;;  %v5264_v53 = vmax.f32 %v7780_v47, 0.0  ;;  %v9053_v20 = vld [vmem:[%s9675_s27 + $0xb60] ss:$16 sps:$4 sm:$0xff]   ;;  %v9056_v45 = vld [vmem:[%s9675_s27 + $0xb68] ss:$16 sps:$4 sm:$0xff]  }
 0x548   : > { %v5265_v56 = vpack.c.bf16 %v5261_v49, %v5261_v49  ;;  %v9061_v46 = vld [vmem:[%s9675_s27 + $0xb84] ss:$16 sps:$4 sm:$0xff]   ;;  %v9064_v47 = vld [vmem:[%s9675_s27 + $0xb8c] ss:$16 sps:$4 sm:$0xff]   ;;  %v9059_v27 = vld [vmem:[%s9675_s27 + $0xb80] ss:$16 sps:$4 sm:$0xff]  }
 0x549   : > { %v5266_v54 = vpack.c.bf16 %v5262_v52, %v5262_v52  ;;  %v5268_v59 = vpack.c.bf16 %v5264_v53, %v5264_v53  ;;  %v9062_v48 = vld [vmem:[%s9675_s27 + $0xb88] ss:$16 sps:$4 sm:$0xff]   ;;  %v9067_v49 = vld [vmem:[%s9675_s27 + $0xba4] ss:$16 sps:$4 sm:$0xff]   ;;  %v9070_v50 = vld [vmem:[%s9675_s27 + $0xbac] ss:$16 sps:$4 sm:$0xff]   ;;  %v4448_v53 = vrot.slane %v10468_v38, %v9952_v28 }
 0x54a   : > { %v9065_v51 = vld [vmem:[%s9675_s27 + $0xba0] ss:$16 sps:$4 sm:$0xff]   ;;  %v9068_v52 = vld [vmem:[%s9675_s27 + $0xba8] ss:$16 sps:$4 sm:$0xff]  }
 0x54b   : > { %6093 = vmatprep.mubr.bf16.mxu0 %v5266_v54  ;;  %6175 = vmatprep.mubr.bf16.mxu1 %v5266_v54  ;;  %v9073_v54 = vld [vmem:[%s9675_s27 + $0xbc4] ss:$16 sps:$4 sm:$0xff]   ;;  %v9077_v38 = vld [vmem:[%s9675_s27 + $0xbe0] ss:$16 sps:$4 sm:$0xff]  }
 0x54c   : > { %6094 = vmatmul.mubr.bf16.vlgmr.msra.gmra.mrb[20].mxu0 %v5265_v56  ;;  %6176 = vmatmul.mubr.bf16.vlgmr.msra.gmra.mrb[20].mxu1 %v5265_v56  ;;  %v9074_v56 = vld [vmem:[%s9675_s27 + $0xbc8] ss:$16 sps:$4 sm:$0xff]  }
 0x54d   : > { %6103 = vmatpush1.bf16.msra.mxu0 %v8987_v33  ;;  %6185 = vmatpush1.bf16.msra.mxu1 %v8990_v55  ;;  %v9076_v33 = vld [vmem:[%s9675_s27 + $0xbcc] ss:$16 sps:$4 sm:$0xff]   ;;  %v9071_v55 = vld [vmem:[%s9675_s27 + $0xbc0] ss:$16 sps:$4 sm:$0xff]  }
 0x54e   : > { %6134 = vmatprep.mubr.bf16.mxu0 %v5268_v59  ;;  %6216 = vmatprep.mubr.bf16.mxu1 %v5268_v59  ;;  %v9082_v59 = vld [vmem:[%s9675_s27 + $0xbec] ss:$16 sps:$4 sm:$0xff]  }
 0x54f   : > { %6104 = vmatprep.subr.bf16.mxu0 %v8995_v57  ;;  %6186 = vmatprep.subr.bf16.mxu1 %v8998_v58  ;;  %v7779_v57 = vadd.f32 %v10476_v43, %v4448_v53  ;;  %v9079_v58 = vld [vmem:[%s9675_s27 + $0xbe4] ss:$16 sps:$4 sm:$0xff]  }
 0x550   : > { %v7606_v43 = vld [vmem:[%s10159_s24 + $0x8] sm:$0xf] }
 0x551   : > { %6105 = vmatpush1.bf16.msra.mxu0 %v8993_v60  ;;  %6187 = vmatpush1.bf16.msra.mxu1 %v8996_v61  ;;  %v9080_v60 = vld [vmem:[%s9675_s27 + $0xbe8] ss:$16 sps:$4 sm:$0xff]   ;;  %v5263_v61 = vmax.f32 %v7779_v57, 0.0 }
 0x552   : > { %6106 = vmatprep.subr.bf16.mxu0 %v9001_v62  ;;  %6188 = vmatprep.subr.bf16.mxu1 %v9004_v63  ;;  %v5404_v63 = vrot.slane %v7606_v43, %v9882_v12 }
 0x553   : > { %v5267_v62 = vpack.c.bf16 %v5263_v61, %v5263_v61 }
 0x555   : > { %6107 = vmatpush1.bf16.msra.mxu0 %v8999_v0  ;;  %6189 = vmatpush1.bf16.msra.mxu1 %v9002_v1  ;;  %v5412_v0 = vrot.slane %v7606_v43, %v9952_v28  ;;  %v5408_v1 = vrot.slane %v7606_v43, %v9888_v14 }
 0x556   : > { %6108 = vmatprep.subr.bf16.mxu0 %v9007_v2  ;;  %6190 = vmatprep.subr.bf16.mxu1 %v9010_v3  ;;  %v5416_v2 = vrot.slane %v7606_v43, %v9891_v15 }
 0x559   : > { %6109 = vmatpush1.bf16.msra.mxu0 %v9005_v4  ;;  %6191 = vmatpush1.bf16.msra.mxu1 %v9008_v5 }
 0x55a   : > { %6110 = vmatprep.subr.bf16.mxu0 %v9013_v6  ;;  %6192 = vmatprep.subr.bf16.mxu1 %v9016_v7 }
 0x55d   : > { %6111 = vmatpush1.bf16.msra.mxu0 %v9011_v8  ;;  %6193 = vmatpush1.bf16.msra.mxu1 %v9014_v9 }
 0x55e   : > { %6112 = vmatprep.subr.bf16.mxu0 %v9019_v10  ;;  %6194 = vmatprep.subr.bf16.mxu1 %v9022_v16 }
 0x561   : > { %6113 = vmatpush1.bf16.msra.mxu0 %v9017_v17  ;;  %6195 = vmatpush1.bf16.msra.mxu1 %v9020_v18 }
 0x562   : > { %6114 = vmatprep.subr.bf16.mxu0 %v9025_v19  ;;  %6196 = vmatprep.subr.bf16.mxu1 %v9028_v21 }
 0x565   : > { %6115 = vmatpush1.bf16.msra.mxu0 %v9023_v22  ;;  %6197 = vmatpush1.bf16.msra.mxu1 %v9026_v23 }
 0x566   : > { %6116 = vmatprep.subr.bf16.mxu0 %v9031_v24  ;;  %6198 = vmatprep.subr.bf16.mxu1 %v9034_v25 }
 0x569   : > { %6117 = vmatpush1.bf16.msra.mxu0 %v9029_v26  ;;  %6199 = vmatpush1.bf16.msra.mxu1 %v9032_v29 }
 0x56a   : > { %6118 = vmatprep.subr.bf16.mxu0 %v9037_v30  ;;  %6200 = vmatprep.subr.bf16.mxu1 %v9040_v31 }
 0x56d   : > { %6119 = vmatpush1.bf16.msra.mxu0 %v9035_v32  ;;  %6201 = vmatpush1.bf16.msra.mxu1 %v9038_v11 }
 0x56e   : > { %6120 = vmatprep.subr.bf16.mxu0 %v9043_v34  ;;  %6202 = vmatprep.subr.bf16.mxu1 %v9046_v35 }
 0x571   : > { %6121 = vmatpush1.bf16.msra.mxu0 %v9041_v36  ;;  %6203 = vmatpush1.bf16.msra.mxu1 %v9044_v37 }
 0x572   : > { %6122 = vmatprep.subr.bf16.mxu0 %v9049_v13  ;;  %6204 = vmatprep.subr.bf16.mxu1 %v9052_v39 }
 0x575   : > { %6123 = vmatpush1.bf16.msra.mxu0 %v9047_v40  ;;  %6205 = vmatpush1.bf16.msra.mxu1 %v9050_v41 }
 0x576   : > { %6124 = vmatprep.subr.bf16.mxu0 %v9055_v42  ;;  %6206 = vmatprep.subr.bf16.mxu1 %v9058_v44 }
 0x579   : > { %6125 = vmatpush1.bf16.msra.mxu0 %v9053_v20  ;;  %6207 = vmatpush1.bf16.msra.mxu1 %v9056_v45 }
 0x57a   : > { %6126 = vmatprep.subr.bf16.mxu0 %v9061_v46  ;;  %6208 = vmatprep.subr.bf16.mxu1 %v9064_v47 }
 0x57d   : > { %6127 = vmatpush1.bf16.msra.mxu0 %v9059_v27  ;;  %6209 = vmatpush1.bf16.msra.mxu1 %v9062_v48 }
 0x57e   : > { %6128 = vmatprep.subr.bf16.mxu0 %v9067_v49  ;;  %6210 = vmatprep.subr.bf16.mxu1 %v9070_v50 }
 0x581   : > { %6129 = vmatpush1.bf16.msra.mxu0 %v9065_v51  ;;  %6211 = vmatpush1.bf16.msra.mxu1 %v9068_v52 }
 0x582   : > { %6130 = vmatprep.subr.bf16.mxu0 %v9073_v54  ;;  %6212 = vmatprep.subr.bf16.mxu1 %v9076_v33 }
 0x585   : > { %6131 = vmatpush1.bf16.msra.mxu0 %v9071_v55  ;;  %6213 = vmatpush1.bf16.msra.mxu1 %v9074_v56 }
 0x586   : > { %6132 = vmatprep.subr.bf16.mxu0 %v9079_v58  ;;  %6214 = vmatprep.subr.bf16.mxu1 %v9082_v59 }
 0x589   : > { %6133 = vmatpush1.bf16.msra.mxu0 %v9077_v38  ;;  %6215 = vmatpush1.bf16.msra.mxu1 %v9080_v60 }
 0x58c   : > { %6135 = vmatmul.mubr.bf16.vlgmr.msra.gmra.mrb[20].mxu0 %v5267_v62  ;;  %6217 = vmatmul.mubr.bf16.vlgmr.msra.gmra.mrb[20].mxu1 %v5267_v62 }
 0x65f   : > { %v6136_v3 = vpop.f32.mrb[20].mxu0  ;;  %v6218_v4 = vpop.f32.mrb[20].mxu1 }
 0x660   : > { %v7781_v5 = vadd.f32 %v6136_v3, %v5404_v63  ;;  %v7783_v6 = vadd.f32 %v6218_v4, %v5412_v0  ;;  %v6138_v7 = vpop.f32.mrb[21].mxu0  ;;  %v6220_v8 = vpop.f32.mrb[21].mxu1 }
 0x661   : > { %v7782_v9 = vadd.f32 %v6138_v7, %v5408_v1  ;;  %v7784_v12 = vadd.f32 %v6220_v8, %v5416_v2  ;;  %v6140_v28 = vpop.f32.mrb[22].mxu0  ;;  %v6222_v10 = vpop.f32.mrb[22].mxu1 }
 0x662   : > { %v6225_v14 = vmax.f32 %v7781_v5, 0.0  ;;  %v6227_v15 = vmax.f32 %v7783_v6, 0.0  ;;  %v6141_v16 = vpop.f32.mrb[23].mxu0  ;;  %v6223_v17 = vpop.f32.mrb[23].mxu1 }
 0x663   : > { %v6226_v18 = vmax.f32 %v7782_v9, 0.0  ;;  %v6228_v19 = vmax.f32 %v7784_v12, 0.0 }
 0x664   : > { %7735 = vst [vmem:[%s10176_s30 + $0x40] sm:$0xff] %v6225_v14  ;;  %7737 = vst [vmem:[%s10176_s30 + $0x50] sm:$0xff] %v6227_v15 }
 0x665   : > { %7736 = vst [vmem:[%s10176_s30 + $0x48] sm:$0xff] %v6226_v18  ;;  %7738 = vst [vmem:[%s10176_s30 + $0x58] sm:$0xff] %v6228_v19 }
 0x666   : > { %9246 = shalt.err (!%p9243_p3)
}
 0x667   : > { %s9247_s18 = scalar_lea.hbm %s10553_s17, 1536  ;;  %s9251_s25 = scalar_lea.hbm %s10612_s5, 6144 }
 0x668   : > { %p9248_p8 = scmp.ne.s32.totalorder %s10553_s17, %s9247_s18  ;;  %p9252_p11 = scmp.lt.u32.totalorder %s10553_s17, %s10612_s5 }
 0x669   : > { %p9253_p1 = scmp.lt.u32.totalorder %s9251_s25, %s9247_s18  ;;  %p9255_p13 = scmp.lt.u32.totalorder %s9247_s18, %s10553_s17 }
 0x66a   : > { %p9249_p6 = pnand %p9248_p8, %p10647_p7 }
 0x66b   : > { %p9254_p10 = por %p9253_p1, %p9252_p11 }
 0x66c   : > { %p9250_p12 = pneg %p9249_p6 }
 0x66d   : > { %p9256_p2 = por %p9255_p13, %p9254_p10 }
 0x66f   : > { %p9257_p4 = pnand %p9256_p2, %p9250_p12 }
 0x671   : > { %9260 = shalt.err (!%p9257_p4)
}
 0x672   : > { %s9337_s15 = smov 512   ;;  %s9338_s7 = smov 32  }
 0x673   : > { %7851 = dma.vmem_to_hbm [thread:$0]  (%p10647_p7), %s10555_s16, 1536, %s10553_s17, %s6235_s3, %s9337_s15, %s9337_s15, %s9338_s7  }
 0x674 PF: > { %s10648_s13 = sld [smem:[#allocation16_spill]]  ;;  %s10649_s27 = sld [smem:[#allocation20_spill]] }
 0x675   : > { %p7874_p0 = scmp.ge.s32.totalorder %s9323_s23, 2 }
 0x67a   : > { %s6266_s24 = sand.u32 1, %s10648_s13   ;;  %p10650_p5 = scmp.ne.s32.totalorder %s10649_s27, 0 }
 0x67b   : > { %s6267_s30 = scalar_lea.sflag [#allocation4], %s6266_s24 }
 0x67c   : > { %p7870_p9 = pnand %p7874_p0, %p10650_p5 }
 0x67e   : > { %9298 = dma.done.wait (!%p7870_p9), %s6267_s30, 1536  }
 0x67f   : > { %9300 = vsyncadd (!%p7870_p9), %s6267_s30, 4294965760  ;;  %s27_s23 = sadd.s32 1, %s9323_s23   ;;  %s10651_s28 = sld [smem:[#allocation17_spill]] }
 0x680   : > { %p24_p3 = scmp.ge.s32.totalorder %s27_s23, 6   ;;  %s10652_s20 = sld [smem:[#allocation19_spill]] }
 0x681   : > { %s10653_s6 = sld [smem:[#allocation18_spill]]  ;;  %s10654_s18 = smov %s9307_s19 }
 0x682   : > { %s10656_s21 = smov %s9319_s22  ;;  %26 = sbr.rel (!%p24_p3) target bundleno = 13 (0xd), region = 145 }
 0x685   : > { %s10655_s19 = smov %s10651_s28 }
 0x687   : > { %s10657_s22 = smov %s10653_s6 }
 0x689   :  { %6272 = vsyncpa [#allocation3], 1 }
 0x68a   :  { %6274 = vsyncpa [#allocation3 + $0x1], 1 }
 0x68b   :  { %6275 = vsyncpa [#allocation6], 1 }
 0x68c   :  { %6277 = vsyncpa [#allocation6 + $0x1], 1 }
 0x68d   :  { %6278 = vsyncpa [#allocation9], 1 }
 0x68e   :  { %6280 = vsyncpa [#allocation9 + $0x1], 1 }
 0x68f   :  { %6281 = vsyncpa [#allocation4], 1 }
 0x690   :  { %6283 = vsyncpa [#allocation4 + $0x1], 1 }

</bundles_post_ra>
